<compile_context>
chip_gen: v5e
topology: v5e:2x2
jax: 0.10.0
libtpu: 0.0.40
codegen_flags: <defaults>
</compile_context>

<pallas_src>
import functools

import numpy as np
import jax
import jax.numpy as jnp
from jax.experimental import pallas as pl
from jax.experimental.pallas import tpu as pltpu


# k = (dy+1)*3 + (dx+1)  ==  kh*3 + kw of the torch conv weight.
_TAPS = tuple((dy, dx) for dy in (-1, 0, 1) for dx in (-1, 0, 1))


# ---------------------------------------------------------------------------
# Pallas kernels
# ---------------------------------------------------------------------------
def _trunk_kernel(cols_ref, masks_ref,
                  w1_ref, b1_ref,
                  wc11_ref, bc11_ref,
                  wsc_ref, bsc_ref,
                  wc12_ref, bc12_ref,
                  wc21_ref, bc21_ref,
                  wc22_ref, bc22_ref,
                  out_ref, *, ow):
    """conv1+bn1+relu -> ResBlock(32->64, conv1x1+bn shortcut) -> ResBlock(64->64).

    Processes one image's (padded) 56 spatial rows per grid step."""
    f32 = jnp.float32
    bf16 = jnp.bfloat16
    masks = masks_ref[...]                      # (S, 9) 0/1 border masks
    srows = out_ref.shape[0]                    # padded spatial rows per image

    def conv3x3(h, wcat_ref, b_ref):
        cout = b_ref.shape[-1]
        # One lane-dense MXU matmul for all 9 taps: (S, Cin) @ (Cin, 9*Cout).
        t = jnp.dot(h.astype(bf16), wcat_ref[...], preferred_element_type=f32)
        # Centre tap (dy=dx=0): no roll, never masked for real rows.
        acc = t[:, 4 * cout:5 * cout]
        for k, (dy, dx) in enumerate(_TAPS):
            if dy == 0 and dx == 0:
                continue
            off = dy * ow + dx                  # source-row offset of this tap
            tk = pltpu.roll(t[:, k * cout:(k + 1) * cout], (-off) % srows, axis=0)
            acc = acc + tk * masks[:, k:k + 1]  # zero out-of-image contributions
        return acc + b_ref[...]

    # conv1 (5x5, stride 2, pad 1) + folded bn1 (+ /255) + relu      -> (S, 32)
    h1 = jnp.dot(cols_ref[...].astype(bf16), w1_ref[...], preferred_element_type=f32)
    h1 = jnp.maximum(h1 + b1_ref[...], 0.0)

    # Residual block 1: 32 -> 64, conv1x1+BN shortcut (folded)
    a1 = jnp.maximum(conv3x3(h1, wc11_ref, bc11_ref), 0.0)
    sc = jnp.dot(h1.astype(bf16), wsc_ref[...], preferred_element_type=f32) + bsc_ref[...]
    h2 = jnp.maximum(conv3x3(a1, wc12_ref, bc12_ref) + sc, 0.0)

    # Residual block 2: 64 -> 64, identity shortcut
    a2 = jnp.maximum(conv3x3(h2, wc21_ref, bc21_ref), 0.0)
    h3 = jnp.maximum(conv3x3(a2, wc22_ref, bc22_ref) + h2, 0.0)

    out_ref[...] = h3


def _head_kernel(flat_ref, w_fc1_ref, b_fc1_ref, w_head_ref, b_head_ref,
                 out_ref, val_ref):
    """relu(fc1(x)) followed by the fused [fc2 | value_branch] matmul."""
    f32 = jnp.float32
    bf16 = jnp.bfloat16
    f = jnp.dot(flat_ref[...].astype(bf16), w_fc1_ref[...], preferred_element_type=f32)
    f = jnp.maximum(f + b_fc1_ref[...], 0.0)
    head = jnp.dot(f.astype(bf16), w_head_ref[...], preferred_element_type=f32)
    head = head + b_head_ref[...]
    no = out_ref.shape[-1]
    out_ref[...] = head[:, :no]                 # fc2 output
    val_ref[...] = head[:, no:]                 # value_branch output


# ---------------------------------------------------------------------------
# Spec helpers
# ---------------------------------------------------------------------------
def _bcast_spec(shape):
    """Full-array block fetched once (same block index at every grid step)."""
    rank = len(shape)
    return pl.BlockSpec(tuple(shape), lambda *_: (0,) * rank)


def _nbytes(a):
    return int(np.prod(a.shape)) * jnp.dtype(a.dtype).itemsize


# ---------------------------------------------------------------------------
# Static helpers (built once, outside the kernels)
# ---------------------------------------------------------------------------
def im2col(x, k, stride, pad):
    """x: (N,H,W,C) NHWC -> ((N, OH*OW, k*k*C), OH, OW); feature order (kh,kw,c).
    Only used for conv1 on the raw 16x16x1 input (tiny XLA glue)."""
    n, h, w, c = x.shape
    xp = jnp.pad(x, ((0, 0), (pad, pad), (pad, pad), (0, 0)))
    oh = (h + 2 * pad - k) // stride + 1
    ow = (w + 2 * pad - k) // stride + 1
    cols = []
    for i in range(k):
        for j in range(k):
            cols.append(xp[:, i:i + stride * oh:stride, j:j + stride * ow:stride, :])
    patches = jnp.concatenate(cols, axis=-1)
    return patches.reshape(n, oh * ow, k * k * c), oh, ow


def _border_masks(oh, ow, s_pad):
    """(s_pad, 9) f32 0/1 masks: mask[s,k]=1 iff tap k's source pixel is inside
    the image for output position s (pad rows s>=oh*ow are all zero)."""
    m = np.zeros((s_pad, 9), np.float32)
    for s in range(oh * ow):
        y, x = s // ow, s % ow
        for k, (dy, dx) in enumerate(_TAPS):
            if 0 <= y + dy < oh and 0 <= x + dx < ow:
                m[s, k] = 1.0
    return jnp.asarray(m)


# ---------------------------------------------------------------------------
# Deterministic parameter initialization (synthetic; BN folded at init)
# ---------------------------------------------------------------------------
def conv_bn_params(key, cin, cout, k, eps=1e-5, input_scale=1.0):
    """Torch Conv2d(cin,cout,k) + inference BatchNorm2d(cout) folded into
    per-tap weights (k*k, cin, cout) and bias (1, cout)."""
    k1, k2, k3, k4, k5, k6 = jax.random.split(key, 6)
    w = jax.random.normal(k1, (cout, cin, k, k), jnp.float32) * 0.1   # torch (O,I,KH,KW)
    b = jax.random.normal(k2, (cout,), jnp.float32) * 0.1
    gamma = 1.0 + 0.1 * jax.random.normal(k3, (cout,), jnp.float32)
    beta = 0.1 * jax.random.normal(k4, (cout,), jnp.float32)
    mean = 0.1 * jax.random.normal(k5, (cout,), jnp.float32)
    var = 1.0 + 0.1 * jnp.abs(jax.random.normal(k6, (cout,), jnp.float32))
    scale = gamma / jnp.sqrt(var + eps)
    bias = scale * (b - mean) + beta
    # (O,I,KH,KW) -> (KH*KW, I, O), tap index k = kh*K + kw; fold scales in.
    w_taps = jnp.transpose(w, (2, 3, 1, 0)).reshape(k * k, cin, cout)
    w_taps = w_taps * scale[None, None, :] * input_scale
    return w_taps, bias.reshape(1, cout)


def _pack_cat(w_taps):
    """(9, Cin, Cout) f32 -> (Cin, 9*Cout) bf16, column block k = tap k."""
    kk, cin, cout = w_taps.shape
    return jnp.transpose(w_taps, (1, 0, 2)).reshape(cin, kk * cout).astype(jnp.bfloat16)


def linear_params(key, din, dout):
    """Torch nn.Linear(din, dout): weight (dout, din), bias (dout,)."""
    k1, k2 = jax.random.split(key)
    bound = 1.0 / (din ** 0.5)
    w = jax.random.uniform(k1, (dout, din), jnp.float32, -bound, bound)
    b = jax.random.uniform(k2, (dout,), jnp.float32, -bound, bound)
    return w, b


def init_params(key, obs_size=16, num_outputs=2):
    keys = jax.random.split(key, 9)
    oh = (obs_size + 2 * 1 - 5) // 2 + 1          # conv1: k=5, s=2, p=1  -> 7
    ow = oh
    s_real = oh * ow                              # 49 spatial positions / image
    s_pad = ((s_real + 7) // 8) * 8               # pad to sublane multiple -> 56
    conv_out = 64 * s_real                        # matches _get_conv_output (3136)

    p = {}
    # conv1+bn1, /255 input normalization folded into the weights.
    w1, b1 = conv_bn_params(keys[0], 1, 32, 5, input_scale=1.0 / 255.0)
    p["conv1_w"] = w1.reshape(5 * 5 * 1, 32).astype(jnp.bfloat16)   # im2col order (kh,kw,cin)
    p["conv1_b"] = b1
    # Residual block 1 (32 -> 64) + its conv1x1+BN shortcut.
    w, b = conv_bn_params(keys[1], 32, 64, 3); p["b1c1_w"] = _pack_cat(w); p["b1c1_b"] = b
    w, b = conv_bn_params(keys[2], 64, 64, 3); p["b1c2_w"] = _pack_cat(w); p["b1c2_b"] = b
    w, b = conv_bn_params(keys[3], 32, 64, 1)
    p["b1sc_w"] = w.reshape(32, 64).astype(jnp.bfloat16)            # 1x1 conv == per-pixel matmul
    p["b1sc_b"] = b
    # Residual block 2 (64 -> 64, identity shortcut).
    w, b = conv_bn_params(keys[4], 64, 64, 3); p["b2c1_w"] = _pack_cat(w); p["b2c1_b"] = b
    w, b = conv_bn_params(keys[5], 64, 64, 3); p["b2c2_w"] = _pack_cat(w); p["b2c2_b"] = b

    # fc1: permute weight rows from torch's NCHW-flatten order (c*49 + s) to the
    # (s*64 + c) order produced by the trunk, and zero the pad-row positions.
    w_fc1, b_fc1 = linear_params(keys[6], conv_out, 128)
    wt = w_fc1.T.reshape(64, s_real, 128).transpose(1, 0, 2)        # (49, 64, 128)
    wt = jnp.pad(wt, ((0, s_pad - s_real), (0, 0), (0, 0)))         # (56, 64, 128)
    p["fc1_w"] = wt.reshape(s_pad * 64, 128).astype(jnp.bfloat16)
    p["fc1_b"] = b_fc1.reshape(1, 128)

    # fc2 and value_branch share the 128-d input: fuse into one output head.
    w_fc2, b_fc2 = linear_params(keys[7], 128, num_outputs)
    w_val, b_val = linear_params(keys[8], 128, 1)
    p["head_w"] = jnp.concatenate([w_fc2.T, w_val.T], axis=1).astype(jnp.bfloat16)
    p["head_b"] = jnp.concatenate([b_fc2, b_val]).reshape(1, num_outputs + 1)

    p["masks"] = _border_masks(oh, ow, s_pad)     # (s_pad, 9) f32 constants
    return p


# ---------------------------------------------------------------------------
# Forward pass (matches RacecarResnet.forward semantics)
# ---------------------------------------------------------------------------
def forward(obs, params):
    n = obs.shape[0]
    x = obs.astype(jnp.float32)                   # /255 is folded into conv1_w
    cols, oh, ow = im2col(x, 5, 2, 1)             # (n, 49, 25) input patches
    s_real = oh * ow
    s_pad = params["masks"].shape[0]
    num_outputs = params["head_w"].shape[1] - 1
    cols = jnp.pad(cols, ((0, 0), (0, s_pad - s_real), (0, 0)))
    cols = cols.reshape(n * s_pad, 25)

    trunk_in = (cols, params["masks"],
                params["conv1_w"], params["conv1_b"],
                params["b1c1_w"], params["b1c1_b"],
                params["b1sc_w"], params["b1sc_b"],
                params["b1c2_w"], params["b1c2_b"],
                params["b2c1_w"], params["b2c1_b"],
                params["b2c2_w"], params["b2c2_b"])

    trunk_flops = 2 * n * s_pad * (25 * 32 + 32 * 576 + 32 * 64 + 3 * 64 * 576)
    trunk_bytes = sum(_nbytes(a) for a in trunk_in) + n * s_pad * 64 * 4

    h3 = pl.pallas_call(
        functools.partial(_trunk_kernel, ow=ow),
        grid=(n,),                                # one image per step; megacore on v7x
        in_specs=[pl.BlockSpec((s_pad, 25), lambda i: (i, 0))]
                 + [_bcast_spec(a.shape) for a in trunk_in[1:]],
        out_specs=pl.BlockSpec((s_pad, 64), lambda i: (i, 0)),
        out_shape=jax.ShapeDtypeStruct((n * s_pad, 64), jnp.float32),
        compiler_params=pltpu.CompilerParams(dimension_semantics=("parallel",)),
        cost_estimate=pl.CostEstimate(flops=int(trunk_flops), transcendentals=0,
                                      bytes_accessed=int(trunk_bytes)),
    )(*trunk_in)

    # (n*s_pad, 64) -> (n, s_pad*64): contiguous reshape; fc1's weight rows were
    # permuted (and zero-padded) at init so this flatten matches torch's
    # NCHW flatten + fc1 exactly.
    flat = h3.reshape(n, s_pad * 64)

    head_in = (flat, params["fc1_w"], params["fc1_b"], params["head_w"], params["head_b"])
    head_flops = 2 * n * (s_pad * 64 * 128 + 128 * (num_outputs + 1))
    head_bytes = sum(_nbytes(a) for a in head_in) + n * (num_outputs + 2) * 4

    out, value = pl.pallas_call(
        _head_kernel,
        grid=(1,),
        in_specs=[_bcast_spec(a.shape) for a in head_in],
        out_specs=(_bcast_spec((n, num_outputs)), _bcast_spec((n, 1))),
        out_shape=(jax.ShapeDtypeStruct((n, num_outputs), jnp.float32),
                   jax.ShapeDtypeStruct((n, 1), jnp.float32)),
        compiler_params=pltpu.CompilerParams(dimension_semantics=("arbitrary",)),
        cost_estimate=pl.CostEstimate(flops=int(head_flops), transcendentals=0,
                                      bytes_accessed=int(head_bytes)),
    )(*head_in)

    return out, value                              # value == self._value


if __name__ == "__main__":
    key = jax.random.PRNGKey(0)
    k_obs, k_params = jax.random.split(key)

    N, H, num_outputs = 2, 16, 2
    obs = jax.random.randint(k_obs, (N, H, H, 1), 0, 256, dtype=jnp.int32).astype(jnp.uint8)
    params = init_params(k_params, obs_size=H, num_outputs=num_outputs)

    out, value = jax.jit(forward)(obs, params)
    jax.block_until_ready((out, value))

    assert out.shape == (N, num_outputs), out.shape
    assert value.shape == (N, 1), value.shape
    assert out.dtype == jnp.float32 and value.dtype == jnp.float32
    assert bool(jnp.all(jnp.isfinite(out))) and bool(jnp.all(jnp.isfinite(value)))
    print("KERNEL_OK")
</pallas_src>

<mosaic_0001>
module attributes {stable_mosaic.version = 11 : i64} {
  func.func @_head_kernel(%arg0: i32, %arg1: memref<2x3584xf32, #tpu.memory_space<vmem>>, %arg2: memref<3584x128xbf16, #tpu.memory_space<vmem>>, %arg3: memref<1x128xf32, #tpu.memory_space<vmem>>, %arg4: memref<128x3xbf16, #tpu.memory_space<vmem>>, %arg5: memref<1x3xf32, #tpu.memory_space<vmem>>, %arg6: memref<2x2xf32, #tpu.memory_space<vmem>>, %arg7: memref<2x1xf32, #tpu.memory_space<vmem>>) attributes {dimension_semantics = [#tpu.dimension_semantics<arbitrary>], iteration_bounds = array<i64: 1>, scalar_prefetch = 0 : i64, scratch_operands = 0 : i64, tpu.core_type = #tpu.core_type<tc>, window_params = [{pipeline_mode = #tpu.pipeline_mode<synchronous>, transform_indices = @transform_0, window_bounds = array<i64: 2, 3584>}, {pipeline_mode = #tpu.pipeline_mode<synchronous>, transform_indices = @transform_1, window_bounds = array<i64: 3584, 128>}, {pipeline_mode = #tpu.pipeline_mode<synchronous>, transform_indices = @transform_2, window_bounds = array<i64: 1, 128>}, {pipeline_mode = #tpu.pipeline_mode<synchronous>, transform_indices = @transform_3, window_bounds = array<i64: 128, 3>}, {pipeline_mode = #tpu.pipeline_mode<synchronous>, transform_indices = @transform_4, window_bounds = array<i64: 1, 3>}, {pipeline_mode = #tpu.pipeline_mode<synchronous>, transform_indices = @transform_5, window_bounds = array<i64: 2, 2>}, {pipeline_mode = #tpu.pipeline_mode<synchronous>, transform_indices = @transform_6, window_bounds = array<i64: 2, 1>}]} {
    %c0 = arith.constant 0 : index
    %c0_0 = arith.constant 0 : index
    %0 = vector.load %arg1[%c0, %c0_0] : memref<2x3584xf32, #tpu.memory_space<vmem>>, vector<2x3584xf32>
    %1 = arith.truncf %0 : vector<2x3584xf32> to vector<2x3584xbf16>
    %c0_1 = arith.constant 0 : index
    %c0_2 = arith.constant 0 : index
    %2 = vector.load %arg2[%c0_1, %c0_2] : memref<3584x128xbf16, #tpu.memory_space<vmem>>, vector<3584x128xbf16>
    %cst = arith.constant dense<0.000000e+00> : vector<2x128xf32>
    %3 = tpu.matmul %1, %2, %cst {dimension_numbers = #tpu.dot_dimension_numbers<[1], [0], [0], [1], [0, 0, 1, 1], [], []>} : vector<2x3584xbf16>, vector<3584x128xbf16>, vector<2x128xf32> -> vector<2x128xf32>
    %c0_3 = arith.constant 0 : index
    %c0_4 = arith.constant 0 : index
    %4 = vector.load %arg3[%c0_3, %c0_4] : memref<1x128xf32, #tpu.memory_space<vmem>>, vector<1x128xf32>
    %5 = vector.broadcast %4 : vector<1x128xf32> to vector<2x128xf32>
    %6 = arith.addf %3, %5 : vector<2x128xf32>
    %cst_5 = arith.constant 0.000000e+00 : f32
    %7 = vector.broadcast %cst_5 : f32 to vector<2x128xf32>
    %8 = arith.maximumf %6, %7 : vector<2x128xf32>
    %9 = arith.truncf %8 : vector<2x128xf32> to vector<2x128xbf16>
    %c0_6 = arith.constant 0 : index
    %c0_7 = arith.constant 0 : index
    %10 = vector.load %arg4[%c0_6, %c0_7] : memref<128x3xbf16, #tpu.memory_space<vmem>>, vector<128x3xbf16>
    %cst_8 = arith.constant dense<0.000000e+00> : vector<2x3xf32>
    %11 = tpu.matmul %9, %10, %cst_8 {dimension_numbers = #tpu.dot_dimension_numbers<[1], [0], [0], [1], [0, 0, 1, 1], [], []>} : vector<2x128xbf16>, vector<128x3xbf16>, vector<2x3xf32> -> vector<2x3xf32>
    %c0_9 = arith.constant 0 : index
    %c0_10 = arith.constant 0 : index
    %12 = vector.load %arg5[%c0_9, %c0_10] : memref<1x3xf32, #tpu.memory_space<vmem>>, vector<1x3xf32>
    %13 = vector.broadcast %12 : vector<1x3xf32> to vector<2x3xf32>
    %14 = arith.addf %11, %13 : vector<2x3xf32>
    %15 = vector.extract_strided_slice %14 {offsets = [0, 0], sizes = [2, 2], strides = [1, 1]} : vector<2x3xf32> to vector<2x2xf32>
    %c0_11 = arith.constant 0 : index
    %c0_12 = arith.constant 0 : index
    %16 = vector.load %arg6[%c0_11, %c0_12] : memref<2x2xf32, #tpu.memory_space<vmem>>, vector<2x2xf32>
    tpu.vector_store %arg6[%c0_11, %c0_12], %15 {strides = array<i32>} : memref<2x2xf32, #tpu.memory_space<vmem>>, vector<2x2xf32>,
    %17 = vector.extract_strided_slice %14 {offsets = [0, 2], sizes = [2, 1], strides = [1, 1]} : vector<2x3xf32> to vector<2x1xf32>
    %c0_13 = arith.constant 0 : index
    %c0_14 = arith.constant 0 : index
    %18 = vector.load %arg7[%c0_13, %c0_14] : memref<2x1xf32, #tpu.memory_space<vmem>>, vector<2x1xf32>
    tpu.vector_store %arg7[%c0_13, %c0_14], %17 {strides = array<i32>} : memref<2x1xf32, #tpu.memory_space<vmem>>, vector<2x1xf32>,
    return
  }
  func.func @transform_0(%arg0: i32) -> (i32, i32) {
    %c0_i32 = arith.constant 0 : i32
    %c0_i32_0 = arith.constant 0 : i32
    %c0_i32_1 = arith.constant 0 : i32
    return %c0_i32, %c0_i32_0 : i32, i32
  }
  func.func @transform_1(%arg0: i32) -> (i32, i32) {
    %c0_i32 = arith.constant 0 : i32
    %c0_i32_0 = arith.constant 0 : i32
    %c0_i32_1 = arith.constant 0 : i32
    return %c0_i32, %c0_i32_0 : i32, i32
  }
  func.func @transform_2(%arg0: i32) -> (i32, i32) {
    %c0_i32 = arith.constant 0 : i32
    %c0_i32_0 = arith.constant 0 : i32
    %c0_i32_1 = arith.constant 0 : i32
    return %c0_i32, %c0_i32_0 : i32, i32
  }
  func.func @transform_3(%arg0: i32) -> (i32, i32) {
    %c0_i32 = arith.constant 0 : i32
    %c0_i32_0 = arith.constant 0 : i32
    %c0_i32_1 = arith.constant 0 : i32
    return %c0_i32, %c0_i32_0 : i32, i32
  }
  func.func @transform_4(%arg0: i32) -> (i32, i32) {
    %c0_i32 = arith.constant 0 : i32
    %c0_i32_0 = arith.constant 0 : i32
    %c0_i32_1 = arith.constant 0 : i32
    return %c0_i32, %c0_i32_0 : i32, i32
  }
  func.func @transform_5(%arg0: i32) -> (i32, i32) {
    %c0_i32 = arith.constant 0 : i32
    %c0_i32_0 = arith.constant 0 : i32
    %c0_i32_1 = arith.constant 0 : i32
    return %c0_i32, %c0_i32_0 : i32, i32
  }
  func.func @transform_6(%arg0: i32) -> (i32, i32) {
    %c0_i32 = arith.constant 0 : i32
    %c0_i32_0 = arith.constant 0 : i32
    %c0_i32_1 = arith.constant 0 : i32
    return %c0_i32, %c0_i32_0 : i32, i32
  }
}

module attributes {stable_mosaic.version = 11 : i64} {
  func.func @_trunk_kernel(%arg0: i32, %arg1: memref<56x25xf32, #tpu.memory_space<vmem>>, %arg2: memref<56x9xf32, #tpu.memory_space<vmem>>, %arg3: memref<25x32xbf16, #tpu.memory_space<vmem>>, %arg4: memref<1x32xf32, #tpu.memory_space<vmem>>, %arg5: memref<32x576xbf16, #tpu.memory_space<vmem>>, %arg6: memref<1x64xf32, #tpu.memory_space<vmem>>, %arg7: memref<32x64xbf16, #tpu.memory_space<vmem>>, %arg8: memref<1x64xf32, #tpu.memory_space<vmem>>, %arg9: memref<64x576xbf16, #tpu.memory_space<vmem>>, %arg10: memref<1x64xf32, #tpu.memory_space<vmem>>, %arg11: memref<64x576xbf16, #tpu.memory_space<vmem>>, %arg12: memref<1x64xf32, #tpu.memory_space<vmem>>, %arg13: memref<64x576xbf16, #tpu.memory_space<vmem>>, %arg14: memref<1x64xf32, #tpu.memory_space<vmem>>, %arg15: memref<56x64xf32, #tpu.memory_space<vmem>>) attributes {dimension_semantics = [#tpu.dimension_semantics<parallel>], iteration_bounds = array<i64: 2>, scalar_prefetch = 0 : i64, scratch_operands = 0 : i64, tpu.core_type = #tpu.core_type<tc>, window_params = [{transform_indices = @transform_0, window_bounds = array<i64: 56, 25>}, {pipeline_mode = #tpu.pipeline_mode<synchronous>, transform_indices = @transform_1, window_bounds = array<i64: 56, 9>}, {pipeline_mode = #tpu.pipeline_mode<synchronous>, transform_indices = @transform_2, window_bounds = array<i64: 25, 32>}, {pipeline_mode = #tpu.pipeline_mode<synchronous>, transform_indices = @transform_3, window_bounds = array<i64: 1, 32>}, {pipeline_mode = #tpu.pipeline_mode<synchronous>, transform_indices = @transform_4, window_bounds = array<i64: 32, 576>}, {pipeline_mode = #tpu.pipeline_mode<synchronous>, transform_indices = @transform_5, window_bounds = array<i64: 1, 64>}, {pipeline_mode = #tpu.pipeline_mode<synchronous>, transform_indices = @transform_6, window_bounds = array<i64: 32, 64>}, {pipeline_mode = #tpu.pipeline_mode<synchronous>, transform_indices = @transform_7, window_bounds = array<i64: 1, 64>}, {pipeline_mode = #tpu.pipeline_mode<synchronous>, transform_indices = @transform_8, window_bounds = array<i64: 64, 576>}, {pipeline_mode = #tpu.pipeline_mode<synchronous>, transform_indices = @transform_9, window_bounds = array<i64: 1, 64>}, {pipeline_mode = #tpu.pipeline_mode<synchronous>, transform_indices = @transform_10, window_bounds = array<i64: 64, 576>}, {pipeline_mode = #tpu.pipeline_mode<synchronous>, transform_indices = @transform_11, window_bounds = array<i64: 1, 64>}, {pipeline_mode = #tpu.pipeline_mode<synchronous>, transform_indices = @transform_12, window_bounds = array<i64: 64, 576>}, {pipeline_mode = #tpu.pipeline_mode<synchronous>, transform_indices = @transform_13, window_bounds = array<i64: 1, 64>}, {transform_indices = @transform_14, window_bounds = array<i64: 56, 64>}]} {
    %c0 = arith.constant 0 : index
    %c0_0 = arith.constant 0 : index
    %0 = vector.load %arg2[%c0, %c0_0] : memref<56x9xf32, #tpu.memory_space<vmem>>, vector<56x9xf32>
    %c0_1 = arith.constant 0 : index
    %c0_2 = arith.constant 0 : index
    %1 = vector.load %arg1[%c0_1, %c0_2] : memref<56x25xf32, #tpu.memory_space<vmem>>, vector<56x25xf32>
    %2 = arith.truncf %1 : vector<56x25xf32> to vector<56x25xbf16>
    %c0_3 = arith.constant 0 : index
    %c0_4 = arith.constant 0 : index
    %3 = vector.load %arg3[%c0_3, %c0_4] : memref<25x32xbf16, #tpu.memory_space<vmem>>, vector<25x32xbf16>
    %cst = arith.constant dense<0.000000e+00> : vector<56x32xf32>
    %4 = tpu.matmul %2, %3, %cst {dimension_numbers = #tpu.dot_dimension_numbers<[1], [0], [0], [1], [0, 0, 1, 1], [], []>} : vector<56x25xbf16>, vector<25x32xbf16>, vector<56x32xf32> -> vector<56x32xf32>
    %c0_5 = arith.constant 0 : index
    %c0_6 = arith.constant 0 : index
    %5 = vector.load %arg4[%c0_5, %c0_6] : memref<1x32xf32, #tpu.memory_space<vmem>>, vector<1x32xf32>
    %6 = vector.broadcast %5 : vector<1x32xf32> to vector<56x32xf32>
    %7 = arith.addf %4, %6 : vector<56x32xf32>
    %cst_7 = arith.constant 0.000000e+00 : f32
    %8 = vector.broadcast %cst_7 : f32 to vector<56x32xf32>
    %9 = arith.maximumf %7, %8 : vector<56x32xf32>
    %10 = arith.truncf %9 : vector<56x32xf32> to vector<56x32xbf16>
    %c0_8 = arith.constant 0 : index
    %c0_9 = arith.constant 0 : index
    %11 = vector.load %arg5[%c0_8, %c0_9] : memref<32x576xbf16, #tpu.memory_space<vmem>>, vector<32x576xbf16>
    %cst_10 = arith.constant dense<0.000000e+00> : vector<56x576xf32>
    %12 = tpu.matmul %10, %11, %cst_10 {dimension_numbers = #tpu.dot_dimension_numbers<[1], [0], [0], [1], [0, 0, 1, 1], [], []>} : vector<56x32xbf16>, vector<32x576xbf16>, vector<56x576xf32> -> vector<56x576xf32>
    %13 = vector.extract_strided_slice %12 {offsets = [0, 256], sizes = [56, 64], strides = [1, 1]} : vector<56x576xf32> to vector<56x64xf32>
    %14 = vector.extract_strided_slice %12 {offsets = [0, 0], sizes = [56, 64], strides = [1, 1]} : vector<56x576xf32> to vector<56x64xf32>
    %c8_i32 = arith.constant 8 : i32
    %15 = tpu.dynamic_rotate %14 by %c8_i32 dim 0 : vector<56x64xf32>, i32 -> vector<56x64xf32>
    %16 = vector.extract_strided_slice %0 {offsets = [0, 0], sizes = [56, 1], strides = [1, 1]} : vector<56x9xf32> to vector<56x1xf32>
    %17 = vector.broadcast %16 : vector<56x1xf32> to vector<56x64xf32>
    %18 = arith.mulf %15, %17 : vector<56x64xf32>
    %19 = arith.addf %13, %18 : vector<56x64xf32>
    %20 = vector.extract_strided_slice %12 {offsets = [0, 64], sizes = [56, 64], strides = [1, 1]} : vector<56x576xf32> to vector<56x64xf32>
    %c7_i32 = arith.constant 7 : i32
    %21 = tpu.dynamic_rotate %20 by %c7_i32 dim 0 : vector<56x64xf32>, i32 -> vector<56x64xf32>
    %22 = vector.extract_strided_slice %0 {offsets = [0, 1], sizes = [56, 1], strides = [1, 1]} : vector<56x9xf32> to vector<56x1xf32>
    %23 = vector.broadcast %22 : vector<56x1xf32> to vector<56x64xf32>
    %24 = arith.mulf %21, %23 : vector<56x64xf32>
    %25 = arith.addf %19, %24 : vector<56x64xf32>
    %26 = vector.extract_strided_slice %12 {offsets = [0, 128], sizes = [56, 64], strides = [1, 1]} : vector<56x576xf32> to vector<56x64xf32>
    %c6_i32 = arith.constant 6 : i32
    %27 = tpu.dynamic_rotate %26 by %c6_i32 dim 0 : vector<56x64xf32>, i32 -> vector<56x64xf32>
    %28 = vector.extract_strided_slice %0 {offsets = [0, 2], sizes = [56, 1], strides = [1, 1]} : vector<56x9xf32> to vector<56x1xf32>
    %29 = vector.broadcast %28 : vector<56x1xf32> to vector<56x64xf32>
    %30 = arith.mulf %27, %29 : vector<56x64xf32>
    %31 = arith.addf %25, %30 : vector<56x64xf32>
    %32 = vector.extract_strided_slice %12 {offsets = [0, 192], sizes = [56, 64], strides = [1, 1]} : vector<56x576xf32> to vector<56x64xf32>
    %c1_i32 = arith.constant 1 : i32
    %33 = tpu.dynamic_rotate %32 by %c1_i32 dim 0 : vector<56x64xf32>, i32 -> vector<56x64xf32>
    %34 = vector.extract_strided_slice %0 {offsets = [0, 3], sizes = [56, 1], strides = [1, 1]} : vector<56x9xf32> to vector<56x1xf32>
    %35 = vector.broadcast %34 : vector<56x1xf32> to vector<56x64xf32>
    %36 = arith.mulf %33, %35 : vector<56x64xf32>
    %37 = arith.addf %31, %36 : vector<56x64xf32>
    %38 = vector.extract_strided_slice %12 {offsets = [0, 320], sizes = [56, 64], strides = [1, 1]} : vector<56x576xf32> to vector<56x64xf32>
    %c55_i32 = arith.constant 55 : i32
    %39 = tpu.dynamic_rotate %38 by %c55_i32 dim 0 : vector<56x64xf32>, i32 -> vector<56x64xf32>
    %40 = vector.extract_strided_slice %0 {offsets = [0, 5], sizes = [56, 1], strides = [1, 1]} : vector<56x9xf32> to vector<56x1xf32>
    %41 = vector.broadcast %40 : vector<56x1xf32> to vector<56x64xf32>
    %42 = arith.mulf %39, %41 : vector<56x64xf32>
    %43 = arith.addf %37, %42 : vector<56x64xf32>
    %44 = vector.extract_strided_slice %12 {offsets = [0, 384], sizes = [56, 64], strides = [1, 1]} : vector<56x576xf32> to vector<56x64xf32>
    %c50_i32 = arith.constant 50 : i32
    %45 = tpu.dynamic_rotate %44 by %c50_i32 dim 0 : vector<56x64xf32>, i32 -> vector<56x64xf32>
    %46 = vector.extract_strided_slice %0 {offsets = [0, 6], sizes = [56, 1], strides = [1, 1]} : vector<56x9xf32> to vector<56x1xf32>
    %47 = vector.broadcast %46 : vector<56x1xf32> to vector<56x64xf32>
    %48 = arith.mulf %45, %47 : vector<56x64xf32>
    %49 = arith.addf %43, %48 : vector<56x64xf32>
    %50 = vector.extract_strided_slice %12 {offsets = [0, 448], sizes = [56, 64], strides = [1, 1]} : vector<56x576xf32> to vector<56x64xf32>
    %c49_i32 = arith.constant 49 : i32
    %51 = tpu.dynamic_rotate %50 by %c49_i32 dim 0 : vector<56x64xf32>, i32 -> vector<56x64xf32>
    %52 = vector.extract_strided_slice %0 {offsets = [0, 7], sizes = [56, 1], strides = [1, 1]} : vector<56x9xf32> to vector<56x1xf32>
    %53 = vector.broadcast %52 : vector<56x1xf32> to vector<56x64xf32>
    %54 = arith.mulf %51, %53 : vector<56x64xf32>
    %55 = arith.addf %49, %54 : vector<56x64xf32>
    %56 = vector.extract_strided_slice %12 {offsets = [0, 512], sizes = [56, 64], strides = [1, 1]} : vector<56x576xf32> to vector<56x64xf32>
    %c48_i32 = arith.constant 48 : i32
    %57 = tpu.dynamic_rotate %56 by %c48_i32 dim 0 : vector<56x64xf32>, i32 -> vector<56x64xf32>
    %58 = vector.extract_strided_slice %0 {offsets = [0, 8], sizes = [56, 1], strides = [1, 1]} : vector<56x9xf32> to vector<56x1xf32>
    %59 = vector.broadcast %58 : vector<56x1xf32> to vector<56x64xf32>
    %60 = arith.mulf %57, %59 : vector<56x64xf32>
    %61 = arith.addf %55, %60 : vector<56x64xf32>
    %c0_11 = arith.constant 0 : index
    %c0_12 = arith.constant 0 : index
    %62 = vector.load %arg6[%c0_11, %c0_12] : memref<1x64xf32, #tpu.memory_space<vmem>>, vector<1x64xf32>
    %63 = vector.broadcast %62 : vector<1x64xf32> to vector<56x64xf32>
    %64 = arith.addf %61, %63 : vector<56x64xf32>
    %cst_13 = arith.constant 0.000000e+00 : f32
    %65 = vector.broadcast %cst_13 : f32 to vector<56x64xf32>
    %66 = arith.maximumf %64, %65 : vector<56x64xf32>
    %67 = arith.truncf %9 : vector<56x32xf32> to vector<56x32xbf16>
    %c0_14 = arith.constant 0 : index
    %c0_15 = arith.constant 0 : index
    %68 = vector.load %arg7[%c0_14, %c0_15] : memref<32x64xbf16, #tpu.memory_space<vmem>>, vector<32x64xbf16>
    %cst_16 = arith.constant dense<0.000000e+00> : vector<56x64xf32>
    %69 = tpu.matmul %67, %68, %cst_16 {dimension_numbers = #tpu.dot_dimension_numbers<[1], [0], [0], [1], [0, 0, 1, 1], [], []>} : vector<56x32xbf16>, vector<32x64xbf16>, vector<56x64xf32> -> vector<56x64xf32>
    %c0_17 = arith.constant 0 : index
    %c0_18 = arith.constant 0 : index
    %70 = vector.load %arg8[%c0_17, %c0_18] : memref<1x64xf32, #tpu.memory_space<vmem>>, vector<1x64xf32>
    %71 = vector.broadcast %70 : vector<1x64xf32> to vector<56x64xf32>
    %72 = arith.addf %69, %71 : vector<56x64xf32>
    %73 = arith.truncf %66 : vector<56x64xf32> to vector<56x64xbf16>
    %c0_19 = arith.constant 0 : index
    %c0_20 = arith.constant 0 : index
    %74 = vector.load %arg9[%c0_19, %c0_20] : memref<64x576xbf16, #tpu.memory_space<vmem>>, vector<64x576xbf16>
    %cst_21 = arith.constant dense<0.000000e+00> : vector<56x576xf32>
    %75 = tpu.matmul %73, %74, %cst_21 {dimension_numbers = #tpu.dot_dimension_numbers<[1], [0], [0], [1], [0, 0, 1, 1], [], []>} : vector<56x64xbf16>, vector<64x576xbf16>, vector<56x576xf32> -> vector<56x576xf32>
    %76 = vector.extract_strided_slice %75 {offsets = [0, 256], sizes = [56, 64], strides = [1, 1]} : vector<56x576xf32> to vector<56x64xf32>
    %77 = vector.extract_strided_slice %75 {offsets = [0, 0], sizes = [56, 64], strides = [1, 1]} : vector<56x576xf32> to vector<56x64xf32>
    %c8_i32_22 = arith.constant 8 : i32
    %78 = tpu.dynamic_rotate %77 by %c8_i32_22 dim 0 : vector<56x64xf32>, i32 -> vector<56x64xf32>
    %79 = vector.extract_strided_slice %0 {offsets = [0, 0], sizes = [56, 1], strides = [1, 1]} : vector<56x9xf32> to vector<56x1xf32>
    %80 = vector.broadcast %79 : vector<56x1xf32> to vector<56x64xf32>
    %81 = arith.mulf %78, %80 : vector<56x64xf32>
    %82 = arith.addf %76, %81 : vector<56x64xf32>
    %83 = vector.extract_strided_slice %75 {offsets = [0, 64], sizes = [56, 64], strides = [1, 1]} : vector<56x576xf32> to vector<56x64xf32>
    %c7_i32_23 = arith.constant 7 : i32
    %84 = tpu.dynamic_rotate %83 by %c7_i32_23 dim 0 : vector<56x64xf32>, i32 -> vector<56x64xf32>
    %85 = vector.extract_strided_slice %0 {offsets = [0, 1], sizes = [56, 1], strides = [1, 1]} : vector<56x9xf32> to vector<56x1xf32>
    %86 = vector.broadcast %85 : vector<56x1xf32> to vector<56x64xf32>
    %87 = arith.mulf %84, %86 : vector<56x64xf32>
    %88 = arith.addf %82, %87 : vector<56x64xf32>
    %89 = vector.extract_strided_slice %75 {offsets = [0, 128], sizes = [56, 64], strides = [1, 1]} : vector<56x576xf32> to vector<56x64xf32>
    %c6_i32_24 = arith.constant 6 : i32
    %90 = tpu.dynamic_rotate %89 by %c6_i32_24 dim 0 : vector<56x64xf32>, i32 -> vector<56x64xf32>
    %91 = vector.extract_strided_slice %0 {offsets = [0, 2], sizes = [56, 1], strides = [1, 1]} : vector<56x9xf32> to vector<56x1xf32>
    %92 = vector.broadcast %91 : vector<56x1xf32> to vector<56x64xf32>
    %93 = arith.mulf %90, %92 : vector<56x64xf32>
    %94 = arith.addf %88, %93 : vector<56x64xf32>
    %95 = vector.extract_strided_slice %75 {offsets = [0, 192], sizes = [56, 64], strides = [1, 1]} : vector<56x576xf32> to vector<56x64xf32>
    %c1_i32_25 = arith.constant 1 : i32
    %96 = tpu.dynamic_rotate %95 by %c1_i32_25 dim 0 : vector<56x64xf32>, i32 -> vector<56x64xf32>
    %97 = vector.extract_strided_slice %0 {offsets = [0, 3], sizes = [56, 1], strides = [1, 1]} : vector<56x9xf32> to vector<56x1xf32>
    %98 = vector.broadcast %97 : vector<56x1xf32> to vector<56x64xf32>
    %99 = arith.mulf %96, %98 : vector<56x64xf32>
    %100 = arith.addf %94, %99 : vector<56x64xf32>
    %101 = vector.extract_strided_slice %75 {offsets = [0, 320], sizes = [56, 64], strides = [1, 1]} : vector<56x576xf32> to vector<56x64xf32>
    %c55_i32_26 = arith.constant 55 : i32
    %102 = tpu.dynamic_rotate %101 by %c55_i32_26 dim 0 : vector<56x64xf32>, i32 -> vector<56x64xf32>
    %103 = vector.extract_strided_slice %0 {offsets = [0, 5], sizes = [56, 1], strides = [1, 1]} : vector<56x9xf32> to vector<56x1xf32>
    %104 = vector.broadcast %103 : vector<56x1xf32> to vector<56x64xf32>
    %105 = arith.mulf %102, %104 : vector<56x64xf32>
    %106 = arith.addf %100, %105 : vector<56x64xf32>
    %107 = vector.extract_strided_slice %75 {offsets = [0, 384], sizes = [56, 64], strides = [1, 1]} : vector<56x576xf32> to vector<56x64xf32>
    %c50_i32_27 = arith.constant 50 : i32
    %108 = tpu.dynamic_rotate %107 by %c50_i32_27 dim 0 : vector<56x64xf32>, i32 -> vector<56x64xf32>
    %109 = vector.extract_strided_slice %0 {offsets = [0, 6], sizes = [56, 1], strides = [1, 1]} : vector<56x9xf32> to vector<56x1xf32>
    %110 = vector.broadcast %109 : vector<56x1xf32> to vector<56x64xf32>
    %111 = arith.mulf %108, %110 : vector<56x64xf32>
    %112 = arith.addf %106, %111 : vector<56x64xf32>
    %113 = vector.extract_strided_slice %75 {offsets = [0, 448], sizes = [56, 64], strides = [1, 1]} : vector<56x576xf32> to vector<56x64xf32>
    %c49_i32_28 = arith.constant 49 : i32
    %114 = tpu.dynamic_rotate %113 by %c49_i32_28 dim 0 : vector<56x64xf32>, i32 -> vector<56x64xf32>
    %115 = vector.extract_strided_slice %0 {offsets = [0, 7], sizes = [56, 1], strides = [1, 1]} : vector<56x9xf32> to vector<56x1xf32>
    %116 = vector.broadcast %115 : vector<56x1xf32> to vector<56x64xf32>
    %117 = arith.mulf %114, %116 : vector<56x64xf32>
    %118 = arith.addf %112, %117 : vector<56x64xf32>
    %119 = vector.extract_strided_slice %75 {offsets = [0, 512], sizes = [56, 64], strides = [1, 1]} : vector<56x576xf32> to vector<56x64xf32>
    %c48_i32_29 = arith.constant 48 : i32
    %120 = tpu.dynamic_rotate %119 by %c48_i32_29 dim 0 : vector<56x64xf32>, i32 -> vector<56x64xf32>
    %121 = vector.extract_strided_slice %0 {offsets = [0, 8], sizes = [56, 1], strides = [1, 1]} : vector<56x9xf32> to vector<56x1xf32>
    %122 = vector.broadcast %121 : vector<56x1xf32> to vector<56x64xf32>
    %123 = arith.mulf %120, %122 : vector<56x64xf32>
    %124 = arith.addf %118, %123 : vector<56x64xf32>
    %c0_30 = arith.constant 0 : index
    %c0_31 = arith.constant 0 : index
    %125 = vector.load %arg10[%c0_30, %c0_31] : memref<1x64xf32, #tpu.memory_space<vmem>>, vector<1x64xf32>
    %126 = vector.broadcast %125 : vector<1x64xf32> to vector<56x64xf32>
    %127 = arith.addf %124, %126 : vector<56x64xf32>
    %128 = arith.addf %127, %72 : vector<56x64xf32>
    %cst_32 = arith.constant 0.000000e+00 : f32
    %129 = vector.broadcast %cst_32 : f32 to vector<56x64xf32>
    %130 = arith.maximumf %128, %129 : vector<56x64xf32>
    %131 = arith.truncf %130 : vector<56x64xf32> to vector<56x64xbf16>
    %c0_33 = arith.constant 0 : index
    %c0_34 = arith.constant 0 : index
    %132 = vector.load %arg11[%c0_33, %c0_34] : memref<64x576xbf16, #tpu.memory_space<vmem>>, vector<64x576xbf16>
    %cst_35 = arith.constant dense<0.000000e+00> : vector<56x576xf32>
    %133 = tpu.matmul %131, %132, %cst_35 {dimension_numbers = #tpu.dot_dimension_numbers<[1], [0], [0], [1], [0, 0, 1, 1], [], []>} : vector<56x64xbf16>, vector<64x576xbf16>, vector<56x576xf32> -> vector<56x576xf32>
    %134 = vector.extract_strided_slice %133 {offsets = [0, 256], sizes = [56, 64], strides = [1, 1]} : vector<56x576xf32> to vector<56x64xf32>
    %135 = vector.extract_strided_slice %133 {offsets = [0, 0], sizes = [56, 64], strides = [1, 1]} : vector<56x576xf32> to vector<56x64xf32>
    %c8_i32_36 = arith.constant 8 : i32
    %136 = tpu.dynamic_rotate %135 by %c8_i32_36 dim 0 : vector<56x64xf32>, i32 -> vector<56x64xf32>
    %137 = vector.extract_strided_slice %0 {offsets = [0, 0], sizes = [56, 1], strides = [1, 1]} : vector<56x9xf32> to vector<56x1xf32>
    %138 = vector.broadcast %137 : vector<56x1xf32> to vector<56x64xf32>
    %139 = arith.mulf %136, %138 : vector<56x64xf32>
    %140 = arith.addf %134, %139 : vector<56x64xf32>
    %141 = vector.extract_strided_slice %133 {offsets = [0, 64], sizes = [56, 64], strides = [1, 1]} : vector<56x576xf32> to vector<56x64xf32>
    %c7_i32_37 = arith.constant 7 : i32
    %142 = tpu.dynamic_rotate %141 by %c7_i32_37 dim 0 : vector<56x64xf32>, i32 -> vector<56x64xf32>
    %143 = vector.extract_strided_slice %0 {offsets = [0, 1], sizes = [56, 1], strides = [1, 1]} : vector<56x9xf32> to vector<56x1xf32>
    %144 = vector.broadcast %143 : vector<56x1xf32> to vector<56x64xf32>
    %145 = arith.mulf %142, %144 : vector<56x64xf32>
    %146 = arith.addf %140, %145 : vector<56x64xf32>
    %147 = vector.extract_strided_slice %133 {offsets = [0, 128], sizes = [56, 64], strides = [1, 1]} : vector<56x576xf32> to vector<56x64xf32>
    %c6_i32_38 = arith.constant 6 : i32
    %148 = tpu.dynamic_rotate %147 by %c6_i32_38 dim 0 : vector<56x64xf32>, i32 -> vector<56x64xf32>
    %149 = vector.extract_strided_slice %0 {offsets = [0, 2], sizes = [56, 1], strides = [1, 1]} : vector<56x9xf32> to vector<56x1xf32>
    %150 = vector.broadcast %149 : vector<56x1xf32> to vector<56x64xf32>
    %151 = arith.mulf %148, %150 : vector<56x64xf32>
    %152 = arith.addf %146, %151 : vector<56x64xf32>
    %153 = vector.extract_strided_slice %133 {offsets = [0, 192], sizes = [56, 64], strides = [1, 1]} : vector<56x576xf32> to vector<56x64xf32>
    %c1_i32_39 = arith.constant 1 : i32
    %154 = tpu.dynamic_rotate %153 by %c1_i32_39 dim 0 : vector<56x64xf32>, i32 -> vector<56x64xf32>
    %155 = vector.extract_strided_slice %0 {offsets = [0, 3], sizes = [56, 1], strides = [1, 1]} : vector<56x9xf32> to vector<56x1xf32>
    %156 = vector.broadcast %155 : vector<56x1xf32> to vector<56x64xf32>
    %157 = arith.mulf %154, %156 : vector<56x64xf32>
    %158 = arith.addf %152, %157 : vector<56x64xf32>
    %159 = vector.extract_strided_slice %133 {offsets = [0, 320], sizes = [56, 64], strides = [1, 1]} : vector<56x576xf32> to vector<56x64xf32>
    %c55_i32_40 = arith.constant 55 : i32
    %160 = tpu.dynamic_rotate %159 by %c55_i32_40 dim 0 : vector<56x64xf32>, i32 -> vector<56x64xf32>
    %161 = vector.extract_strided_slice %0 {offsets = [0, 5], sizes = [56, 1], strides = [1, 1]} : vector<56x9xf32> to vector<56x1xf32>
    %162 = vector.broadcast %161 : vector<56x1xf32> to vector<56x64xf32>
    %163 = arith.mulf %160, %162 : vector<56x64xf32>
    %164 = arith.addf %158, %163 : vector<56x64xf32>
    %165 = vector.extract_strided_slice %133 {offsets = [0, 384], sizes = [56, 64], strides = [1, 1]} : vector<56x576xf32> to vector<56x64xf32>
    %c50_i32_41 = arith.constant 50 : i32
    %166 = tpu.dynamic_rotate %165 by %c50_i32_41 dim 0 : vector<56x64xf32>, i32 -> vector<56x64xf32>
    %167 = vector.extract_strided_slice %0 {offsets = [0, 6], sizes = [56, 1], strides = [1, 1]} : vector<56x9xf32> to vector<56x1xf32>
    %168 = vector.broadcast %167 : vector<56x1xf32> to vector<56x64xf32>
    %169 = arith.mulf %166, %168 : vector<56x64xf32>
    %170 = arith.addf %164, %169 : vector<56x64xf32>
    %171 = vector.extract_strided_slice %133 {offsets = [0, 448], sizes = [56, 64], strides = [1, 1]} : vector<56x576xf32> to vector<56x64xf32>
    %c49_i32_42 = arith.constant 49 : i32
    %172 = tpu.dynamic_rotate %171 by %c49_i32_42 dim 0 : vector<56x64xf32>, i32 -> vector<56x64xf32>
    %173 = vector.extract_strided_slice %0 {offsets = [0, 7], sizes = [56, 1], strides = [1, 1]} : vector<56x9xf32> to vector<56x1xf32>
    %174 = vector.broadcast %173 : vector<56x1xf32> to vector<56x64xf32>
    %175 = arith.mulf %172, %174 : vector<56x64xf32>
    %176 = arith.addf %170, %175 : vector<56x64xf32>
    %177 = vector.extract_strided_slice %133 {offsets = [0, 512], sizes = [56, 64], strides = [1, 1]} : vector<56x576xf32> to vector<56x64xf32>
    %c48_i32_43 = arith.constant 48 : i32
    %178 = tpu.dynamic_rotate %177 by %c48_i32_43 dim 0 : vector<56x64xf32>, i32 -> vector<56x64xf32>
    %179 = vector.extract_strided_slice %0 {offsets = [0, 8], sizes = [56, 1], strides = [1, 1]} : vector<56x9xf32> to vector<56x1xf32>
    %180 = vector.broadcast %179 : vector<56x1xf32> to vector<56x64xf32>
    %181 = arith.mulf %178, %180 : vector<56x64xf32>
    %182 = arith.addf %176, %181 : vector<56x64xf32>
    %c0_44 = arith.constant 0 : index
    %c0_45 = arith.constant 0 : index
    %183 = vector.load %arg12[%c0_44, %c0_45] : memref<1x64xf32, #tpu.memory_space<vmem>>, vector<1x64xf32>
    %184 = vector.broadcast %183 : vector<1x64xf32> to vector<56x64xf32>
    %185 = arith.addf %182, %184 : vector<56x64xf32>
    %cst_46 = arith.constant 0.000000e+00 : f32
    %186 = vector.broadcast %cst_46 : f32 to vector<56x64xf32>
    %187 = arith.maximumf %185, %186 : vector<56x64xf32>
    %188 = arith.truncf %187 : vector<56x64xf32> to vector<56x64xbf16>
    %c0_47 = arith.constant 0 : index
    %c0_48 = arith.constant 0 : index
    %189 = vector.load %arg13[%c0_47, %c0_48] : memref<64x576xbf16, #tpu.memory_space<vmem>>, vector<64x576xbf16>
    %cst_49 = arith.constant dense<0.000000e+00> : vector<56x576xf32>
    %190 = tpu.matmul %188, %189, %cst_49 {dimension_numbers = #tpu.dot_dimension_numbers<[1], [0], [0], [1], [0, 0, 1, 1], [], []>} : vector<56x64xbf16>, vector<64x576xbf16>, vector<56x576xf32> -> vector<56x576xf32>
    %191 = vector.extract_strided_slice %190 {offsets = [0, 256], sizes = [56, 64], strides = [1, 1]} : vector<56x576xf32> to vector<56x64xf32>
    %192 = vector.extract_strided_slice %190 {offsets = [0, 0], sizes = [56, 64], strides = [1, 1]} : vector<56x576xf32> to vector<56x64xf32>
    %c8_i32_50 = arith.constant 8 : i32
    %193 = tpu.dynamic_rotate %192 by %c8_i32_50 dim 0 : vector<56x64xf32>, i32 -> vector<56x64xf32>
    %194 = vector.extract_strided_slice %0 {offsets = [0, 0], sizes = [56, 1], strides = [1, 1]} : vector<56x9xf32> to vector<56x1xf32>
    %195 = vector.broadcast %194 : vector<56x1xf32> to vector<56x64xf32>
    %196 = arith.mulf %193, %195 : vector<56x64xf32>
    %197 = arith.addf %191, %196 : vector<56x64xf32>
    %198 = vector.extract_strided_slice %190 {offsets = [0, 64], sizes = [56, 64], strides = [1, 1]} : vector<56x576xf32> to vector<56x64xf32>
    %c7_i32_51 = arith.constant 7 : i32
    %199 = tpu.dynamic_rotate %198 by %c7_i32_51 dim 0 : vector<56x64xf32>, i32 -> vector<56x64xf32>
    %200 = vector.extract_strided_slice %0 {offsets = [0, 1], sizes = [56, 1], strides = [1, 1]} : vector<56x9xf32> to vector<56x1xf32>
    %201 = vector.broadcast %200 : vector<56x1xf32> to vector<56x64xf32>
    %202 = arith.mulf %199, %201 : vector<56x64xf32>
    %203 = arith.addf %197, %202 : vector<56x64xf32>
    %204 = vector.extract_strided_slice %190 {offsets = [0, 128], sizes = [56, 64], strides = [1, 1]} : vector<56x576xf32> to vector<56x64xf32>
    %c6_i32_52 = arith.constant 6 : i32
    %205 = tpu.dynamic_rotate %204 by %c6_i32_52 dim 0 : vector<56x64xf32>, i32 -> vector<56x64xf32>
    %206 = vector.extract_strided_slice %0 {offsets = [0, 2], sizes = [56, 1], strides = [1, 1]} : vector<56x9xf32> to vector<56x1xf32>
    %207 = vector.broadcast %206 : vector<56x1xf32> to vector<56x64xf32>
    %208 = arith.mulf %205, %207 : vector<56x64xf32>
    %209 = arith.addf %203, %208 : vector<56x64xf32>
    %210 = vector.extract_strided_slice %190 {offsets = [0, 192], sizes = [56, 64], strides = [1, 1]} : vector<56x576xf32> to vector<56x64xf32>
    %c1_i32_53 = arith.constant 1 : i32
    %211 = tpu.dynamic_rotate %210 by %c1_i32_53 dim 0 : vector<56x64xf32>, i32 -> vector<56x64xf32>
    %212 = vector.extract_strided_slice %0 {offsets = [0, 3], sizes = [56, 1], strides = [1, 1]} : vector<56x9xf32> to vector<56x1xf32>
    %213 = vector.broadcast %212 : vector<56x1xf32> to vector<56x64xf32>
    %214 = arith.mulf %211, %213 : vector<56x64xf32>
    %215 = arith.addf %209, %214 : vector<56x64xf32>
    %216 = vector.extract_strided_slice %190 {offsets = [0, 320], sizes = [56, 64], strides = [1, 1]} : vector<56x576xf32> to vector<56x64xf32>
    %c55_i32_54 = arith.constant 55 : i32
    %217 = tpu.dynamic_rotate %216 by %c55_i32_54 dim 0 : vector<56x64xf32>, i32 -> vector<56x64xf32>
    %218 = vector.extract_strided_slice %0 {offsets = [0, 5], sizes = [56, 1], strides = [1, 1]} : vector<56x9xf32> to vector<56x1xf32>
    %219 = vector.broadcast %218 : vector<56x1xf32> to vector<56x64xf32>
    %220 = arith.mulf %217, %219 : vector<56x64xf32>
    %221 = arith.addf %215, %220 : vector<56x64xf32>
    %222 = vector.extract_strided_slice %190 {offsets = [0, 384], sizes = [56, 64], strides = [1, 1]} : vector<56x576xf32> to vector<56x64xf32>
    %c50_i32_55 = arith.constant 50 : i32
    %223 = tpu.dynamic_rotate %222 by %c50_i32_55 dim 0 : vector<56x64xf32>, i32 -> vector<56x64xf32>
    %224 = vector.extract_strided_slice %0 {offsets = [0, 6], sizes = [56, 1], strides = [1, 1]} : vector<56x9xf32> to vector<56x1xf32>
    %225 = vector.broadcast %224 : vector<56x1xf32> to vector<56x64xf32>
    %226 = arith.mulf %223, %225 : vector<56x64xf32>
    %227 = arith.addf %221, %226 : vector<56x64xf32>
    %228 = vector.extract_strided_slice %190 {offsets = [0, 448], sizes = [56, 64], strides = [1, 1]} : vector<56x576xf32> to vector<56x64xf32>
    %c49_i32_56 = arith.constant 49 : i32
    %229 = tpu.dynamic_rotate %228 by %c49_i32_56 dim 0 : vector<56x64xf32>, i32 -> vector<56x64xf32>
    %230 = vector.extract_strided_slice %0 {offsets = [0, 7], sizes = [56, 1], strides = [1, 1]} : vector<56x9xf32> to vector<56x1xf32>
    %231 = vector.broadcast %230 : vector<56x1xf32> to vector<56x64xf32>
    %232 = arith.mulf %229, %231 : vector<56x64xf32>
    %233 = arith.addf %227, %232 : vector<56x64xf32>
    %234 = vector.extract_strided_slice %190 {offsets = [0, 512], sizes = [56, 64], strides = [1, 1]} : vector<56x576xf32> to vector<56x64xf32>
    %c48_i32_57 = arith.constant 48 : i32
    %235 = tpu.dynamic_rotate %234 by %c48_i32_57 dim 0 : vector<56x64xf32>, i32 -> vector<56x64xf32>
    %236 = vector.extract_strided_slice %0 {offsets = [0, 8], sizes = [56, 1], strides = [1, 1]} : vector<56x9xf32> to vector<56x1xf32>
    %237 = vector.broadcast %236 : vector<56x1xf32> to vector<56x64xf32>
    %238 = arith.mulf %235, %237 : vector<56x64xf32>
    %239 = arith.addf %233, %238 : vector<56x64xf32>
    %c0_58 = arith.constant 0 : index
    %c0_59 = arith.constant 0 : index
    %240 = vector.load %arg14[%c0_58, %c0_59] : memref<1x64xf32, #tpu.memory_space<vmem>>, vector<1x64xf32>
    %241 = vector.broadcast %240 : vector<1x64xf32> to vector<56x64xf32>
    %242 = arith.addf %239, %241 : vector<56x64xf32>
    %243 = arith.addf %242, %130 : vector<56x64xf32>
    %cst_60 = arith.constant 0.000000e+00 : f32
    %244 = vector.broadcast %cst_60 : f32 to vector<56x64xf32>
    %245 = arith.maximumf %243, %244 : vector<56x64xf32>
    %c0_61 = arith.constant 0 : index
    %c0_62 = arith.constant 0 : index
    %246 = vector.load %arg15[%c0_61, %c0_62] : memref<56x64xf32, #tpu.memory_space<vmem>>, vector<56x64xf32>
    tpu.vector_store %arg15[%c0_61, %c0_62], %245 {strides = array<i32>} : memref<56x64xf32, #tpu.memory_space<vmem>>, vector<56x64xf32>,
    return
  }
  func.func @transform_0(%arg0: i32) -> (i32, i32) {
    %c0_i32 = arith.constant 0 : i32
    %c0_i32_0 = arith.constant 0 : i32
    return %arg0, %c0_i32 : i32, i32
  }
  func.func @transform_1(%arg0: i32) -> (i32, i32) {
    %c0_i32 = arith.constant 0 : i32
    %c0_i32_0 = arith.constant 0 : i32
    %c0_i32_1 = arith.constant 0 : i32
    return %c0_i32, %c0_i32_0 : i32, i32
  }
  func.func @transform_2(%arg0: i32) -> (i32, i32) {
    %c0_i32 = arith.constant 0 : i32
    %c0_i32_0 = arith.constant 0 : i32
    %c0_i32_1 = arith.constant 0 : i32
    return %c0_i32, %c0_i32_0 : i32, i32
  }
  func.func @transform_3(%arg0: i32) -> (i32, i32) {
    %c0_i32 = arith.constant 0 : i32
    %c0_i32_0 = arith.constant 0 : i32
    %c0_i32_1 = arith.constant 0 : i32
    return %c0_i32, %c0_i32_0 : i32, i32
  }
  func.func @transform_4(%arg0: i32) -> (i32, i32) {
    %c0_i32 = arith.constant 0 : i32
    %c0_i32_0 = arith.constant 0 : i32
    %c0_i32_1 = arith.constant 0 : i32
    return %c0_i32, %c0_i32_0 : i32, i32
  }
  func.func @transform_5(%arg0: i32) -> (i32, i32) {
    %c0_i32 = arith.constant 0 : i32
    %c0_i32_0 = arith.constant 0 : i32
    %c0_i32_1 = arith.constant 0 : i32
    return %c0_i32, %c0_i32_0 : i32, i32
  }
  func.func @transform_6(%arg0: i32) -> (i32, i32) {
    %c0_i32 = arith.constant 0 : i32
    %c0_i32_0 = arith.constant 0 : i32
    %c0_i32_1 = arith.constant 0 : i32
    return %c0_i32, %c0_i32_0 : i32, i32
  }
  func.func @transform_7(%arg0: i32) -> (i32, i32) {
    %c0_i32 = arith.constant 0 : i32
    %c0_i32_0 = arith.constant 0 : i32
    %c0_i32_1 = arith.constant 0 : i32
    return %c0_i32, %c0_i32_0 : i32, i32
  }
  func.func @transform_8(%arg0: i32) -> (i32, i32) {
    %c0_i32 = arith.constant 0 : i32
    %c0_i32_0 = arith.constant 0 : i32
    %c0_i32_1 = arith.constant 0 : i32
    return %c0_i32, %c0_i32_0 : i32, i32
  }
  func.func @transform_9(%arg0: i32) -> (i32, i32) {
    %c0_i32 = arith.constant 0 : i32
    %c0_i32_0 = arith.constant 0 : i32
    %c0_i32_1 = arith.constant 0 : i32
    return %c0_i32, %c0_i32_0 : i32, i32
  }
  func.func @transform_10(%arg0: i32) -> (i32, i32) {
    %c0_i32 = arith.constant 0 : i32
    %c0_i32_0 = arith.constant 0 : i32
    %c0_i32_1 = arith.constant 0 : i32
    return %c0_i32, %c0_i32_0 : i32, i32
  }
  func.func @transform_11(%arg0: i32) -> (i32, i32) {
    %c0_i32 = arith.constant 0 : i32
    %c0_i32_0 = arith.constant 0 : i32
    %c0_i32_1 = arith.constant 0 : i32
    return %c0_i32, %c0_i32_0 : i32, i32
  }
  func.func @transform_12(%arg0: i32) -> (i32, i32) {
    %c0_i32 = arith.constant 0 : i32
    %c0_i32_0 = arith.constant 0 : i32
    %c0_i32_1 = arith.constant 0 : i32
    return %c0_i32, %c0_i32_0 : i32, i32
  }
  func.func @transform_13(%arg0: i32) -> (i32, i32) {
    %c0_i32 = arith.constant 0 : i32
    %c0_i32_0 = arith.constant 0 : i32
    %c0_i32_1 = arith.constant 0 : i32
    return %c0_i32, %c0_i32_0 : i32, i32
  }
  func.func @transform_14(%arg0: i32) -> (i32, i32) {
    %c0_i32 = arith.constant 0 : i32
    %c0_i32_0 = arith.constant 0 : i32
    return %arg0, %c0_i32 : i32, i32
  }
}

</mosaic_0001>

<bundles_post_ra>
// kernel: forward.2
= control target key start
LH: loop header
LB: loop body
LE: loop exit
PB: predicated region body
PF: predicated region fallthrough
CT: control target
= control target key end

     0   :  { %s3944_s29 = smov 0   ;;  %s6577_s0 = inlined_call_operand.vmem [shape: f32[112,25], index: 0, kind: input, shape index: {}]   ;;  %s6578_s1 = inlined_call_operand.vmem [shape: f32[56,9], index: 1, kind: input, shape index: {}]   ;;  %s6579_s2 = inlined_call_operand.vmem [shape: bf16[25,32], index: 2, kind: input, shape index: {}]   ;;  %s6580_s3 = inlined_call_operand.vmem [shape: f32[1,32], index: 3, kind: input, shape index: {}]   ;;  %s6581_s4 = inlined_call_operand.vmem [shape: bf16[32,576], index: 4, kind: input, shape index: {}]   ;;  %s6582_s5 = inlined_call_operand.vmem [shape: f32[1,64], index: 5, kind: input, shape index: {}]   ;;  %s6583_s6 = inlined_call_operand.vmem [shape: bf16[32,64], index: 6, kind: input, shape index: {}]   ;;  %s6584_s7 = inlined_call_operand.vmem [shape: f32[1,64], index: 7, kind: input, shape index: {}]   ;;  %s6585_s8 = inlined_call_operand.vmem [shape: bf16[64,576], index: 8, kind: input, shape index: {}]   ;;  %s6586_s9 = inlined_call_operand.vmem [shape: f32[1,64], index: 9, kind: input, shape index: {}]   ;;  %s6587_s10 = inlined_call_operand.vmem [shape: bf16[64,576], index: 10, kind: input, shape index: {}]   ;;  %s6588_s11 = inlined_call_operand.vmem [shape: f32[1,64], index: 11, kind: input, shape index: {}]   ;;  %s6589_s12 = inlined_call_operand.vmem [shape: bf16[64,576], index: 12, kind: input, shape index: {}]   ;;  %s6590_s13 = inlined_call_operand.vmem [shape: f32[1,64], index: 13, kind: input, shape index: {}]   ;;  %s6591_s14 = inlined_call_operand.vmem [shape: f32[112,64], index: 14, kind: output, shape index: {}]  }
   0x1 LB: > { %s3304_s30 = sadd.s32 4294967295, %s3857_s29   ;;  %p3308_p0 = scmp.ge.s32.totalorder %s3857_s29, 1  ;;  %s3857_s29 = sphi %s3944_s29, %s24_s29  }
   0x2   : > { %p413_p1 = scmp.lt.s32.totalorder %s3857_s29, 3 }
   0x4   : > { %p414_p2 = pnand %p3308_p0, %p413_p1 }
   0x6   : > { %417 = sbr.rel (%p414_p2) target bundleno = 1481 (0x5c9), region = 76 }
   0xb   : > { %v3317_v0 = vld [vmem:[%s6579_s2 + $0x8] sm:$0xf]  ;;  %v3698_v1 = vld [vmem:[%s6579_s2 + $0x8] sm:$0x10]  ;;  %vm522_vm0 = vcmask 1043456   ;;  %vm523_vm1 = vcmask 1044480  }
   0xc   : > { %v3318_v2 = vor.u32 %v3698_v1, %v3317_v0  ;;  %s459_s19 = smul.u32 7, %s3304_s30  ;;  %v3961_v3 = vld [vmem:[%s6578_s1 + $0x8] sm:$0xff]  ;;  %v3859_v4 = vmov 65535   ;;  %v6596_v6 = vmov 0   ;;  %v3968_v7 = vld [vmem:[%s6578_s1] sm:$0xff]  ;;  %v6598_v18 = vmov 7  }
   0xd   : > { %v524_v5 = vsel %vm522_vm0, 4294967295, %v3859_v4  ;;  %3794 = vset.pattern.permute.xlu2 %v6596_v6  ;;  %3793 = vset.pattern.permute.xlu1 %v6596_v6  ;;  %v3697_v10 = vld [vmem:[%s6579_s2] sm:$0xff]  ;;  %v3705_v11 = vld [vmem:[%s6581_s4 + $0x34] sm:$0xf]  ;;  %v3355_v12 = vld [vmem:[%s6581_s4 + $0x44] sm:$0xf0] }
   0xe   : > { %v525_v8 = vsel %vm523_vm1, %v524_v5, 0  ;;  %p460_p3 = scmp.lt.s32.totalorder %s459_s19, 13  ;;  %792 = vperm.xlu2 %3794, %v3961_v3   ;;  %787 = vperm.xlu1 %3793, %v3968_v7   ;;  %v3704_v13 = vld [vmem:[%s6581_s4 + $0x2c] sm:$0xf]  ;;  %v3347_v14 = vld [vmem:[%s6581_s4 + $0x3c] sm:$0xf0]  ;;  %v3358_v21 = vor.u32 %v3705_v11, %v3355_v12 }
   0xf   : > { %v527_v9 = vand.u32 %v3318_v2, %v525_v8  ;;  %3802 = vset.pattern.permute.xlu0 %v6598_v18  ;;  %vm509_vm2 = vcmask 203776   ;;  %v3350_v22 = vor.u32 %v3704_v13, %v3347_v14  ;;  %v6600_v24 = vmov 1   ;;  %v3700_v35 = vld [vmem:[%s6581_s4 + $0xc] sm:$0xf]  ;;  %v3335_v36 = vld [vmem:[%s6581_s4 + $0x1c] sm:$0xf0] }
  0x10   : > { %s7144_s19 = smov (!%p460_p3, %s459_s19), 13  ;;  %v3863_v25 = vmov 5   ;;  %1247 = vperm.xlu0 %3802, %v3968_v7   ;;  %v6593_v26 = vmov 2   ;;  %v6592_v27 = vmov 6   ;;  %v6597_v33 = vmov 3   ;;  %v4060_v47 = vld [vmem:[%s6578_s1 + $0x10] sm:$0xff] }
  0x11   : > { %535 = vmatpush.bf16.msra.mxu0 %v527_v9  ;;  %3771 = vmatpush.bf16.msra.mxu2 %v527_v9  ;;  %s3309_s17 = sshll.u32 %s7144_s19, 3  ;;  %v6603_v34 = vmov 8   ;;  %v3699_v37 = vld [vmem:[%s6581_s4 + $0x4] sm:$0xf]  ;;  %v3338_v38 = vor.u32 %v3700_v35, %v3335_v36  ;;  %v3327_v39 = vld [vmem:[%s6581_s4 + $0x14] sm:$0xf0] }
  0x12   : > { %s3995_s23 = scalar_lea.vmem %s6577_s0, %s3309_s17  ;;  %v3330_v40 = vor.u32 %v3699_v37, %v3327_v39  ;;  %v3345_v41 = vld [vmem:[%s6581_s4 + $0x28] sm:$0xf]  ;;  %v3706_v42 = vld [vmem:[%s6581_s4 + $0x38] sm:$0xf0]  ;;  %v3325_v44 = vld [vmem:[%s6581_s4] sm:$0xf]  ;;  %s6426_s20 = scalar_lea.vmem %s6591_s14, %s3309_s17 }
  0x13   : > { %v479_v15 = vld [vmem:[%s3995_s23] sm:$0xff]  ;;  %v480_v16 = vld [vmem:[%s3995_s23 + $0x8] sm:$0xff]  ;;  %v481_v28 = vld [vmem:[%s3995_s23 + $0x10] sm:$0xff]  ;;  %v3346_v43 = vor.u32 %v3706_v42, %v3345_v41  ;;  %vm632_vm3 = vcmask 261120   ;;  %s3868_s16 = smov 64   ;;  %vm1528_vm8 = vcmask 523264  }
  0x14   : > { %v483_v17 = vld [vmem:[%s3995_s23 + $0x20] sm:$0xff]  ;;  %v486_v19 = vpack.c.bf16 %v480_v16, %v479_v15  ;;  %v484_v20 = vld [vmem:[%s3995_s23 + $0x28] sm:$0xff]  ;;  %v482_v29 = vld [vmem:[%s3995_s23 + $0x18] sm:$0xff] }
  0x15   : > { %536 = vmatpush.bf16.msra.mxu0 %v3697_v10  ;;  %3772 = vmatpush.bf16.msra.mxu2 %v3697_v10  ;;  %v488_v23 = vpack.c.bf16 %v484_v20, %v483_v17  ;;  %v485_v30 = vld [vmem:[%s3995_s23 + $0x30] sm:$0xff]  ;;  %v487_v31 = vpack.c.bf16 %v482_v29, %v481_v28  ;;  %v4068_v48 = vld [vmem:[%s6578_s1 + $0x18] sm:$0xff]  ;;  %v4083_v50 = vld [vmem:[%s6578_s1 + $0x28] sm:$0xff] }
  0x16   : > { %3795 = vset.pattern.permute.xlu2 %v6600_v24  ;;  %3798 = vset.pattern.permute.xlu1 %v3863_v25  ;;  %v489_v32 = vpack.c.bf16 %v485_v30, %v485_v30  ;;  %v3701_v45 = vld [vmem:[%s6581_s4 + $0x10] sm:$0xf0]  ;;  %v3845_v51 = vld [vmem:[%s6580_s3] ss:$0 sm:$0xff]  ;;  %v3361_v52 = vld [vmem:[%s6581_s4 + $0x38] sm:$0xf] }
  0x17   : > { %880 = vperm.xlu2 %3795, %v3968_v7   ;;  %1106 = vperm.xlu1 %3798, %v3968_v7   ;;  %v3326_v46 = vor.u32 %v3701_v45, %v3325_v44  ;;  %v3708_v53 = vld [vmem:[%s6581_s4 + $0x48] sm:$0xf0]  ;;  %v3341_v54 = vld [vmem:[%s6581_s4 + $0x10] sm:$0xf]  ;;  %v3703_v57 = vld [vmem:[%s6581_s4 + $0x20] sm:$0xf0] }
  0x18   : > { %3319 = vmatmul.msk.bf16.vlgmr.msra.gmra.mxu0 %vm509_vm2, %v486_v19  ;;  %3321 = vmatmul.msk.bf16.vlgmr.msra.gmra.mxu2 %vm509_vm2, %v488_v23  ;;  %v3362_v56 = vor.u32 %v3708_v53, %v3361_v52  ;;  %v3353_v58 = vld [vmem:[%s6581_s4 + $0x30] sm:$0xf]  ;;  %v3707_v59 = vld [vmem:[%s6581_s4 + $0x40] sm:$0xf0]  ;;  %v3342_v63 = vor.u32 %v3703_v57, %v3341_v54  ;;  %v3333_v10 = vld [vmem:[%s6581_s4 + $0x8] sm:$0xf] }
  0x19   : > { %735 = vmatpush.bf16.msrb.mxu0 %v3358_v21  ;;  %679 = vmatpush.bf16.msrb.mxu2 %v3350_v22  ;;  %v3354_v61 = vor.u32 %v3707_v59, %v3353_v58  ;;  %v3702_v11 = vld [vmem:[%s6581_s4 + $0x18] sm:$0xf0]  ;;  %v3710_v35 = vld [vmem:[%s6583_s6 + $0x8] sm:$0xff]  ;;  %v3709_v36 = vld [vmem:[%s6583_s6] sm:$0xff] }
  0x1a   : > { %3803 = vset.pattern.permute.xlu0 %v6600_v24  ;;  %651 = vmatpush.bf16.msra.mxu1 %v3346_v43  ;;  %v3334_v14 = vor.u32 %v3702_v11, %v3333_v10 }
  0x1b   : > { %884 = vperm.xlu0 %3803, %v3961_v3   ;;  %3773 = vmatpush.bf16.msra.mxu3 %v3346_v43 }
  0x1d   : > { %736 = vmatpush.bf16.msrb.mxu0 %v3338_v38  ;;  %680 = vmatpush.bf16.msrb.mxu2 %v3330_v40 }
  0x1e   : > { %652 = vmatpush.bf16.msra.mxu1 %v3326_v46 }
  0x1f   : > { %3796 = vset.pattern.permute.xlu2 %v6593_v26  ;;  %3800 = vset.pattern.permute.xlu1 %v6592_v27 }
  0x20   : > { %937 = vperm.xlu2 %3796, %v3968_v7   ;;  %1163 = vperm.xlu1 %3800, %v3968_v7  }
  0x21   : > { %3774 = vmatpush.bf16.msra.mxu3 %v3326_v46  ;;  %1374 = vmatpush.bf16.msra.mxu2 %v3710_v35 }
  0x22   : > { %763 = vmatpush.bf16.msrb.mxu1 %v3362_v56 }
  0x23   : > { %888 = vperm.xlu0 %3803, %v4060_v47  }
  0x25   : > { %707 = vmatpush.bf16.msrb.mxu3 %v3354_v61  ;;  %1375 = vmatpush.bf16.msra.mxu2 %v3709_v36 }
  0x26   : > { %764 = vmatpush.bf16.msrb.mxu1 %v3342_v63 }
  0x28   : > { %3320 = vmatmul.msk.bf16.gmra.mxu0 %vm509_vm2, %v487_v31  ;;  %3322 = vmatmul.msk.bf16.gmra.mxu2 %vm509_vm2, %v489_v32  ;;  %v4146_v31 = vld [vmem:[%s6578_s1 + $0x20] sm:$0xff] }
  0x29   : > { %3797 = vset.pattern.permute.xlu2 %v6597_v33  ;;  %3804 = vset.pattern.permute.xlu1 %v6598_v18 }
  0x2a   : > { %1022 = vperm.xlu2 %3797, %v3968_v7   ;;  %1251 = vperm.xlu1 %3804, %v3961_v3  }
  0x2b   : > { %3813 = vset.pattern.permute.xlu0 %v3863_v25  ;;  %708 = vmatpush.bf16.msrb.mxu3 %v3334_v14 }
  0x2c   : > { %1114 = vperm.xlu0 %3813, %v4060_v47  }
  0x32   : > { %3799 = vset.pattern.permute.xlu2 %v3863_v25  ;;  %3806 = vset.pattern.permute.xlu1 %v6603_v34 }
  0x33   : > { %1110 = vperm.xlu2 %3799, %v3961_v3   ;;  %1293 = vperm.xlu1 %3806, %v3961_v3  }
  0x34   : > { %3821 = vset.pattern.permute.xlu0 %v6596_v6 }
  0x35   : > { %812 = vperm.xlu0 %3821, %v4083_v50  }
  0x3b   : > { %3801 = vset.pattern.permute.xlu2 %v6592_v27  ;;  %3807 = vset.pattern.permute.xlu1 %v6596_v6 }
  0x3c   : > { %1167 = vperm.xlu2 %3801, %v3961_v3   ;;  %797 = vperm.xlu1 %3807, %v4060_v47  }
  0x3d   : > { %3822 = vset.pattern.permute.xlu0 %v6593_v26 }
  0x3e   : > { %941 = vperm.xlu0 %3822, %v3961_v3  }
  0x44   : > { %3805 = vset.pattern.permute.xlu2 %v6603_v34  ;;  %3809 = vset.pattern.permute.xlu1 %v6600_v24 }
  0x45   : > { %1289 = vperm.xlu2 %3805, %v3968_v7   ;;  %892 = vperm.xlu1 %3809, %v4068_v48  }
  0x46   : > { %949 = vperm.xlu0 %3822, %v4068_v48  }
  0x4d   : > { %3808 = vset.pattern.permute.xlu2 %v6596_v6  ;;  %3811 = vset.pattern.permute.xlu1 %v6597_v33 }
  0x4e   : > { %802 = vperm.xlu2 %3808, %v4068_v48   ;;  %1030 = vperm.xlu1 %3811, %v4060_v47  }
  0x4f   : > { %953 = vperm.xlu0 %3822, %v4146_v31  }
  0x56   : > { %3810 = vset.pattern.permute.xlu2 %v6593_v26  ;;  %3814 = vset.pattern.permute.xlu1 %v3863_v25 }
  0x57   : > { %945 = vperm.xlu2 %3810, %v4060_v47   ;;  %1118 = vperm.xlu1 %3814, %v4068_v48  }
  0x58   : > { %3825 = vset.pattern.permute.xlu0 %v6597_v33 }
  0x59   : > { %1026 = vperm.xlu0 %3825, %v3961_v3  }
  0x5f   : > { %3812 = vset.pattern.permute.xlu2 %v6597_v33  ;;  %3816 = vset.pattern.permute.xlu1 %v6598_v18 }
  0x60   : > { %1034 = vperm.xlu2 %3812, %v4068_v48   ;;  %1255 = vperm.xlu1 %3816, %v4060_v47  }
  0x61   : > { %1042 = vperm.xlu0 %3825, %v4083_v50  }
  0x68   : > { %3815 = vset.pattern.permute.xlu2 %v6592_v27  ;;  %3818 = vset.pattern.permute.xlu1 %v6603_v34  ;;  %v4190_v3 = vpop.permute.xlu2 %792 }
  0x69   : > { %1171 = vperm.xlu2 %3815, %v4060_v47   ;;  %1297 = vperm.xlu1 %3818, %v4060_v47   ;;  %6766 = vst [vmem:[#allocation2_spill] sm:$0xff] %v4190_v3 }
  0x6a   : > { %3828 = vset.pattern.permute.xlu0 %v6592_v27 }
  0x71   : > { %3817 = vset.pattern.permute.xlu2 %v6598_v18  ;;  %3823 = vset.pattern.permute.xlu1 %v6600_v24  ;;  %v4194_v37 = vpop.permute.xlu2 %880 }
  0x72   : > { %1259 = vperm.xlu2 %3817, %v4068_v48   ;;  %896 = vperm.xlu1 %3823, %v4146_v31  }
  0x7a   : > { %3819 = vset.pattern.permute.xlu2 %v6603_v34  ;;  %3826 = vset.pattern.permute.xlu1 %v6593_v26  ;;  %v4199_v38 = vpop.permute.xlu2 %937 }
  0x7b   : > { %1301 = vperm.xlu2 %3819, %v4068_v48   ;;  %957 = vperm.xlu1 %3826, %v4083_v50   ;;  %6767 = vst [vmem:[#allocation3_spill] sm:$0xff] %v4199_v38 }
  0x80   : > { %v4208_v41 = vpop.permute.xlu1 %787 }
  0x81   : > { %6770 = vst [vmem:[#allocation6_spill] sm:$0xff] %v4208_v41 }
  0x82   : > { %v4254_v59 = vpop.permute.xlu0 %1247 }
  0x83   : > { %3820 = vset.pattern.permute.xlu2 %v6596_v6  ;;  %3829 = vset.pattern.permute.xlu1 %v3863_v25  ;;  %6776 = vst [vmem:[#allocation12_spill] sm:$0xff] %v4254_v59 }
  0x84   : > { %807 = vperm.xlu2 %3820, %v4146_v31   ;;  %v4203_v39 = vpop.permute.xlu2 %1022 }
  0x85   : > { %6768 = vst [vmem:[#allocation4_spill] sm:$0xff] %v4203_v39 }
  0x89   : > { %v4212_v43 = vpop.permute.xlu1 %1106 }
  0x8a   : > { %6772 = vst [vmem:[#allocation8_spill] sm:$0xff] %v4212_v43 }
  0x8c   : > { %3824 = vset.pattern.permute.xlu2 %v6600_v24 }
  0x8d   : > { %900 = vperm.xlu2 %3824, %v4083_v50   ;;  %v4205_v40 = vpop.permute.xlu2 %1110 }
  0x8e   : > { %6769 = vst [vmem:[#allocation5_spill] sm:$0xff] %v4205_v40  ;;  %v6828_v40 = vmov 3  }
  0x95   : > { %v538_v49 = vpop.f32.mrf.mxu0  ;;  %3827 = vset.pattern.permute.xlu2 %v6597_v33 }
  0x96   : > { %v539_v60 = vadd.f32 %v3845_v51, %v538_v49  ;;  %1038 = vperm.xlu2 %3827, %v4146_v31   ;;  %v4210_v42 = vpop.permute.xlu2 %1167  ;;  %v4226_v49 = vpop.permute.xlu1 %1163 }
  0x97   : > { %6771 = vst [vmem:[#allocation7_spill] sm:$0xff] %v4210_v42 }
  0x98   : > { %v557_v1 = vmax.f32 %v539_v60, 0.0 }
  0x9b   : > { %v548_v55 = vpop.f32.mrf.mxu2 }
  0x9c   : > { %v549_v4 = vadd.f32 %v3845_v51, %v548_v55 }
  0x9d   : > { %v540_v62 = vpop.f32.mrf.mxu0 }
  0x9e   : > { %v541_v0 = vadd.f32 %v3845_v51, %v540_v62  ;;  %v561_v12 = vmax.f32 %v549_v4, 0.0  ;;  %3830 = vset.pattern.permute.xlu2 %v3863_v25  ;;  %v4250_v58 = vpop.permute.xlu1 %1251  ;;  %v4274_v4 = vpop.permute.xlu0 %884 }
  0x9f   : > { %v4220_v46 = vpop.permute.xlu2 %1289  ;;  %6775 = vst [vmem:[#allocation11_spill] sm:$0xff] %v4250_v58 }
  0xa0   : > { %v558_v2 = vmax.f32 %v541_v0, 0.0  ;;  %6773 = vst [vmem:[#allocation9_spill] sm:$0xff] %v4220_v46 }
  0xa1   : > { %6781 = vst [vmem:[#allocation17_spill] sm:$0xff] %v4274_v4 }
  0xa2   : > { %v4113_v5 = vpack.c.bf16 %v558_v2, %v557_v1 }
  0xa3   : > { %v550_v7 = vpop.f32.mrf.mxu2 }
  0xa4   : > { %v551_v8 = vadd.f32 %v3845_v51, %v550_v7  ;;  %3363 = vmatmul.msk.bf16.vlgmr.msra.gmra.mxu1 %vm632_vm3, %v4113_v5  ;;  %3367 = vmatmul.msk.bf16.vlgmr.msrb.gmra.mxu2 %vm632_vm3, %v4113_v5 }
  0xa5   : > { %3375 = vmatmul.msk.bf16.vlgmr.msrb.gmra.mxu0 %vm632_vm3, %v4113_v5  ;;  %v543_v9 = vpop.f32.mrf.mxu0 }
  0xa6   : > { %v562_v13 = vmax.f32 %v551_v8, 0.0  ;;  %v544_v16 = vadd.f32 %v3845_v51, %v543_v9  ;;  %v4272_v1 = vpop.permute.xlu1 %1293 }
  0xa7   : > { %6780 = vst [vmem:[#allocation16_spill] sm:$0xff] %v4272_v1 }
  0xa8   : > { %v4132_v15 = vpack.c.bf16 %v562_v13, %v561_v12  ;;  %v559_v20 = vmax.f32 %v544_v16, 0.0  ;;  %v4238_v53 = vpop.permute.xlu2 %802  ;;  %v4295_v13 = vpop.permute.xlu0 %888 }
  0xa9   : > { %6774 = vst [vmem:[#allocation10_spill] sm:$0xff] %v4238_v53 }
  0xaa   : > { %3365 = vmatmul.msk.bf16.vlgmr.msra.gmra.mxu3 %vm632_vm3, %v4132_v15 }
  0xab   : > { %v553_v17 = vpop.f32.mrf.mxu2 }
  0xac   : > { %v554_v22 = vadd.f32 %v3845_v51, %v553_v17  ;;  %v869_v17 = vlaneseq }
  0xad   : > { %v545_v19 = vpop.f32.mrf.mxu0 }
  0xae   : > { %v546_v21 = vadd.f32 %v3845_v51, %v545_v19  ;;  %v563_v29 = vmax.f32 %v554_v22, 0.0  ;;  %v4290_v11 = vpop.permute.xlu1 %797 }
  0xaf   : > { %6784 = vst [vmem:[#allocation20_spill] sm:$0xff] %v4290_v11 }
  0xb0   : > { %v560_v23 = vmax.f32 %v546_v21, 0.0  ;;  %v567_v32 = vpack.c.bf16 %v563_v29, %v563_v29  ;;  %v4318_v29 = vpop.permute.xlu0 %1114 }
  0xb1   : > { %v4260_v61 = vpop.permute.xlu2 %945  ;;  %6789 = vst [vmem:[#allocation25_spill] sm:$0xff] %v4318_v29 }
  0xb2   : > { %v565_v28 = vpack.c.bf16 %v560_v23, %v559_v20  ;;  %6778 = vst [vmem:[#allocation14_spill] sm:$0xff] %v4260_v61  ;;  %v4312_v23 = vshrl.u32 %v869_v17, 7 }
  0xb3   : > { %v555_v30 = vpop.f32.mrf.mxu2 }
  0xb4   : > { %3364 = vmatmul.msk.bf16.gmra.mxu1 %vm632_vm3, %v565_v28  ;;  %3368 = vmatmul.msk.bf16.gmra.mxu2 %vm632_vm3, %v565_v28  ;;  %vm1154_vm4 = vcmp.lt.s32.totalorder %v4312_v23, 2  ;;  %vm928_vm5 = vcmp.lt.s32.totalorder %v4312_v23, 6  ;;  %vm1013_vm6 = vcmp.lt.s32.totalorder %v4312_v23, 1  ;;  %vm871_vm7 = vcmp.lt.s32.totalorder %v4312_v23, 7 }
  0xb5   : > { %3376 = vmatmul.msk.bf16.gmra.mxu0 %vm632_vm3, %v565_v28 }
  0xb8   : > { %v4364_v33 = vpop.permute.xlu0 %812 }
  0xb9   : > { %6796 = vst [vmem:[#allocation32_spill] sm:$0xff] %v4364_v33 }
  0xba   : > { %3366 = vmatmul.msk.bf16.gmra.mxu3 %vm632_vm3, %v567_v32  ;;  %v4279_v7 = vpop.permute.xlu2 %1034 }
  0xbb   : > { %6782 = vst [vmem:[#allocation18_spill] sm:$0xff] %v4279_v7 }
  0xc3   : > { %v4302_v16 = vpop.permute.xlu2 %1171 }
  0xc4   : > { %3369 = vmatmul.msk.bf16.gmra.mxu2 %vm632_vm3, %v4132_v15  ;;  %3379 = vmatmul.msk.bf16.vlgmr.msrb.gmra.mxu1 %vm632_vm3, %v4113_v5  ;;  %6786 = vst [vmem:[#allocation22_spill] sm:$0xff] %v4302_v16  ;;  %v6812_v16 = vmov 8  }
  0xc5   : > { %3377 = vmatmul.msk.bf16.gmra.mxu0 %vm632_vm3, %v4132_v15 }
  0xca   : > { %3371 = vmatmul.msk.bf16.vlgmr.msrb.gmra.mxu3 %vm632_vm3, %v4113_v5 }
  0xcc   : > { %v4329_v36 = vpop.permute.xlu2 %1259 }
  0xcd   : > { %6791 = vst [vmem:[#allocation27_spill] sm:$0xff] %v4329_v36 }
  0xd4   : > { %3370 = vmatmul.msk.bf16.gmra.mxu2 %vm632_vm3, %v567_v32  ;;  %3380 = vmatmul.msk.bf16.gmra.mxu1 %vm632_vm3, %v565_v28 }
  0xd5   : > { %3378 = vmatmul.msk.bf16.gmra.mxu0 %vm632_vm3, %v567_v32  ;;  %v4370_v24 = vpop.permute.xlu2 %1301 }
  0xd6   : > { %6797 = vst [vmem:[#allocation33_spill] sm:$0xff] %v4370_v24 }
  0xda   : > { %3372 = vmatmul.msk.bf16.gmra.mxu3 %vm632_vm3, %v565_v28 }
  0xe4   : > { %3381 = vmatmul.msk.bf16.gmra.mxu1 %vm632_vm3, %v4132_v15  ;;  %3391 = vmatmul.msk.bf16.vlgmr.msra.gmra.mxu2 %vm632_vm3, %v4113_v5 }
  0xea   : > { %3373 = vmatmul.msk.bf16.gmra.mxu3 %vm632_vm3, %v4132_v15 }
  0xf4   : > { %3382 = vmatmul.msk.bf16.gmra.mxu1 %vm632_vm3, %v567_v32  ;;  %3392 = vmatmul.msk.bf16.gmra.mxu2 %vm632_vm3, %v565_v28  ;;  %v4314_v28 = vpop.permute.xlu1 %892 }
  0xf5   : > { %6787 = vst [vmem:[#allocation23_spill] sm:$0xff] %v4314_v28 }
  0xfa   : > { %3374 = vmatmul.msk.bf16.gmra.mxu3 %vm632_vm3, %v567_v32 }
  0xfc   : > { %v4359_v6 = vpop.permute.xlu1 %1030 }
  0xfd   : > { %6795 = vst [vmem:[#allocation31_spill] sm:$0xff] %v4359_v6 }
 0x104   : > { %3393 = vmatmul.msk.bf16.gmra.mxu2 %vm632_vm3, %v4132_v15 }
 0x114   : > { %3394 = vmatmul.msk.bf16.gmra.mxu2 %vm632_vm3, %v567_v32 }
 0x121   : > { %v4214_v44 = vpop.f32.mrf.mxu1 }
 0x122   : > { %v4216_v45 = vpop.f32.mrf.mxu0  ;;  %841 = vrot.lane.b32.xlu0 %v4214_v44, %s3868_s16 }
 0x123   : > { %1211 = vrot.lane.b32.xlu1 %v4216_v45, %s3868_s16  ;;  %v6595_v32 = vrot.slane %v4216_v45, 6 }
 0x127   : > { %v4224_v47 = vpop.f32.mrf.mxu2 }
 0x129   : > { %v4228_v51 = vpop.f32.mrf.mxu1 }
 0x12a   : > { %v4230_v52 = vpop.f32.mrf.mxu0  ;;  %843 = vrot.lane.b32.xlu0 %v4228_v51, %s3868_s16 }
 0x12b   : > { %1213 = vrot.lane.b32.xlu2 %v4230_v52, %s3868_s16  ;;  %985 = vrot.lane.b32.xlu1 %v4224_v47, %s3868_s16 }
 0x12d   : > { %v4240_v54 = vpop.f32.mrf.mxu3 }
 0x12f   : > { %v4242_v55 = vpop.f32.mrf.mxu2 }
 0x131   : > { %v4244_v56 = vpop.f32.mrf.mxu1 }
 0x132   : > { %v4246_v57 = vpop.f32.mrf.mxu0  ;;  %849 = vrot.lane.b32.xlu0 %v4240_v54, %s3868_s16 }
 0x133   : > { %987 = vrot.lane.b32.xlu2 %v4242_v55, %s3868_s16 }
 0x135   : > { %v4256_v60 = vpop.f32.mrf.mxu3 }
 0x136   : > { %6777 = vst [vmem:[#allocation13_spill] sm:$0xff] %v4256_v60  ;;  %851 = vrot.lane.b32.xlu1 %v4256_v60, %s3868_s16 }
 0x137   : > { %v4262_v62 = vpop.f32.mrf.mxu2 }
 0x139   : > { %v4264_v63 = vpop.f32.mrf.mxu1 }
 0x13a   : > { %v4266_v0 = vpop.f32.mrf.mxu0  ;;  %1215 = vrot.lane.b32.xlu0 %v4246_v57, %s3868_s16 }
 0x13b   : > { %6779 = vst [vmem:[#allocation15_spill] sm:$0xff] %v4266_v0  ;;  %845 = vrot.lane.b32.xlu2 %v4244_v56, %s3868_s16 }
 0x13d   : > { %v669_v2 = vpop.f32.mrf.mxu3 }
 0x13e   : > { %1122 = vperm.xlu1 %3829, %v4146_v31   ;;  %v820_v19 = vmul.f32 %v4208_v41, %v669_v2  ;;  %v4381_v41 = vpop.permute.xlu0 %941 }
 0x13f   : > { %v4277_v5 = vpop.f32.mrf.mxu2  ;;  %6800 = vst [vmem:[#allocation36_spill] sm:$0xff] %v4381_v41 }
 0x141   : > { %v4281_v8 = vpop.f32.mrf.mxu1 }
 0x142   : > { %6783 = vst [vmem:[#allocation19_spill] sm:$0xff] %v4281_v8  ;;  %v4283_v9 = vpop.f32.mrf.mxu0  ;;  %847 = vrot.lane.b32.xlu0 %v4264_v63, %s3868_s16 }
 0x143   : > { %989 = vrot.lane.b32.xlu2 %v4262_v62, %s3868_s16 }
 0x145   : > { %v671_v10 = vpop.f32.mrf.mxu3 }
 0x146   : > { %853 = vrot.lane.b32.xlu1 %v669_v2, %s3868_s16 }
 0x147   : > { %v4292_v12 = vpop.f32.mrf.mxu2  ;;  %3831 = vset.pattern.permute.xlu1 %v6592_v27 }
 0x149   : > { %v4297_v14 = vpop.f32.mrf.mxu1 }
 0x14a   : > { %6785 = vst [vmem:[#allocation21_spill] sm:$0xff] %v4297_v14  ;;  %v4299_v15 = vpop.f32.mrf.mxu0  ;;  %1175 = vperm.xlu0 %3828, %v4068_v48   ;;  %v922_v14 = vrot.slane %v4242_v55, 2  ;;  %v821_v55 = vmul.f32 %v4190_v3, %v4214_v44 }
 0x14b   : > { %1126 = vperm.xlu2 %3830, %v4083_v50  }
 0x14d   : > { %v710_v20 = vpop.f32.mrf.mxu3 }
 0x14e   : > { %v4306_v21 = vadd.f32 %v820_v19, %v710_v20  ;;  %991 = vrot.lane.b32.xlu1 %v4277_v5, %s3868_s16  ;;  %v6602_v19 = vrot.slane %v4224_v47, 2 }
 0x14f   : > { %v4310_v22 = vpop.f32.mrf.mxu2 }
 0x151   : > { %v4316_v48 = vpop.f32.mrf.mxu1 }
 0x152   : > { %6788 = vst [vmem:[#allocation24_spill] sm:$0xff] %v4316_v48  ;;  %v4320_v30 = vpop.f32.mrf.mxu0  ;;  %1179 = vperm.xlu0 %3828, %v4146_v31  }
 0x153   : > { %6790 = vst [vmem:[#allocation26_spill] sm:$0xff] %v4320_v30  ;;  %v6594_v35 = vrot.slane %v4320_v30, 6  ;;  %1217 = vrot.lane.b32.xlu2 %v4266_v0, %s3868_s16  ;;  %v6821_v0 = vmov 1  }
 0x154   : > { %3832 = vset.pattern.permute.xlu2 %v6598_v18 }
 0x155   : > { %v4337_v2 = vsel %vm1154_vm4, %v6594_v35, %v6595_v32  ;;  %v4339_v10 = vpop.f32.mrf.mxu3 }
 0x156   : > { %6792 = vst [vmem:[#allocation28_spill] sm:$0xff] %v4337_v2  ;;  %1219 = vrot.lane.b32.xlu1 %v4283_v9, %s3868_s16  ;;  %v4387_v2 = vpop.permute.xlu2 %807 }
 0x157   : > { %v4343_v17 = vpop.f32.mrf.mxu2  ;;  %6802 = vst [vmem:[#allocation38_spill] sm:$0xff] %v4387_v2 }
 0x158   : > { %6793 = vst [vmem:[#allocation29_spill] sm:$0xff] %v4343_v17  ;;  %v6601_v27 = vrot.slane %v4343_v17, 2 }
 0x159   : > { %v4348_v26 = vpop.f32.mrf.mxu1 }
 0x15a   : > { %6794 = vst [vmem:[#allocation30_spill] sm:$0xff] %v4348_v26  ;;  %v4356_v35 = vsel %vm928_vm5, %v6601_v27, %v6602_v19  ;;  %v755_v32 = vpop.f32.mrf.mxu0  ;;  %3835 = vset.pattern.permute.xlu0 %v6603_v34  ;;  %v4377_v19 = vpop.permute.xlu1 %1118 }
 0x15b   : > { %995 = vrot.lane.b32.xlu2 %v4310_v22, %s3868_s16  ;;  %1309 = vperm.xlu0 %3835, %v4083_v50   ;;  %6799 = vst [vmem:[#allocation35_spill] sm:$0xff] %v4377_v19 }
 0x15d   : > { %v4366_v18 = vpop.f32.mrf.mxu3 }
 0x15e   : > { %993 = vrot.lane.b32.xlu1 %v4292_v12, %s3868_s16 }
 0x15f   : > { %v699_v27 = vpop.f32.mrf.mxu2 }
 0x161   : > { %v4372_v32 = vpop.f32.mrf.mxu1 }
 0x162   : > { %6798 = vst [vmem:[#allocation34_spill] sm:$0xff] %v4372_v32 }
 0x163   : > { %1223 = vrot.lane.b32.xlu2 %v4320_v30, %s3868_s16  ;;  %3840 = vset.pattern.permute.xlu0 %v3863_v25  ;;  %v4395_v25 = vpop.permute.xlu0 %949  ;;  %v4398_v30 = vpop.permute.xlu1 %1255 }
 0x164   : > { %6804 = vst [vmem:[#allocation40_spill] sm:$0xff] %v4395_v25 }
 0x165   : > { %v4379_v34 = vpop.f32.mrf.mxu3  ;;  %6805 = vst [vmem:[#allocation41_spill] sm:$0xff] %v4398_v30 }
 0x166   : > { %1221 = vrot.lane.b32.xlu1 %v4299_v15, %s3868_s16 }
 0x167   : > { %v4385_v8 = vpop.f32.mrf.mxu2 }
 0x168   : > { %6801 = vst [vmem:[#allocation37_spill] sm:$0xff] %v4385_v8  ;;  %v4405_v8 = vld [vmem:[%s6578_s1 + $0x30] sm:$0xff] }
 0x169   : > { %v4389_v27 = vpop.f32.mrf.mxu1  ;;  %1130 = vperm.xlu0 %3840, %v4405_v8  }
 0x16a   : > { %6803 = vst [vmem:[#allocation39_spill] sm:$0xff] %v4389_v27  ;;  %v4409_v27 = vpop.permute.xlu2 %900 }
 0x16b   : > { %1072 = vrot.lane.b32.xlu2 %v4339_v10, %s3868_s16  ;;  %6808 = vst [vmem:[#allocation44_spill] sm:$0xff] %v4409_v27  ;;  %v4421_v36 = vpop.permute.xlu1 %1297 }
 0x16c   : > { %6811 = vst [vmem:[#allocation47_spill] sm:$0xff] %v4421_v36 }
 0x16d   : > { %v4393_v60 = vpop.f32.mrf.mxu3 }
 0x16e   : > { %1070 = vrot.lane.b32.xlu1 %v710_v20, %s3868_s16 }
 0x16f   : > { %v4400_v24 = vpop.f32.mrf.mxu2 }
 0x170   : > { %6806 = vst [vmem:[#allocation42_spill] sm:$0xff] %v4400_v24  ;;  %v4419_v24 = vpop.permute.xlu0 %953 }
 0x171   : > { %v4407_v32 = vpop.f32.mrf.mxu1  ;;  %6810 = vst [vmem:[#allocation46_spill] sm:$0xff] %v4419_v24  ;;  %3844 = vset.pattern.permute.xlu0 %v6812_v16 }
 0x172   : > { %6807 = vst [vmem:[#allocation43_spill] sm:$0xff] %v4407_v32  ;;  %v4426_v32 = vpop.permute.xlu2 %1038 }
 0x173   : > { %1263 = vperm.xlu2 %3832, %v4146_v31   ;;  %6813 = vst [vmem:[#allocation48_spill] sm:$0xff] %v4426_v32  ;;  %v4437_v36 = vpop.permute.xlu1 %896 }
 0x174   : > { %6817 = vst [vmem:[#allocation52_spill] sm:$0xff] %v4437_v36 }
 0x175   : > { %v4413_v26 = vpop.f32.mrf.mxu3 }
 0x176   : > { %997 = vrot.lane.b32.xlu1 %v4343_v17, %s3868_s16 }
 0x177   : > { %v4417_v20 = vpop.f32.mrf.mxu2 }
 0x178   : > { %6809 = vst [vmem:[#allocation45_spill] sm:$0xff] %v4417_v20  ;;  %v4435_v17 = vpop.permute.xlu0 %1026 }
 0x179   : > { %v783_v30 = vpop.f32.mrf.mxu1  ;;  %6816 = vst [vmem:[#allocation51_spill] sm:$0xff] %v4435_v17 }
 0x17b   : > { %1078 = vrot.lane.b32.xlu2 %v4393_v60, %s3868_s16 }
 0x17c   : > { %3834 = vset.pattern.permute.xlu2 %v6812_v16 }
 0x17d   : > { %v4429_v19 = vpop.f32.mrf.mxu3 }
 0x17e   : > { %6814 = vst [vmem:[#allocation49_spill] sm:$0xff] %v4429_v19  ;;  %1074 = vrot.lane.b32.xlu1 %v4366_v18, %s3868_s16 }
 0x17f   : > { %v4433_v20 = vpop.f32.mrf.mxu2 }
 0x180   : > { %6815 = vst [vmem:[#allocation50_spill] sm:$0xff] %v4433_v20  ;;  %v4445_v6 = vpop.permute.xlu0 %1042  ;;  %v4450_v20 = vpop.permute.xlu1 %957 }
 0x181   : > { %6820 = vst [vmem:[#allocation55_spill] sm:$0xff] %v4445_v6 }
 0x182   : > { %6822 = vst [vmem:[#allocation56_spill] sm:$0xff] %v4450_v20 }
 0x183   : > { %1305 = vperm.xlu2 %3834, %v4146_v31  }
 0x185   : > { %v4440_v30 = vpop.permute.xlu2 %1213  ;;  %v727_v29 = vpop.f32.mrf.mxu3 }
 0x186   : > { %6818 = vst [vmem:[#allocation53_spill] sm:$0xff] %v4440_v30  ;;  %1183 = vperm.xlu1 %3831, %v4083_v50   ;;  %v6824_v29 = vmov 7   ;;  %v6630_v48 = vrot.slane %v4440_v30, 7 }
 0x187   : > { %v4443_v7 = vpop.f32.mrf.mxu2 }
 0x188   : > { %6819 = vst [vmem:[#allocation54_spill] sm:$0xff] %v4443_v7 }
 0x18b   : > { %1080 = vrot.lane.b32.xlu2 %v4413_v26, %s3868_s16 }
 0x18c   : > { %3837 = vset.pattern.permute.xlu2 %v6821_v0 }
 0x18d   : > { %v4452_v1 = vpop.permute.xlu2 %987 }
 0x18e   : > { %1076 = vrot.lane.b32.xlu1 %v4379_v34, %s3868_s16  ;;  %v6638_v44 = vrot.slane %v4452_v1, 7 }
 0x18f   : > { %v4456_v31 = vpop.f32.mrf.mxu2  ;;  %3833 = vset.pattern.permute.xlu1 %v6824_v29 }
 0x190   : > { %6823 = vst [vmem:[#allocation57_spill] sm:$0xff] %v4456_v31 }
 0x193   : > { %904 = vperm.xlu2 %3837, %v4405_v8  }
 0x194   : > { %v4460_v7 = vpop.permute.xlu0 %841 }
 0x195   : > { %v4463_v6 = vpop.permute.xlu1 %1211  ;;  %v4465_v0 = vpop.permute.xlu2 %845 }
 0x196   : > { %6825 = vst [vmem:[#allocation58_spill] sm:$0xff] %v4463_v6  ;;  %v6629_v58 = vrot.slane %v4463_v6, 7  ;;  %1267 = vperm.xlu1 %3833, %v4083_v50   ;;  %v6832_v3 = vrot.slane %v4465_v0, 1 }
 0x197   : > { %v4470_v46 = vpop.f32.mrf.mxu2 }
 0x198   : > { %6826 = vst [vmem:[#allocation59_spill] sm:$0xff] %v4470_v46  ;;  %v4478_v31 = vsel %vm1013_vm6, %v6629_v58, %v6630_v48  ;;  %v6830_v48 = vrot.slane %v4224_v47, 2 }
 0x199   : > { %6827 = vst [vmem:[#allocation60_spill] sm:$0xff] %v4478_v31 }
 0x19a   : > { %v934_v42 = vsel %vm928_vm5, %v6830_v48, %v922_v14 }
 0x19b   : > { %3839 = vset.pattern.permute.xlu2 %v6828_v40  ;;  %v822_v40 = vmul.f32 %v4290_v11, %v4228_v51  ;;  %v6833_v51 = vrot.slane %v4460_v7, 1  ;;  %v6834_v11 = vmov 0  }
 0x19c   : > { %1046 = vperm.xlu2 %3839, %v4405_v8   ;;  %v844_v50 = vpop.permute.xlu0 %843 }
 0x19d   : > { %v4487_v6 = vpop.permute.xlu1 %985  ;;  %v863_v59 = vrot.slane %v844_v50, 1  ;;  %v4489_v58 = vpop.permute.xlu2 %989  ;;  %v6831_v50 = vrot.slane %v4262_v62, 2 }
 0x19e   : > { %6829 = vst [vmem:[#allocation61_spill] sm:$0xff] %v4489_v58  ;;  %1082 = vrot.lane.b32.xlu1 %v4429_v19, %s3868_s16  ;;  %v828_v19 = vadd.f32 %v821_v55, %v4339_v10  ;;  %v829_v58 = vadd.f32 %v822_v40, %v4366_v18 }
 0x19f   : > { %v933_v30 = vsel %vm928_vm5, %v922_v14, %v6831_v50  ;;  %v876_v47 = vsel %vm871_vm7, %v863_v59, %v6832_v3  ;;  %v877_v48 = vsel %vm871_vm7, %v6833_v51, %v863_v59  ;;  %v1394_v46 = vpop.f32.mrf.mxu2  ;;  %3836 = vset.pattern.permute.xlu1 %v6834_v11  ;;  %v6835_v3 = vrot.slane %v4487_v6, 7 }
 0x1a0   : > { %v908_v14 = vmul.f32 %v4274_v4, %v877_v48  ;;  %v909_v50 = vmul.f32 %v4295_v13, %v876_v47  ;;  %v965_v59 = vmul.f32 %v4381_v41, %v934_v42  ;;  %v966_v46 = vmul.f32 %v4260_v61, %v933_v30 }
 0x1a1   : > { %v1019_v31 = vsel %vm1013_vm6, %v6835_v3, %v6638_v44  ;;  %v6636_v42 = vrot.slane %v4310_v22, 2  ;;  %v6839_v44 = vrot.slane %v4262_v62, 2 }
 0x1a2   : > { %v915_v11 = vadd.f32 %v908_v14, %v828_v19  ;;  %v916_v51 = vadd.f32 %v909_v50, %v829_v58  ;;  %v1050_v10 = vmul.f32 %v4435_v17, %v1019_v31  ;;  %v925_v58 = vrot.slane %v4292_v12, 2 }
 0x1a4   : > { %v972_v18 = vadd.f32 %v965_v59, %v915_v11  ;;  %v4529_v55 = vadd.f32 %v966_v46, %v916_v51  ;;  %3842 = vset.pattern.permute.xlu2 %v6824_v29  ;;  %v850_v40 = vpop.permute.xlu0 %849  ;;  %v825_v29 = vmul.f32 %v4364_v33, %v4240_v54  ;;  %v930_v14 = vsel %vm928_vm5, %v925_v58, %v6636_v42 }
 0x1a5   : > { %1271 = vperm.xlu2 %3842, %v4405_v8   ;;  %v4533_v47 = vpop.permute.xlu2 %1126  ;;  %v866_v30 = vrot.slane %v850_v40, 1  ;;  %v969_v54 = vmul.f32 %v4450_v20, %v930_v14  ;;  %v6837_v51 = vmov 2   ;;  %v3457_v40 = vld [vmem:[%s6585_s8 + $0x78] sm:$0xf] }
 0x1a6   : > { %6836 = vst [vmem:[#allocation62_spill] sm:$0xff] %v4533_v47  ;;  %817 = vperm.xlu1 %3836, %v4405_v8   ;;  %v4536_v48 = vadd.f32 %v1050_v10, %v972_v18  ;;  %v832_v3 = vadd.f32 %v825_v29, %v4413_v26  ;;  %v3726_v10 = vld [vmem:[%s6585_s8 + $0x7c] sm:$0xf]  ;;  %v3459_v18 = vld [vmem:[%s6585_s8 + $0x8c] sm:$0xf0] }
 0x1a7   : > { %v3462_v26 = vor.u32 %v3726_v10, %v3459_v18  ;;  %v3728_v29 = vld [vmem:[%s6585_s8 + $0x88] sm:$0xf0]  ;;  %v823_v18 = vmul.f32 %v4238_v53, %v4244_v56  ;;  %v6841_v56 = vmov 6  }
 0x1a8   : > { %v4539_v19 = vpop.permute.xlu1 %851 }
 0x1a9   : > { %v6637_v31 = vrot.slane %v4539_v19, 1  ;;  %1573 = vmatpush.bf16.msra.mxu0 %v3462_v26  ;;  %v6840_v26 = vrot.slane %v4465_v0, 1 }
 0x1ab   : > { %v873_v50 = vsel %vm871_vm7, %v866_v30, %v6637_v31  ;;  %v824_v31 = vmul.f32 %v4387_v2, %v4264_v63  ;;  %v830_v63 = vadd.f32 %v823_v18, %v4379_v34  ;;  %v6842_v34 = vrot.slane %v4460_v7, 1  ;;  %v3721_v7 = vld [vmem:[%s6585_s8 + $0x54] sm:$0xf] }
 0x1ac   : > { %v912_v12 = vmul.f32 %v4409_v27, %v873_v50  ;;  %v4555_v59 = vpop.permute.xlu0 %1215  ;;  %v3458_v50 = vor.u32 %v3728_v29, %v3457_v40 }
 0x1ad   : > { %v4557_v46 = vpop.permute.xlu2 %1217  ;;  %v831_v62 = vadd.f32 %v824_v31, %v4393_v60 }
 0x1ae   : > { %v919_v11 = vadd.f32 %v912_v12, %v832_v3  ;;  %3838 = vset.pattern.permute.xlu1 %v6837_v51  ;;  %1545 = vmatpush.bf16.msra.mxu3 %v3458_v50  ;;  %v924_v12 = vrot.slane %v4277_v5, 2 }
 0x1af   : > { %961 = vperm.xlu1 %3838, %v4405_v8  }
 0x1b0   : > { %v4574_v14 = vpop.permute.xlu1 %1122  ;;  %v4576_v3 = vadd.f32 %v969_v54, %v919_v11  ;;  %v932_v54 = vsel %vm928_vm5, %v6839_v44, %v924_v12  ;;  %v931_v11 = vsel %vm928_vm5, %v924_v12, %v925_v58 }
 0x1b1   : > { %6838 = vst [vmem:[#allocation63_spill] sm:$0xff] %v4574_v14  ;;  %v967_v0 = vmul.f32 %v4395_v25, %v932_v54  ;;  %v964_v54 = vmul.f32 %v4199_v38, %v4356_v35 }
 0x1b4   : > { %v848_v51 = vpop.permute.xlu0 %847 }
 0x1b5   : > { %v4579_v42 = vpop.permute.xlu2 %995  ;;  %v865_v10 = vrot.slane %v848_v51, 1 }
 0x1b7   : > { %v874_v5 = vsel %vm871_vm7, %v865_v10, %v866_v30  ;;  %v875_v40 = vsel %vm871_vm7, %v6840_v26, %v865_v10  ;;  %3841 = vset.pattern.permute.xlu1 %v6841_v56  ;;  %v968_v30 = vmul.f32 %v4419_v24, %v931_v11  ;;  %v3439_v26 = vld [vmem:[%s6585_s8 + $0x64] sm:$0xf0]  ;;  %v3437_v56 = vld [vmem:[%s6585_s8 + $0x50] sm:$0xf]  ;;  %v6653_v24 = vrot.slane %v4299_v15, 6 }
 0x1b8   : > { %v910_v29 = vmul.f32 %v4314_v28, %v875_v40  ;;  %v911_v44 = vmul.f32 %v4437_v36, %v874_v5  ;;  %v4602_v50 = vpop.permute.xlu1 %853  ;;  %1187 = vperm.xlu1 %3841, %v4405_v8   ;;  %v3442_v40 = vor.u32 %v3721_v7, %v3439_v26  ;;  %v3417_v26 = vld [vmem:[%s6585_s8 + $0x28] sm:$0xf] }
 0x1b9   : > { %v6639_v58 = vrot.slane %v4602_v50, 1 }
 0x1ba   : > { %v917_v12 = vadd.f32 %v910_v29, %v830_v63  ;;  %v918_v51 = vadd.f32 %v911_v44, %v831_v62  ;;  %v3723_v63 = vld [vmem:[%s6585_s8 + $0x60] sm:$0xf0]  ;;  %1574 = vmatpush.bf16.msra.mxu0 %v3442_v40  ;;  %v3718_v40 = vld [vmem:[%s6585_s8 + $0x38] sm:$0xf0] }
 0x1bb   : > { %v878_v60 = vsel %vm871_vm7, %v6639_v58, %v6842_v34  ;;  %v3467_v34 = vld [vmem:[%s6585_s8 + $0x94] sm:$0xf0] }
 0x1bc   : > { %v907_v31 = vmul.f32 %v4194_v37, %v878_v60  ;;  %v4615_v10 = vadd.f32 %v967_v0, %v917_v12  ;;  %v4617_v18 = vadd.f32 %v968_v30, %v918_v51  ;;  %v3465_v12 = vld [vmem:[%s6585_s8 + $0x80] sm:$0xf] }
 0x1bd   : > { %v4619_v5 = vpop.permute.xlu2 %1223 }
 0x1be   : > { %v914_v11 = vadd.f32 %v907_v31, %v4306_v21  ;;  %v3438_v21 = vor.u32 %v3723_v63, %v3437_v56  ;;  %v3445_v56 = vld [vmem:[%s6585_s8 + $0x58] sm:$0xf] }
 0x1c0   : > { %v4636_v35 = vpop.permute.xlu1 %991  ;;  %3843 = vset.pattern.permute.xlu1 %v6812_v16  ;;  %v4639_v62 = vadd.f32 %v964_v54, %v914_v11  ;;  %1546 = vmatpush.bf16.msra.mxu3 %v3438_v21  ;;  %v3729_v16 = vld [vmem:[%s6585_s8 + $0x90] sm:$0xf0]  ;;  %v3716_v54 = vld [vmem:[%s6585_s8 + $0x2c] sm:$0xf]  ;;  %v3419_v11 = vld [vmem:[%s6585_s8 + $0x3c] sm:$0xf0]  ;;  %v3418_v21 = vor.u32 %v3718_v40, %v3417_v26 }
 0x1c1   : > { %1313 = vperm.xlu1 %3843, %v4405_v8   ;;  %v3466_v51 = vor.u32 %v3729_v16, %v3465_v12  ;;  %v3727_v8 = vld [vmem:[%s6585_s8 + $0x84] sm:$0xf]  ;;  %v3422_v7 = vor.u32 %v3716_v54, %v3419_v11  ;;  %v3724_v12 = vld [vmem:[%s6585_s8 + $0x68] sm:$0xf0]  ;;  %v3722_v16 = vld [vmem:[%s6585_s8 + $0x5c] sm:$0xf] }
 0x1c2   : > { %v3470_v60 = vor.u32 %v3727_v8, %v3467_v34  ;;  %v3446_v8 = vor.u32 %v3724_v12, %v3445_v56  ;;  %v3719_v54 = vld [vmem:[%s6585_s8 + $0x40] sm:$0xf0]  ;;  %v3717_v11 = vld [vmem:[%s6585_s8 + $0x34] sm:$0xf]  ;;  %v3399_v56 = vld [vmem:[%s6585_s8 + $0x14] sm:$0xf0] }
 0x1c3   : > { %1601 = vmatpush.bf16.msra.mxu1 %v3466_v51  ;;  %v3447_v51 = vld [vmem:[%s6585_s8 + $0x6c] sm:$0xf0]  ;;  %1575 = vmatpush.bf16.msra.mxu0 %v3422_v7  ;;  %v3427_v7 = vld [vmem:[%s6585_s8 + $0x44] sm:$0xf0]  ;;  %v3711_v40 = vld [vmem:[%s6585_s8 + $0x4] sm:$0xf] }
 0x1c4   : > { %1629 = vmatpush.bf16.msrb.mxu2 %v3470_v60  ;;  %v3450_v34 = vor.u32 %v3722_v16, %v3447_v51  ;;  %1547 = vmatpush.bf16.msra.mxu3 %v3418_v21  ;;  %v3425_v60 = vld [vmem:[%s6585_s8 + $0x30] sm:$0xf]  ;;  %v3430_v12 = vor.u32 %v3717_v11, %v3427_v7  ;;  %v3402_v16 = vor.u32 %v3711_v40, %v3399_v56  ;;  %v4710_v51 = vpop.permute.xlu0 %1175  ;;  %v3405_v11 = vld [vmem:[%s6585_s8 + $0x8] sm:$0xf]  ;;  %v3712_v56 = vld [vmem:[%s6585_s8 + $0xc] sm:$0xf] }
 0x1c5   : > { %v4642_v29 = vpop.permute.xlu2 %1072  ;;  %v3426_v26 = vor.u32 %v3719_v54, %v3425_v60  ;;  %6845 = vst [vmem:[#allocation66_spill] sm:$0xff] %v4710_v51  ;;  %v3397_v60 = vld [vmem:[%s6585_s8] sm:$0xf]  ;;  %v3713_v54 = vld [vmem:[%s6585_s8 + $0x10] sm:$0xf0]  ;;  %v6846_v20 = vrot.slane %v4636_v35, 7 }
 0x1c6   : > { %v3398_v40 = vor.u32 %v3713_v54, %v3397_v60 }
 0x1c7   : > { %1602 = vmatpush.bf16.msra.mxu1 %v3446_v8  ;;  %1576 = vmatpush.bf16.msra.mxu0 %v3402_v16 }
 0x1c8   : > { %v4644_v44 = vpop.permute.xlu1 %1219  ;;  %1630 = vmatpush.bf16.msrb.mxu2 %v3450_v34  ;;  %1548 = vmatpush.bf16.msra.mxu3 %v3398_v40  ;;  %v1092_v40 = vrot.slane %v4642_v29, 1 }
 0x1cb   : > { %1603 = vmatpush.bf16.msra.mxu1 %v3426_v26  ;;  %v3714_v26 = vld [vmem:[%s6585_s8 + $0x18] sm:$0xf0] }
 0x1cc   : > { %1631 = vmatpush.bf16.msrb.mxu2 %v3430_v12  ;;  %v3407_v12 = vld [vmem:[%s6585_s8 + $0x1c] sm:$0xf0]  ;;  %v3406_v58 = vor.u32 %v3714_v26, %v3405_v11 }
 0x1cd   : > { %v4646_v0 = vpop.permute.xlu2 %1263  ;;  %v3410_v8 = vor.u32 %v3712_v56, %v3407_v12  ;;  %v1148_v56 = vrot.slane %v4230_v52, 6  ;;  %v6654_v12 = vrot.slane %v4283_v9, 6 }
 0x1ce   : > { %6843 = vst [vmem:[#allocation64_spill] sm:$0xff] %v4646_v0 }
 0x1cf   : > { %1604 = vmatpush.bf16.msra.mxu1 %v3406_v58  ;;  %v1156_v26 = vsel %vm1154_vm4, %v6654_v12, %v6653_v24 }
 0x1d0   : > { %v4648_v30 = vpop.permute.xlu1 %993  ;;  %1632 = vmatpush.bf16.msrb.mxu2 %v3410_v8 }
 0x1d1   : > { %v6646_v34 = vrot.slane %v4648_v30, 7 }
 0x1d3   : > { %v1016_v16 = vsel %vm1013_vm6, %v6846_v20, %v6646_v34  ;;  %v4749_v20 = vpop.permute.xlu0 %1179 }
 0x1d4   : > { %v1053_v60 = vmul.f32 %v4426_v32, %v1016_v16  ;;  %6847 = vst [vmem:[#allocation67_spill] sm:$0xff] %v4749_v20  ;;  %v1194_v32 = vmul.f32 %v4749_v20, %v1156_v26 }
 0x1d5   : > { %v4662_v31 = vpop.permute.xlu2 %1078 }
 0x1d6   : > { %v6650_v27 = vrot.slane %v4662_v31, 1  ;;  %v1060_v16 = vadd.f32 %v1053_v60, %v4617_v18  ;;  %v6849_v18 = vrot.slane %v4487_v6, 7  ;;  %v1149_v6 = vrot.slane %v4246_v57, 6 }
 0x1d8   : > { %v4679_v63 = vpop.permute.xlu1 %1221 }
 0x1dd   : > { %v4708_v21 = vpop.permute.xlu2 %1305 }
 0x1de   : > { %6844 = vst [vmem:[#allocation65_spill] sm:$0xff] %v4708_v21 }
 0x1e0   : > { %v4723_v7 = vpop.permute.xlu1 %1070 }
 0x1e5   : > { %v4741_v54 = vpop.permute.xlu2 %1080 }
 0x1e6   : > { %v6649_v11 = vrot.slane %v4741_v54, 1 }
 0x1e8   : > { %v1099_v58 = vsel %vm871_vm7, %v6650_v27, %v6649_v11  ;;  %v4757_v8 = vpop.permute.xlu1 %997  ;;  %v6848_v11 = vrot.slane %v4723_v7, 1 }
 0x1e9   : > { %v1137_v34 = vmul.f32 %v4574_v14, %v1099_v58  ;;  %v6657_v52 = vrot.slane %v4757_v8, 7  ;;  %v6850_v14 = vrot.slane %v4216_v45, 6  ;;  %v6852_v45 = vld [vmem:[#allocation12_spill] sm:$0xff] }
 0x1ea   : > { %v1103_v29 = vsel %vm871_vm7, %v6848_v11, %v1092_v40 }
 0x1eb   : > { %v1144_v27 = vadd.f32 %v1137_v34, %v1060_v16  ;;  %v1020_v60 = vsel %vm1013_vm6, %v6657_v52, %v6849_v18  ;;  %v1160_v26 = vsel %vm1154_vm4, %v6850_v14, %v1148_v56  ;;  %v1133_v12 = vmul.f32 %v4212_v43, %v1103_v29  ;;  %v6851_v52 = vld [vmem:[#allocation60_spill] sm:$0xff]  ;;  %v6854_v29 = vld [vmem:[#allocation53_spill] sm:$0xff] }
 0x1ec   : > { %v1049_v58 = vmul.f32 %v4203_v39, %v1020_v60  ;;  %v1190_v11 = vmul.f32 %v4226_v49, %v1160_v26  ;;  %v1234_v18 = vrot.slane %v4555_v59, 7  ;;  %v1274_v36 = vmul.f32 %v6852_v45, %v6851_v52  ;;  %v6856_v59 = vld [vmem:[#allocation7_spill] sm:$0xff]  ;;  %v6857_v26 = vld [vmem:[#allocation21_spill] sm:$0xff] }
 0x1ed   : > { %v4785_v24 = vadd.f32 %v1194_v32, %v1144_v27  ;;  %v1159_v32 = vsel %vm1154_vm4, %v1148_v56, %v1149_v6 }
 0x1ee   : > { %v1056_v34 = vadd.f32 %v1049_v58, %v4639_v62  ;;  %v6853_v62 = vld [vmem:[#allocation5_spill] sm:$0xff]  ;;  %v6855_v58 = vrot.slane %v6854_v29, 7  ;;  %v6863_v29 = vld [vmem:[#allocation16_spill] sm:$0xff] }
 0x1f0   : > { %v1140_v16 = vadd.f32 %v1133_v12, %v1056_v34  ;;  %v1075_v20 = vpop.permute.xlu1 %1074  ;;  %v1243_v12 = vsel %vm1013_vm6, %v6855_v58, %v1234_v18  ;;  %v6858_v34 = vld [vmem:[#allocation9_spill] sm:$0xff] }
 0x1f1   : > { %v1093_v60 = vrot.slane %v1075_v20, 1  ;;  %v1191_v20 = vmul.f32 %v6856_v59, %v1159_v32  ;;  %v1316_v52 = vmul.f32 %v6858_v34, %v6857_v26  ;;  %v4816_v32 = vld [vmem:[%s6582_s5] ss:$0 sm:$0xff]  ;;  %v6866_v26 = vld [vmem:[#allocation15_spill] sm:$0xff] }
 0x1f2   : > { %v1197_v33 = vadd.f32 %v1190_v11, %v1140_v16  ;;  %v6859_v16 = vld [vmem:[#allocation11_spill] sm:$0xff] }
 0x1f3   : > { %v1102_v27 = vsel %vm871_vm7, %v1092_v40, %v1093_v60  ;;  %v1275_v56 = vmul.f32 %v6859_v16, %v1243_v12  ;;  %v6865_v12 = vrot.slane %v4636_v35, 7 }
 0x1f4   : > { %v1281_v14 = vadd.f32 %v1274_v36, %v1197_v33  ;;  %v1134_v57 = vmul.f32 %v6853_v62, %v1102_v27  ;;  %v6861_v33 = vld [vmem:[#allocation61_spill] sm:$0xff]  ;;  %v6862_v27 = vld [vmem:[#allocation24_spill] sm:$0xff] }
 0x1f5   : > { %v1008_v36 = vrot.slane %v6861_v33, 7  ;;  %v1317_v28 = vmul.f32 %v6863_v29, %v6862_v27  ;;  %v6868_v33 = vld [vmem:[#allocation18_spill] sm:$0xff] }
 0x1f6   : > { %v1141_v11 = vadd.f32 %v1134_v57, %v4536_v48  ;;  %v1323_v2 = vadd.f32 %v1316_v52, %v1281_v14  ;;  %v6864_v57 = vrot.slane %v4452_v1, 7  ;;  %v1150_v52 = vrot.slane %v6866_v26, 6 }
 0x1f7   : > { %v1235_v1 = vrot.slane %v4557_v46, 7 }
 0x1f8   : > { %v1198_v25 = vadd.f32 %v1191_v20, %v1141_v11  ;;  %v4808_v40 = vpop.permute.xlu1 %1183  ;;  %v1334_v48 = vadd.f32 %v4816_v32, %v1323_v2  ;;  %v1018_v14 = vsel %vm1013_vm6, %v6864_v57, %v1008_v36  ;;  %v1017_v20 = vsel %vm1013_vm6, %v1008_v36, %v6865_v12  ;;  %v6867_v11 = vld [vmem:[#allocation31_spill] sm:$0xff] }
 0x1f9   : > { %6860 = vst [vmem:[#allocation60_spill] sm:$0xff] %v4808_v40  ;;  %v1236_v57 = vrot.slane %v4644_v44, 7  ;;  %v1158_v36 = vsel %vm1154_vm4, %v1149_v6, %v1150_v52  ;;  %v6870_v44 = vld [vmem:[#allocation25_spill] sm:$0xff]  ;;  %v1242_v6 = vsel %vm1013_vm6, %v1234_v18, %v1235_v1 }
 0x1fa   : > { %v1282_v61 = vadd.f32 %v1275_v56, %v1198_v25  ;;  %v1051_v56 = vmul.f32 %v6867_v11, %v1018_v14  ;;  %v1341_v2 = vmax.f32 %v1334_v48, 0.0  ;;  %v6869_v14 = vrot.slane %v4662_v31, 1 }
 0x1fc   : > { %v1324_v58 = vadd.f32 %v1317_v28, %v1282_v61  ;;  %v1052_v61 = vmul.f32 %v6868_v33, %v1017_v20  ;;  %v6880_v33 = vld [vmem:[#allocation33_spill] sm:$0xff] }
 0x1fe   : > { %v1335_v25 = vadd.f32 %v4816_v32, %v1324_v58  ;;  %v1058_v58 = vadd.f32 %v1051_v56, %v4529_v55  ;;  %v1059_v46 = vadd.f32 %v1052_v61, %v4615_v10  ;;  %v6872_v55 = vrot.slane %v4283_v9, 6 }
 0x1ff   : > { %v1241_v10 = vsel %vm1013_vm6, %v1235_v1, %v1236_v57  ;;  %v6877_v1 = vld [vmem:[#allocation30_spill] sm:$0xff] }
 0x200   : > { %v1077_v28 = vpop.permute.xlu1 %1076  ;;  %v1342_v27 = vmax.f32 %v1335_v25, 0.0  ;;  %v6871_v25 = vld [vmem:[#allocation35_spill] sm:$0xff]  ;;  %v1157_v31 = vsel %vm1154_vm4, %v1150_v52, %v6872_v55 }
 0x201   : > { %v1094_v34 = vrot.slane %v1077_v28, 1  ;;  %v1193_v56 = vmul.f32 %v4710_v51, %v1157_v31  ;;  %v6874_v28 = vld [vmem:[#allocation41_spill] sm:$0xff]  ;;  %v1011_v31 = vrot.slane %v4579_v42, 7 }
 0x202   : > { %v4833_v35 = vpack.c.bf16 %v1342_v27, %v1341_v2  ;;  %v1276_v52 = vmul.f32 %v6874_v28, %v1242_v6  ;;  %v6875_v2 = vld [vmem:[#allocation27_spill] sm:$0xff] }
 0x203   : > { %v1100_v12 = vsel %vm871_vm7, %v1094_v34, %v6869_v14  ;;  %v1101_v48 = vsel %vm871_vm7, %v1093_v60, %v1094_v34  ;;  %v6873_v60 = vld [vmem:[#allocation22_spill] sm:$0xff]  ;;  %v1277_v27 = vmul.f32 %v6875_v2, %v1241_v10 }
 0x204   : > { %v1135_v20 = vmul.f32 %v6870_v44, %v1101_v48  ;;  %v1136_v26 = vmul.f32 %v6871_v25, %v1100_v12  ;;  %3475 = vmatmul.msk.bf16.vlgmr.msra.gmra.mxu3 %vm1528_vm8, %v4833_v35  ;;  %3479 = vmatmul.msk.bf16.vlgmr.msra.gmra.mxu0 %vm1528_vm8, %v4833_v35  ;;  %v1192_v34 = vmul.f32 %v6873_v60, %v1158_v36  ;;  %v6878_v48 = vld [vmem:[#allocation47_spill] sm:$0xff]  ;;  %v6879_v25 = vld [vmem:[#allocation34_spill] sm:$0xff] }
 0x205   : > { %3483 = vmatmul.msk.bf16.vlgmr.msra.gmra.mxu1 %vm1528_vm8, %v4833_v35  ;;  %3487 = vmatmul.msk.bf16.vlgmr.msrb.gmra.mxu2 %vm1528_vm8, %v4833_v35  ;;  %v1318_v55 = vmul.f32 %v6878_v48, %v6877_v1  ;;  %v1319_v44 = vmul.f32 %v6880_v33, %v6879_v25  ;;  %v6884_v1 = vld [vmem:[#allocation26_spill] sm:$0xff]  ;;  %v3567_v33 = vld [vmem:[%s6587_s10 + $0x94] sm:$0xf0] }
 0x206   : > { %v1142_v9 = vadd.f32 %v1135_v20, %v1058_v58  ;;  %v1143_v61 = vadd.f32 %v1136_v26, %v1059_v46  ;;  %v1237_v58 = vrot.slane %v4679_v63, 7  ;;  %v6881_v26 = vrot.slane %v4648_v30, 7  ;;  %v6926_v2 = vld [vmem:[#allocation2_spill] sm:$0xff] }
 0x207   : > { %v6883_v30 = vrot.slane %v4741_v54, 1 }
 0x208   : > { %v1199_v18 = vadd.f32 %v1192_v34, %v1142_v9  ;;  %v1200_v14 = vadd.f32 %v1193_v56, %v1143_v61  ;;  %v4867_v12 = vpop.permute.xlu1 %1267  ;;  %v1015_v6 = vsel %vm1013_vm6, %v6881_v26, %v1011_v31  ;;  %v1240_v25 = vsel %vm1013_vm6, %v1236_v57, %v1237_v58  ;;  %v6882_v56 = vld [vmem:[#allocation55_spill] sm:$0xff] }
 0x209   : > { %6876 = vst [vmem:[#allocation53_spill] sm:$0xff] %v4867_v12  ;;  %v1054_v9 = vmul.f32 %v6882_v56, %v1015_v6 }
 0x20a   : > { %v1283_v11 = vadd.f32 %v1276_v52, %v1199_v18  ;;  %v1284_v36 = vadd.f32 %v1277_v27, %v1200_v14 }
 0x20b   : > { %v1061_v18 = vadd.f32 %v1054_v9, %v4576_v3 }
 0x20c   : > { %v1325_v46 = vadd.f32 %v1318_v55, %v1283_v11  ;;  %v1326_v20 = vadd.f32 %v1319_v44, %v1284_v36  ;;  %v1278_v11 = vmul.f32 %v4646_v0, %v1240_v25  ;;  %v6885_v55 = vrot.slane %v6884_v1, 6 }
 0x20d   : > { %v6886_v36 = vrot.slane %v4299_v15, 6  ;;  %v4914_v15 = vpop.permute.xlu0 %1309 }
 0x20e   : > { %v1336_v10 = vadd.f32 %v4816_v32, %v1325_v46  ;;  %v1337_v34 = vadd.f32 %v4816_v32, %v1326_v20  ;;  %v1285_v14 = vadd.f32 %v1278_v11, %v4785_v24  ;;  %v1238_v46 = vrot.slane %v4619_v5, 7  ;;  %v6887_v24 = vld [vmem:[#allocation39_spill] sm:$0xff]  ;;  %v4911_v20 = vpop.permute.xlu2 %904  ;;  %6889 = vst [vmem:[#allocation11_spill] sm:$0xff] %v4914_v15  ;;  %v6892_v11 = vld [vmem:[#allocation13_spill] sm:$0xff] }
 0x20f   : > { %v1155_v54 = vsel %vm1154_vm4, %v6886_v36, %v6885_v55  ;;  %v1320_v3 = vmul.f32 %v4708_v21, %v6887_v24  ;;  %6888 = vst [vmem:[#allocation21_spill] sm:$0xff] %v4911_v20  ;;  %v6895_v24 = vrot.slane %v4539_v19, 1 }
 0x210   : > { %v1083_v61 = vpop.permute.xlu1 %1082  ;;  %v1343_v42 = vmax.f32 %v1336_v10, 0.0  ;;  %v1344_v52 = vmax.f32 %v1337_v34, 0.0  ;;  %v1195_v26 = vmul.f32 %v4808_v40, %v1155_v54  ;;  %v1239_v10 = vsel %vm1013_vm6, %v1237_v58, %v1238_v46  ;;  %v3473_v58 = vld [vmem:[%s6585_s8 + $0x88] sm:$0xf] }
 0x211   : > { %v1097_v63 = vrot.slane %v1083_v61, 1  ;;  %v1327_v5 = vadd.f32 %v1320_v3, %v1285_v14  ;;  %v1279_v34 = vmul.f32 %v4867_v12, %v1239_v10  ;;  %v6891_v61 = vld [vmem:[#allocation43_spill] sm:$0xff]  ;;  %v3730_v14 = vld [vmem:[%s6585_s8 + $0x98] sm:$0xf0]  ;;  %v6894_v54 = vrot.slane %v4602_v50, 1 }
 0x212   : > { %v4885_v44 = vpack.c.bf16 %v1344_v52, %v1343_v42  ;;  %v1321_v42 = vmul.f32 %v4914_v15, %v6891_v61  ;;  %v3474_v36 = vor.u32 %v3730_v14, %v3473_v58  ;;  %v6897_v50 = vld [vmem:[#allocation29_spill] sm:$0xff]  ;;  %v6899_v61 = vrot.slane %v4310_v22, 2  ;;  %v3720_v14 = vld [vmem:[%s6585_s8 + $0x48] sm:$0xf0] }
 0x213   : > { %v1098_v27 = vsel %vm871_vm7, %v6883_v30, %v1097_v63  ;;  %v872_v3 = vsel %vm871_vm7, %v6895_v24, %v6894_v54  ;;  %v6898_v19 = vrot.slane %v6897_v50, 2  ;;  %v6901_v22 = vrot.slane %v4757_v8, 7 }
 0x214   : > { %v1138_v57 = vmul.f32 %v4533_v47, %v1098_v27  ;;  %3476 = vmatmul.msk.bf16.gmra.mxu3 %vm1528_vm8, %v4885_v44  ;;  %3480 = vmatmul.msk.bf16.gmra.mxu0 %vm1528_vm8, %v4885_v44  ;;  %v913_v10 = vmul.f32 %v4911_v20, %v872_v3  ;;  %v3413_v3 = vld [vmem:[%s6585_s8 + $0x10] sm:$0xf] }
 0x215   : > { %3484 = vmatmul.msk.bf16.gmra.mxu1 %vm1528_vm8, %v4885_v44  ;;  %3488 = vmatmul.msk.bf16.gmra.mxu2 %vm1528_vm8, %v4885_v44  ;;  %v4977_v8 = vpop.permute.xlu0 %1130 }
 0x216   : > { %v1145_v6 = vadd.f32 %v1138_v57, %v1061_v18  ;;  %v1338_v18 = vadd.f32 %v4816_v32, %v1327_v5  ;;  %v6893_v57 = vld [vmem:[#allocation49_spill] sm:$0xff]  ;;  %v4947_v5 = vpop.permute.xlu2 %1046  ;;  %1657 = vmatpush.bf16.msrb.mxu3 %v3474_v36  ;;  %v6902_v36 = vrot.slane %v4723_v7, 1  ;;  %6903 = vst [vmem:[#allocation15_spill] sm:$0xff] %v4977_v8 }
 0x217   : > { %6896 = vst [vmem:[#allocation24_spill] sm:$0xff] %v4947_v5 }
 0x218   : > { %v1202_v25 = vadd.f32 %v1195_v26, %v1145_v6  ;;  %v4919_v9 = vpop.permute.xlu1 %817  ;;  %v3453_v26 = vld [vmem:[%s6585_s8 + $0x60] sm:$0xf]  ;;  %v3725_v6 = vld [vmem:[%s6585_s8 + $0x70] sm:$0xf0]  ;;  %v1104_v54 = vsel %vm871_vm7, %v1097_v63, %v6902_v36 }
 0x219   : > { %6890 = vst [vmem:[#allocation61_spill] sm:$0xff] %v4919_v9  ;;  %v826_v30 = vmul.f32 %v4919_v9, %v6892_v11  ;;  %v3454_v58 = vor.u32 %v3725_v6, %v3453_v26  ;;  %v3715_v26 = vld [vmem:[%s6585_s8 + $0x20] sm:$0xf0]  ;;  %v1139_v6 = vmul.f32 %v4977_v8, %v1104_v54 }
 0x21a   : > { %v1286_v52 = vadd.f32 %v1279_v34, %v1202_v25  ;;  %v1345_v34 = vmax.f32 %v1338_v18, 0.0  ;;  %v3433_v18 = vld [vmem:[%s6585_s8 + $0x38] sm:$0xf]  ;;  %v3414_v63 = vor.u32 %v3715_v26, %v3413_v3 }
 0x21b   : > { %v833_v1 = vadd.f32 %v826_v30, %v6893_v57  ;;  %v1014_v57 = vsel %vm1013_vm6, %v1011_v31, %v6901_v22  ;;  %1658 = vmatpush.bf16.msrb.mxu3 %v3454_v58  ;;  %v3434_v31 = vor.u32 %v3720_v14, %v3433_v18  ;;  %v6910_v14 = vld [vmem:[#allocation19_spill] sm:$0xff] }
 0x21c   : > { %v1328_v27 = vadd.f32 %v1321_v42, %v1286_v52  ;;  %v929_v42 = vsel %vm928_vm5, %v6899_v61, %v6898_v19  ;;  %v6907_v19 = vld [vmem:[#allocation58_spill] sm:$0xff] }
 0x21d   : > { %v920_v11 = vadd.f32 %v913_v10, %v833_v1  ;;  %v1055_v1 = vmul.f32 %v4947_v5, %v1014_v57  ;;  %v6908_v61 = vrot.slane %v6907_v19, 7 }
 0x21e   : > { %v1339_v55 = vadd.f32 %v4816_v32, %v1328_v27  ;;  %v4986_v10 = vpop.permute.xlu2 %1271 }
 0x21f   : > { %6904 = vst [vmem:[#allocation22_spill] sm:$0xff] %v4986_v10  ;;  %1659 = vmatpush.bf16.msrb.mxu3 %v3434_v31 }
 0x220   : > { %v1346_v25 = vmax.f32 %v1339_v55, 0.0 }
 0x221   : > { %v4955_v52 = vpop.permute.xlu1 %961 }
 0x222   : > { %6900 = vst [vmem:[#allocation16_spill] sm:$0xff] %v4955_v52  ;;  %v970_v30 = vmul.f32 %v4955_v52, %v929_v42  ;;  %v1398_v27 = vpack.c.bf16 %v1346_v25, %v1345_v34  ;;  %v6906_v25 = vld [vmem:[#allocation28_spill] sm:$0xff]  ;;  %v1245_v42 = vsel %vm1013_vm6, %v1238_v46, %v6908_v61 }
 0x223   : > { %1660 = vmatpush.bf16.msrb.mxu3 %v3414_v63 }
 0x224   : > { %v977_v55 = vadd.f32 %v970_v30, %v920_v11  ;;  %3477 = vmatmul.msk.bf16.gmra.mxu3 %vm1528_vm8, %v1398_v27  ;;  %3481 = vmatmul.msk.bf16.gmra.mxu0 %vm1528_vm8, %v1398_v27  ;;  %v1280_v11 = vmul.f32 %v4986_v10, %v1245_v42  ;;  %v6919_v10 = vld [vmem:[#allocation6_spill] sm:$0xff] }
 0x225   : > { %3485 = vmatmul.msk.bf16.gmra.mxu1 %vm1528_vm8, %v1398_v27  ;;  %3489 = vmatmul.msk.bf16.gmra.mxu2 %vm1528_vm8, %v1398_v27 }
 0x226   : > { %v1062_v24 = vadd.f32 %v1055_v1, %v977_v55  ;;  %v7133_v23 = vld [vmem:[#allocation22_spill] sm:$0xff] }
 0x228   : > { %v1146_v34 = vadd.f32 %v1139_v6, %v1062_v24 }
 0x22a   : > { %v4988_v7 = vpop.permute.xlu1 %1187 }
 0x22b   : > { %6905 = vst [vmem:[#allocation30_spill] sm:$0xff] %v4988_v7  ;;  %v1196_v50 = vmul.f32 %v4988_v7, %v6906_v25 }
 0x22d   : > { %v1203_v30 = vadd.f32 %v1196_v50, %v1146_v34 }
 0x22f   : > { %v1287_v58 = vadd.f32 %v1280_v11, %v1203_v30 }
 0x233   : > { %v4997_v18 = vpop.permute.xlu1 %1313 }
 0x234   : > { %6909 = vst [vmem:[#allocation34_spill] sm:$0xff] %v4997_v18  ;;  %v1322_v22 = vmul.f32 %v4997_v18, %v6910_v14 }
 0x236   : > { %v1329_v57 = vadd.f32 %v1322_v22, %v1287_v58 }
 0x238   : > { %v1340_v55 = vadd.f32 %v4816_v32, %v1329_v57 }
 0x23a   : > { %v1347_v1 = vmax.f32 %v1340_v55, 0.0 }
 0x23c   : > { %v1399_v36 = vpack.c.bf16 %v1347_v1, %v1347_v1 }
 0x23e   : > { %3478 = vmatmul.msk.bf16.gmra.mxu3 %vm1528_vm8, %v1399_v36  ;;  %3482 = vmatmul.msk.bf16.gmra.mxu0 %vm1528_vm8, %v1399_v36 }
 0x23f   : > { %3486 = vmatmul.msk.bf16.gmra.mxu1 %vm1528_vm8, %v1399_v36  ;;  %3490 = vmatmul.msk.bf16.gmra.mxu2 %vm1528_vm8, %v1399_v36 }
 0x24e   : > { %3491 = vmatmul.msk.bf16.vlgmr.msrb.gmra.mxu3 %vm1528_vm8, %v4833_v35 }
 0x25e   : > { %3492 = vmatmul.msk.bf16.gmra.mxu3 %vm1528_vm8, %v4885_v44 }
 0x26e   : > { %3493 = vmatmul.msk.bf16.gmra.mxu3 %vm1528_vm8, %v1398_v27 }
 0x27e   : > { %3494 = vmatmul.msk.bf16.gmra.mxu3 %vm1528_vm8, %v1399_v36 }
 0x281   : > { %v5012_v32 = vpop.f32.mrf.mxu0 }
 0x282   : > { %v1606_v46 = vpop.f32.mrf.mxu1  ;;  %1786 = vrot.lane.b32.xlu2 %v5012_v32, %s3868_s16 }
 0x287   : > { %v5016_v54 = vpop.f32.mrf.mxu3 }
 0x288   : > { %v5018_v31 = vpop.f32.mrf.mxu2 }
 0x289   : > { %v5020_v24 = vpop.f32.mrf.mxu0  ;;  %v1891_v27 = vrot.slane %v5018_v31, 6 }
 0x28a   : > { %v5022_v35 = vpop.f32.mrf.mxu1  ;;  %1788 = vrot.lane.b32.xlu0 %v5020_v24, %s3868_s16  ;;  %1842 = vrot.lane.b32.xlu2 %v1606_v46, %s3868_s16 }
 0x28f   : > { %v5028_v3 = vpop.f32.mrf.mxu3 }
 0x290   : > { %v1636_v44 = vpop.f32.mrf.mxu2 }
 0x291   : > { %v1892_v26 = vrot.slane %v1636_v44, 6  ;;  %v5042_v34 = vpop.f32.mrf.mxu0 }
 0x292   : > { %v5030_v6 = vpop.f32.mrf.mxu1  ;;  %1702 = vrot.lane.b32.xlu2 %v5016_v54, %s3868_s16  ;;  %1844 = vrot.lane.b32.xlu0 %v5022_v35, %s3868_s16 }
 0x293   : > { %v5038_v63 = vsel %vm1154_vm4, %v1891_v27, %v1892_v26  ;;  %1846 = vrot.lane.b32.xlu1 %v5030_v6, %s3868_s16 }
 0x297   : > { %v5048_v19 = vpop.f32.mrf.mxu3 }
 0x298   : > { %v1639_v25 = vpop.f32.mrf.mxu2 }
 0x299   : > { %v1893_v50 = vrot.slane %v1639_v25, 6  ;;  %v5054_v42 = vpop.f32.mrf.mxu0 }
 0x29a   : > { %1926 = vrot.lane.b32.xlu2 %v5018_v31, %s3868_s16  ;;  %1704 = vrot.lane.b32.xlu0 %v5028_v3, %s3868_s16  ;;  %v5056_v11 = vpop.f32.mrf.mxu1 }
 0x29b   : > { %v5052_v61 = vsel %vm1154_vm4, %v1892_v26, %v1893_v50 }
 0x29f   : > { %v5065_v22 = vpop.f32.mrf.mxu3 }
 0x2a0   : > { %v1641_v30 = vpop.f32.mrf.mxu2  ;;  %6911 = vst [vmem:[#allocation26_spill] sm:$0xff] %v5065_v22 }
 0x2a1   : > { %v1894_v58 = vrot.slane %v1641_v30, 6  ;;  %v5069_v55 = vpop.f32.mrf.mxu0 }
 0x2a2   : > { %1706 = vrot.lane.b32.xlu2 %v5048_v19, %s3868_s16  ;;  %1928 = vrot.lane.b32.xlu0 %v1636_v44, %s3868_s16  ;;  %6913 = vst [vmem:[#allocation43_spill] sm:$0xff] %v5069_v55  ;;  %v5072_v36 = vpop.f32.mrf.mxu1 }
 0x2a3   : > { %v5063_v14 = vsel %vm1154_vm4, %v1893_v50, %v1894_v58  ;;  %6914 = vst [vmem:[#allocation13_spill] sm:$0xff] %v5072_v36 }
 0x2a7   : > { %v5084_v44 = vpop.f32.mrf.mxu3 }
 0x2a8   : > { %v5067_v57 = vpop.f32.mrf.mxu2  ;;  %6916 = vst [vmem:[#allocation29_spill] sm:$0xff] %v5084_v44 }
 0x2a9   : > { %6912 = vst [vmem:[#allocation39_spill] sm:$0xff] %v5067_v57  ;;  %v6674_v1 = vrot.slane %v5067_v57, 6  ;;  %v5089_v26 = vpop.f32.mrf.mxu0 }
 0x2aa   : > { %1792 = vrot.lane.b32.xlu2 %v5054_v42, %s3868_s16  ;;  %1708 = vrot.lane.b32.xlu0 %v5065_v22, %s3868_s16  ;;  %v5091_v50 = vpop.f32.mrf.mxu1 }
 0x2ab   : > { %v5082_v31 = vsel %vm1154_vm4, %v1894_v58, %v6674_v1  ;;  %6917 = vst [vmem:[#allocation28_spill] sm:$0xff] %v5091_v50 }
 0x2ac   : > { %6915 = vst [vmem:[#allocation49_spill] sm:$0xff] %v5082_v31 }
 0x2af   : > { %v5093_v15 = vpop.f32.mrf.mxu3 }
 0x2b0   : > { %v5095_v21 = vpop.f32.mrf.mxu2 }
 0x2b1   : > { %6918 = vst [vmem:[#allocation58_spill] sm:$0xff] %v5095_v21 }
 0x2b2   : > { %1932 = vrot.lane.b32.xlu2 %v1641_v30, %s3868_s16  ;;  %1848 = vrot.lane.b32.xlu0 %v5056_v11, %s3868_s16  ;;  %v6694_v30 = vrot.slane %v5012_v32, 2 }
 0x2ba   : > { %1712 = vrot.lane.b32.xlu2 %v5093_v15, %s3868_s16  ;;  %1934 = vrot.lane.b32.xlu0 %v5067_v57, %s3868_s16 }
 0x2bb   : > { %v5101_v58 = vpop.f32.mrf.mxu0 }
 0x2bc   : > { %v6693_v1 = vrot.slane %v5101_v58, 2  ;;  %v5105_v12 = vpop.f32.mrf.mxu1  ;;  %1798 = vrot.lane.b32.xlu1 %v5101_v58, %s3868_s16 }
 0x2be   : > { %v5115_v0 = vsel %vm928_vm5, %v6693_v1, %v6694_v30 }
 0x2c1   : > { %v1565_v18 = vpop.f32.mrf.mxu3 }
 0x2c2   : > { %v1681_v7 = vmul.f32 %v1565_v18, %v6919_v10  ;;  %v5118_v40 = vpop.f32.mrf.mxu2  ;;  %1794 = vrot.lane.b32.xlu0 %v5069_v55, %s3868_s16  ;;  %1852 = vrot.lane.b32.xlu2 %v5091_v50, %s3868_s16 }
 0x2c3   : > { %6920 = vst [vmem:[#allocation19_spill] sm:$0xff] %v5118_v40  ;;  %v6695_v8 = vrot.slane %v5118_v40, 6  ;;  %v1595_v47 = vpop.f32.mrf.mxu0 }
 0x2c4   : > { %v5125_v5 = vadd.f32 %v1681_v7, %v1606_v46  ;;  %v1623_v56 = vpop.f32.mrf.mxu1  ;;  %1714 = vrot.lane.b32.xlu1 %v1565_v18, %s3868_s16 }
 0x2c5   : > { %v5132_v1 = vsel %vm1154_vm4, %v6695_v8, %v1891_v27  ;;  %v3557_v27 = vld [vmem:[%s6587_s10 + $0x78] sm:$0xf] }
 0x2c6   : > { %6921 = vst [vmem:[#allocation68_spill] sm:$0xff] %v5132_v1  ;;  %v3559_v1 = vld [vmem:[%s6587_s10 + $0x8c] sm:$0xf0] }
 0x2c9   : > { %v1567_v30 = vpop.f32.mrf.mxu3 }
 0x2ca   : > { %v1651_v10 = vpop.f32.mrf.mxu2  ;;  %1938 = vrot.lane.b32.xlu2 %v5118_v40, %s3868_s16  ;;  %1854 = vrot.lane.b32.xlu0 %v5105_v12, %s3868_s16 }
 0x2cc   : > { %1930 = vrot.lane.b32.xlu1 %v1639_v25, %s3868_s16  ;;  %v3748_v25 = vld [vmem:[%s6587_s10 + $0x88] sm:$0xf0] }
 0x2cd   : > { %v3558_v8 = vor.u32 %v3748_v25, %v3557_v27  ;;  %v3565_v27 = vld [vmem:[%s6587_s10 + $0x80] sm:$0xf]  ;;  %v3749_v25 = vld [vmem:[%s6587_s10 + $0x90] sm:$0xf0] }
 0x2cf   : > { %2162 = vmatpush.bf16.msrb.mxu0 %v3558_v8  ;;  %v3537_v8 = vld [vmem:[%s6587_s10 + $0x50] sm:$0xf] }
 0x2d1   : > { %v5139_v47 = vpop.f32.mrf.mxu3 }
 0x2d2   : > { %6922 = vst [vmem:[#allocation69_spill] sm:$0xff] %v5139_v47  ;;  %v3746_v47 = vld [vmem:[%s6587_s10 + $0x7c] sm:$0xf] }
 0x2d3   : > { %v3562_v57 = vor.u32 %v3746_v47, %v3559_v1  ;;  %v3566_v1 = vor.u32 %v3749_v25, %v3565_v27  ;;  %v3741_v27 = vld [vmem:[%s6587_s10 + $0x54] sm:$0xf] }
 0x2d4   : > { %1790 = vrot.lane.b32.xlu1 %v5042_v34, %s3868_s16 }
 0x2d5   : > { %2190 = vmatpush.bf16.msrb.mxu1 %v3562_v57  ;;  %v3743_v57 = vld [vmem:[%s6587_s10 + $0x60] sm:$0xf0]  ;;  %2218 = vmatpush.bf16.msra.mxu2 %v3566_v1 }
 0x2d9   : > { %v5143_v56 = vpop.f32.mrf.mxu3 }
 0x2dc   : > { %1850 = vrot.lane.b32.xlu1 %v5072_v36, %s3868_s16  ;;  %v5155_v18 = vpop.permute.xlu2 %1786 }
 0x2e1   : > { %v5147_v7 = vpop.f32.mrf.mxu3 }
 0x2e4   : > { %1710 = vrot.lane.b32.xlu1 %v5084_v44, %s3868_s16  ;;  %v5167_v30 = vpop.permute.xlu2 %1842  ;;  %v1682_v44 = vmul.f32 %v5016_v54, %v6926_v2  ;;  %v6711_v54 = vrot.slane %v5155_v18, 7 }
 0x2e9   : > { %v5151_v10 = vpop.f32.mrf.mxu3 }
 0x2ec   : > { %1796 = vrot.lane.b32.xlu1 %v5089_v26, %s3868_s16 }
 0x2f1   : > { %v5157_v46 = vpop.f32.mrf.mxu3 }
 0x2f2   : > { %6923 = vst [vmem:[#allocation70_spill] sm:$0xff] %v5157_v46 }
 0x2f4   : > { %1936 = vrot.lane.b32.xlu1 %v5095_v21, %s3868_s16  ;;  %v5179_v21 = vpop.permute.xlu2 %1702 }
 0x2f9   : > { %v5175_v40 = vpop.f32.mrf.mxu3 }
 0x2fa   : > { %6924 = vst [vmem:[#allocation71_spill] sm:$0xff] %v5175_v40  ;;  %v3747_v40 = vld [vmem:[%s6587_s10 + $0x84] sm:$0xf] }
 0x2fb   : > { %v3570_v36 = vor.u32 %v3747_v40, %v3567_v33  ;;  %v6706_v40 = vrot.slane %v5179_v21, 1  ;;  %v1689_v33 = vadd.f32 %v1682_v44, %v5022_v35 }
 0x2fc   : > { %v5177_v50 = vpop.permute.xlu0 %1788 }
 0x2fd   : > { %2246 = vmatpush.bf16.msra.mxu3 %v3570_v36 }
 0x301   : > { %v5181_v46 = vpop.f32.mrf.mxu3 }
 0x302   : > { %6925 = vst [vmem:[#allocation72_spill] sm:$0xff] %v5181_v46  ;;  %v3538_v46 = vor.u32 %v3743_v57, %v3537_v8  ;;  %v3539_v8 = vld [vmem:[%s6587_s10 + $0x64] sm:$0xf0]  ;;  %v5210_v57 = vpop.permute.xlu2 %1926 }
 0x303   : > { %v3542_v1 = vor.u32 %v3741_v27, %v3539_v8  ;;  %v6927_v27 = vrot.slane %v5012_v32, 2  ;;  %v6928_v8 = vrot.slane %v5177_v50, 7 }
 0x304   : > { %v5195_v47 = vpop.permute.xlu0 %1844  ;;  %2163 = vmatpush.bf16.msrb.mxu0 %v3538_v46  ;;  %v6704_v46 = vrot.slane %v5020_v24, 2 }
 0x305   : > { %v5214_v31 = vpop.permute.xlu1 %1846  ;;  %2191 = vmatpush.bf16.msrb.mxu1 %v3542_v1  ;;  %v1819_v2 = vsel %vm1013_vm6, %v6711_v54, %v6928_v8  ;;  %v6930_v55 = vrot.slane %v5195_v47, 1  ;;  %v1906_v54 = vmul.f32 %v5052_v61, %v6856_v59  ;;  %v3736_v61 = vld [vmem:[%s6587_s10 + $0x2c] sm:$0xf] }
 0x306   : > { %v1763_v36 = vsel %vm928_vm5, %v6927_v27, %v6704_v46  ;;  %v3545_v27 = vld [vmem:[%s6587_s10 + $0x58] sm:$0xf]  ;;  %v3744_v46 = vld [vmem:[%s6587_s10 + $0x68] sm:$0xf0] }
 0x307   : > { %v1766_v35 = vmul.f32 %v1763_v36, %v4381_v41  ;;  %v1822_v36 = vmul.f32 %v1819_v2, %v4435_v17  ;;  %v3742_v41 = vld [vmem:[%s6587_s10 + $0x5c] sm:$0xf] }
 0x309   : > { %v1679_v25 = vpop.f32.mrf.mxu3 }
 0x30a   : > { %v5264_v8 = vpop.permute.xlu2 %1706 }
 0x30c   : > { %v5216_v51 = vpop.permute.xlu0 %1704 }
 0x30d   : > { %v6705_v25 = vrot.slane %v5216_v51, 1 }
 0x30f   : > { %v1735_v1 = vsel %vm871_vm7, %v6706_v40, %v6705_v25  ;;  %v3546_v25 = vor.u32 %v3744_v46, %v3545_v27  ;;  %v3738_v40 = vld [vmem:[%s6587_s10 + $0x38] sm:$0xf0] }
 0x310   : > { %v1738_v32 = vmul.f32 %v1735_v1, %v4274_v4  ;;  %v3517_v1 = vld [vmem:[%s6587_s10 + $0x28] sm:$0xf]  ;;  %v6929_v4 = vrot.slane %v5214_v31, 1 }
 0x311   : > { %2219 = vmatpush.bf16.msra.mxu2 %v3546_v25  ;;  %v3518_v46 = vor.u32 %v3738_v40, %v3517_v1 }
 0x312   : > { %v1745_v44 = vadd.f32 %v1738_v32, %v1689_v33  ;;  %v1874_v22 = vsel %vm871_vm7, %v6930_v55, %v6929_v4  ;;  %v3547_v4 = vld [vmem:[%s6587_s10 + $0x6c] sm:$0xf0]  ;;  %v5277_v25 = vpop.permute.xlu2 %1792 }
 0x313   : > { %2164 = vmatpush.bf16.msrb.mxu0 %v3518_v46  ;;  %v1878_v32 = vmul.f32 %v1874_v22, %v6853_v62  ;;  %v3550_v2 = vor.u32 %v3742_v41, %v3547_v4  ;;  %v3737_v46 = vld [vmem:[%s6587_s10 + $0x34] sm:$0xf]  ;;  %v6931_v62 = vrot.slane %v5101_v58, 2 }
 0x314   : > { %v1773_v33 = vadd.f32 %v1766_v35, %v1745_v44  ;;  %v5279_v22 = vpop.permute.xlu0 %1928  ;;  %v3519_v35 = vld [vmem:[%s6587_s10 + $0x3c] sm:$0xf0]  ;;  %v3525_v44 = vld [vmem:[%s6587_s10 + $0x30] sm:$0xf] }
 0x315   : > { %2247 = vmatpush.bf16.msra.mxu3 %v3550_v2  ;;  %v3522_v41 = vor.u32 %v3736_v61, %v3519_v35  ;;  %v3731_v2 = vld [vmem:[%s6587_s10 + $0x4] sm:$0xf]  ;;  %v3499_v61 = vld [vmem:[%s6587_s10 + $0x14] sm:$0xf0] }
 0x316   : > { %v1829_v27 = vadd.f32 %v1822_v36, %v1773_v33  ;;  %v3527_v36 = vld [vmem:[%s6587_s10 + $0x44] sm:$0xf0] }
 0x317   : > { %2192 = vmatpush.bf16.msrb.mxu1 %v3522_v41  ;;  %v3530_v4 = vor.u32 %v3737_v46, %v3527_v36  ;;  %v3505_v41 = vld [vmem:[%s6587_s10 + $0x8] sm:$0xf]  ;;  %v3507_v36 = vld [vmem:[%s6587_s10 + $0x1c] sm:$0xf0] }
 0x318   : > { %v1885_v55 = vadd.f32 %v1878_v32, %v1829_v27  ;;  %v3497_v32 = vld [vmem:[%s6587_s10] sm:$0xf]  ;;  %v3733_v27 = vld [vmem:[%s6587_s10 + $0x10] sm:$0xf0] }
 0x319   : > { %2248 = vmatpush.bf16.msra.mxu3 %v3530_v4 }
 0x31a   : > { %v5275_v40 = vadd.f32 %v1906_v54, %v1885_v55  ;;  %v3739_v54 = vld [vmem:[%s6587_s10 + $0x40] sm:$0xf0]  ;;  %v5299_v33 = vpop.permute.xlu2 %1932  ;;  %v3498_v55 = vor.u32 %v3733_v27, %v3497_v32 }
 0x31b   : > { %v3526_v1 = vor.u32 %v3739_v54, %v3525_v44  ;;  %v3502_v44 = vor.u32 %v3731_v2, %v3499_v61  ;;  %v3734_v54 = vld [vmem:[%s6587_s10 + $0x18] sm:$0xf0]  ;;  %v6716_v2 = vrot.slane %v5089_v26, 2 }
 0x31c   : > { %2165 = vmatpush.bf16.msrb.mxu0 %v3498_v55  ;;  %v3506_v46 = vor.u32 %v3734_v54, %v3505_v41  ;;  %v5327_v32 = vpop.permute.xlu0 %1708  ;;  %v1687_v54 = vmul.f32 %v5093_v15, %v4919_v9 }
 0x31d   : > { %2220 = vmatpush.bf16.msra.mxu2 %v3526_v1  ;;  %v3732_v1 = vld [vmem:[%s6587_s10 + $0xc] sm:$0xf]  ;;  %2193 = vmatpush.bf16.msrb.mxu1 %v3502_v44  ;;  %v1758_v44 = vsel %vm928_vm5, %v6716_v2, %v6931_v62  ;;  %v6722_v62 = vrot.slane %v5167_v30, 1  ;;  %v6933_v2 = vrot.slane %v5155_v18, 7 }
 0x31e   : > { %v3510_v27 = vor.u32 %v3732_v1, %v3507_v36 }
 0x320   : > { %2249 = vmatpush.bf16.msra.mxu3 %v3510_v27  ;;  %v1694_v27 = vadd.f32 %v1687_v54, %v5105_v12  ;;  %v1771_v12 = vmul.f32 %v1758_v44, %v4955_v52 }
 0x321   : > { %2221 = vmatpush.bf16.msra.mxu2 %v3506_v46  ;;  %v6932_v46 = vrot.slane %v5179_v21, 1 }
 0x322   : > { %v5329_v4 = vpop.permute.xlu2 %1712 }
 0x323   : > { %v6717_v61 = vrot.slane %v5329_v4, 1 }
 0x324   : > { %v5351_v15 = vpop.permute.xlu0 %1848 }
 0x32e   : > { %v5313_v35 = vpop.permute.xlu1 %1798 }
 0x32f   : > { %v6718_v59 = vrot.slane %v5313_v35, 7 }
 0x331   : > { %v1820_v21 = vsel %vm1013_vm6, %v6718_v59, %v6933_v2  ;;  %v6935_v2 = vld [vmem:[#allocation20_spill] sm:$0xff] }
 0x332   : > { %v1683_v59 = vmul.f32 %v5028_v3, %v6935_v2 }
 0x336   : > { %v1715_v55 = vpop.permute.xlu1 %1714 }
 0x337   : > { %v1729_v41 = vrot.slane %v1715_v55, 1 }
 0x339   : > { %v1730_v1 = vsel %vm871_vm7, %v6717_v61, %v1729_v41  ;;  %v1736_v36 = vsel %vm871_vm7, %v1729_v41, %v6932_v46  ;;  %v1765_v41 = vmul.f32 %v5115_v0, %v4199_v38  ;;  %v1948_v61 = vrot.slane %v5279_v22, 7 }
 0x33a   : > { %v1737_v58 = vmul.f32 %v1736_v36, %v4194_v37  ;;  %v1743_v55 = vmul.f32 %v1730_v1, %v4911_v20  ;;  %v1725_v36 = vrot.slane %v5264_v8, 1  ;;  %v6934_v1 = vrot.slane %v5195_v47, 1 }
 0x33b   : > { %v1821_v0 = vmul.f32 %v1820_v21, %v4203_v39  ;;  %v1753_v8 = vrot.slane %v5042_v34, 2  ;;  %v6721_v47 = vrot.slane %v5210_v57, 7  ;;  %v6725_v21 = vrot.slane %v5327_v32, 1 }
 0x33c   : > { %v1744_v54 = vadd.f32 %v1737_v58, %v5125_v5  ;;  %v1750_v46 = vadd.f32 %v1743_v55, %v1694_v27  ;;  %v1875_v18 = vsel %vm871_vm7, %v6722_v62, %v6934_v1  ;;  %v6936_v27 = vrot.slane %v5216_v51, 1  ;;  %v6941_v62 = vld [vmem:[#allocation14_spill] sm:$0xff] }
 0x33d   : > { %v1877_v22 = vmul.f32 %v1875_v18, %v4212_v43  ;;  %v1959_v3 = vsel %vm1013_vm6, %v6721_v47, %v1948_v61  ;;  %v1905_v51 = vmul.f32 %v5038_v63, %v4226_v49  ;;  %v1684_v63 = vmul.f32 %v5048_v19, %v4238_v53 }
 0x33e   : > { %v1772_v44 = vadd.f32 %v1765_v41, %v1744_v54  ;;  %v1931_v52 = vpop.permute.xlu1 %1930  ;;  %v5377_v5 = vadd.f32 %v1771_v12, %v1750_v46  ;;  %v1734_v58 = vsel %vm871_vm7, %v6936_v27, %v1725_v36  ;;  %v5400_v54 = vld [vmem:[%s6584_s7] ss:$0 sm:$0xff]  ;;  %v6937_v46 = vrot.slane %v5020_v24, 2  ;;  %v5412_v27 = vpop.permute.xlu0 %1934 }
 0x33f   : > { %v1949_v55 = vrot.slane %v1931_v52, 7  ;;  %v1739_v41 = vmul.f32 %v1734_v58, %v4295_v13  ;;  %v5417_v24 = vld [vmem:[%s6586_s9] ss:$0 sm:$0xff]  ;;  %v1866_v19 = vrot.slane %v5351_v15, 1 }
 0x340   : > { %v1828_v1 = vadd.f32 %v1821_v0, %v1772_v44  ;;  %v1762_v18 = vsel %vm928_vm5, %v6937_v46, %v1753_v8  ;;  %v1976_v0 = vmul.f32 %v5147_v7, %v6863_v29  ;;  %v1961_v44 = vmul.f32 %v1959_v3, %v6852_v45  ;;  %v6938_v7 = vld [vmem:[#allocation9_spill] sm:$0xff] }
 0x341   : > { %v1958_v34 = vsel %vm1013_vm6, %v1948_v61, %v1949_v55  ;;  %v1690_v61 = vadd.f32 %v1683_v59, %v5030_v6  ;;  %v1733_v6 = vsel %vm871_vm7, %v1725_v36, %v6725_v21  ;;  %v6939_v46 = vld [vmem:[#allocation37_spill] sm:$0xff]  ;;  %v1767_v59 = vmul.f32 %v1762_v18, %v6941_v62  ;;  %v6942_v21 = vld [vmem:[#allocation23_spill] sm:$0xff] }
 0x342   : > { %v1884_v12 = vadd.f32 %v1877_v22, %v1828_v1  ;;  %v1962_v52 = vmul.f32 %v1958_v34, %v6859_v16  ;;  %v1975_v1 = vmul.f32 %v5143_v56, %v6938_v7  ;;  %v1378_v47 = vadd.f32 %v5400_v54, %v6939_v46 }
 0x343   : > { %v1746_v3 = vadd.f32 %v1739_v41, %v1690_v61  ;;  %v1691_v36 = vadd.f32 %v1684_v63, %v5056_v11  ;;  %v1740_v15 = vmul.f32 %v1733_v6, %v6942_v21  ;;  %v6943_v41 = vrot.slane %v5054_v42, 2  ;;  %v6947_v6 = vld [vmem:[#allocation31_spill] sm:$0xff] }
 0x344   : > { %v1912_v58 = vadd.f32 %v1905_v51, %v1884_v12  ;;  %v1969_v22 = vadd.f32 %v1962_v52, %v5275_v40  ;;  %v6940_v40 = vld [vmem:[#allocation42_spill] sm:$0xff] }
 0x345   : > { %v1380_v52 = vadd.f32 %v5400_v54, %v6940_v40  ;;  %v1761_v61 = vsel %vm928_vm5, %v1753_v8, %v6943_v41  ;;  %v1950_v8 = vrot.slane %v5299_v33, 7 }
 0x346   : > { %v1968_v34 = vadd.f32 %v1961_v44, %v1912_v58  ;;  %v1983_v51 = vadd.f32 %v1976_v0, %v1969_v22  ;;  %v1791_v12 = vpop.permute.xlu1 %1790  ;;  %v6730_v0 = vrot.slane %v5277_v25, 7  ;;  %v6944_v44 = vrot.slane %v5214_v31, 1  ;;  %v5466_v33 = vpop.permute.xlu0 %1794 }
 0x347   : > { %v1809_v20 = vrot.slane %v1791_v12, 7  ;;  %v6945_v58 = vrot.slane %v5177_v50, 7  ;;  %v1774_v22 = vadd.f32 %v1767_v59, %v1746_v3  ;;  %v6948_v12 = vld [vmem:[#allocation25_spill] sm:$0xff]  ;;  %v1907_v59 = vmul.f32 %v5063_v14, %v6873_v60 }
 0x348   : > { %v1994_v45 = vadd.f32 %v5417_v24, %v1983_v51  ;;  %v1982_v56 = vadd.f32 %v1975_v1, %v1968_v34  ;;  %v1873_v18 = vsel %vm871_vm7, %v6944_v44, %v1866_v19  ;;  %v1747_v51 = vadd.f32 %v1740_v15, %v1691_v36 }
 0x349   : > { %v1818_v11 = vsel %vm1013_vm6, %v6945_v58, %v1809_v20  ;;  %v1817_v31 = vsel %vm1013_vm6, %v1809_v20, %v6730_v0  ;;  %v1879_v50 = vmul.f32 %v1873_v18, %v6948_v12  ;;  %v1957_v3 = vsel %vm1013_vm6, %v1949_v55, %v1950_v8 }
 0x34a   : > { %v5449_v63 = vadd.f32 %v1994_v45, %v1380_v52  ;;  %v1823_v1 = vmul.f32 %v1818_v11, %v6947_v6  ;;  %v1993_v34 = vadd.f32 %v5417_v24, %v1982_v56  ;;  %v6950_v45 = vld [vmem:[#allocation40_spill] sm:$0xff]  ;;  %v6951_v56 = vld [vmem:[#allocation18_spill] sm:$0xff]  ;;  %v1977_v11 = vmul.f32 %v5151_v10, %v6878_v48  ;;  %v6963_v48 = vld [vmem:[#allocation13_spill] sm:$0xff] }
 0x34b   : > { %v1768_v52 = vmul.f32 %v1761_v61, %v6950_v45  ;;  %v1824_v41 = vmul.f32 %v1817_v31, %v6951_v56  ;;  %v1963_v61 = vmul.f32 %v1957_v3, %v6874_v28  ;;  %v6952_v31 = vld [vmem:[#allocation35_spill] sm:$0xff]  ;;  %v6956_v3 = vld [vmem:[#allocation66_spill] sm:$0xff] }
 0x34c   : > { %6946 = vst [vmem:[#allocation37_spill] sm:$0xff] %v5449_v63  ;;  %v1830_v46 = vadd.f32 %v1823_v1, %v1774_v22  ;;  %v5459_v40 = vadd.f32 %v1993_v34, %v1378_v47  ;;  %v6728_v15 = vmax.f32 %v5449_v63, 0.0  ;;  %v6729_v47 = vrot.slane %v5412_v27, 7 }
 0x34d   : > { %v1775_v58 = vadd.f32 %v1768_v52, %v1747_v51  ;;  %v6953_v51 = vld [vmem:[#allocation38_spill] sm:$0xff] }
 0x34e   : > { %6949 = vst [vmem:[#allocation42_spill] sm:$0xff] %v5459_v40  ;;  %v1886_v44 = vadd.f32 %v1879_v50, %v1830_v46  ;;  %v1851_v20 = vpop.permute.xlu1 %1850  ;;  %v6727_v36 = vmax.f32 %v5459_v40, 0.0  ;;  %v6954_v46 = vld [vmem:[#allocation26_spill] sm:$0xff]  ;;  %v1956_v10 = vsel %vm1013_vm6, %v1950_v8, %v6729_v47 }
 0x34f   : > { %v1867_v18 = vrot.slane %v1851_v20, 1  ;;  %v1831_v1 = vadd.f32 %v1824_v41, %v1775_v58  ;;  %v1685_v52 = vmul.f32 %v6954_v46, %v6953_v51  ;;  %v6957_v41 = vld [vmem:[#allocation49_spill] sm:$0xff]  ;;  %v1853_v20 = vpop.permute.xlu2 %1852  ;;  %v6959_v46 = vld [vmem:[#allocation32_spill] sm:$0xff] }
 0x350   : > { %v1914_v14 = vadd.f32 %v1907_v59, %v1886_v44  ;;  %v5477_v55 = vpack.c.bf16 %v6728_v15, %v6727_v36  ;;  %v1908_v44 = vmul.f32 %v6957_v41, %v6956_v3  ;;  %v6960_v36 = vld [vmem:[#allocation29_spill] sm:$0xff]  ;;  %v6961_v15 = vld [vmem:[#allocation27_spill] sm:$0xff] }
 0x351   : > { %v1872_v22 = vsel %vm871_vm7, %v1866_v19, %v1867_v18  ;;  %v6955_v19 = vld [vmem:[#allocation43_spill] sm:$0xff]  ;;  %v1686_v8 = vmul.f32 %v6960_v36, %v6959_v46  ;;  %v1964_v47 = vmul.f32 %v1956_v10, %v6961_v15  ;;  %v1692_v41 = vadd.f32 %v1685_v52, %v6963_v48  ;;  %v6965_v36 = vld [vmem:[#allocation33_spill] sm:$0xff] }
 0x352   : > { %v1970_v34 = vadd.f32 %v1963_v61, %v1914_v14  ;;  %v1880_v50 = vmul.f32 %v1872_v22, %v6952_v31  ;;  %3575 = vmatmul.msk.bf16.vlgmr.msrb.gmra.mxu0 %vm1528_vm8, %v5477_v55  ;;  %3579 = vmatmul.msk.bf16.vlgmr.msrb.gmra.mxu1 %vm1528_vm8, %v5477_v55  ;;  %v1755_v59 = vrot.slane %v6955_v19, 2  ;;  %v6958_v14 = vld [vmem:[#allocation45_spill] sm:$0xff]  ;;  %v6962_v31 = vld [vmem:[#allocation50_spill] sm:$0xff]  ;;  %v6971_v52 = vrot.slane %v5327_v32, 1  ;;  %v6977_v32 = vld [vmem:[#allocation56_spill] sm:$0xff] }
 0x353   : > { %3583 = vmatmul.msk.bf16.vlgmr.msra.gmra.mxu2 %vm1528_vm8, %v5477_v55  ;;  %3587 = vmatmul.msk.bf16.vlgmr.msra.gmra.mxu3 %vm1528_vm8, %v5477_v55  ;;  %v1383_v22 = vadd.f32 %v5400_v54, %v6958_v14  ;;  %v1385_v19 = vadd.f32 %v5400_v54, %v6962_v31  ;;  %v6966_v14 = vld [vmem:[#allocation70_spill] sm:$0xff] }
 0x354   : > { %v1984_v61 = vadd.f32 %v1977_v11, %v1970_v34  ;;  %v1887_v58 = vadd.f32 %v1880_v50, %v1831_v1  ;;  %v1811_v11 = vrot.slane %v5466_v33, 7  ;;  %v6964_v34 = vrot.slane %v5054_v42, 2  ;;  %v6969_v31 = vld [vmem:[#allocation58_spill] sm:$0xff] }
 0x355   : > { %v1978_v10 = vmul.f32 %v6966_v14, %v6965_v36  ;;  %v1896_v33 = vrot.slane %v6969_v31, 6  ;;  %v6974_v14 = vld [vmem:[#allocation44_spill] sm:$0xff]  ;;  %v1868_v31 = vrot.slane %v1853_v20, 1 }
 0x356   : > { %v1915_v0 = vadd.f32 %v1908_v44, %v1887_v58  ;;  %v1711_v40 = vpop.permute.xlu1 %1710  ;;  %v1995_v63 = vadd.f32 %v5417_v24, %v1984_v61  ;;  %v1760_v50 = vsel %vm928_vm5, %v6964_v34, %v1755_v59  ;;  %v1855_v44 = vpop.permute.xlu0 %1854  ;;  %v6968_v61 = vrot.slane %v5089_v26, 2 }
 0x357   : > { %v1727_v1 = vrot.slane %v1711_v40, 1  ;;  %v6970_v40 = vrot.slane %v5329_v4, 1  ;;  %v6976_v4 = vrot.slane %v5277_v25, 7  ;;  %v1869_v3 = vrot.slane %v1855_v44, 1  ;;  %v6980_v25 = vld [vmem:[#allocation48_spill] sm:$0xff] }
 0x358   : > { %v1971_v58 = vadd.f32 %v1964_v47, %v1915_v0  ;;  %v5517_v15 = vadd.f32 %v1995_v63, %v1383_v22  ;;  %v1759_v48 = vsel %vm928_vm5, %v1755_v59, %v6968_v61  ;;  %v6972_v0 = vld [vmem:[#allocation28_spill] sm:$0xff]  ;;  %v6975_v59 = vld [vmem:[#allocation46_spill] sm:$0xff]  ;;  %v1871_v20 = vsel %vm871_vm7, %v1867_v18, %v1868_v31 }
 0x359   : > { %v1731_v42 = vsel %vm871_vm7, %v1727_v1, %v6970_v40  ;;  %v1732_v34 = vsel %vm871_vm7, %v6971_v52, %v1727_v1  ;;  %v1693_v63 = vadd.f32 %v1686_v8, %v6972_v0  ;;  %v6973_v22 = vld [vmem:[#allocation52_spill] sm:$0xff]  ;;  %v1769_v61 = vmul.f32 %v1760_v50, %v6975_v59  ;;  %v1939_v50 = vpop.permute.xlu2 %1938 }
 0x35a   : > { %6967 = vst [vmem:[#allocation14_spill] sm:$0xff] %v5517_v15  ;;  %v1985_v47 = vadd.f32 %v1978_v10, %v1971_v58  ;;  %v1741_v26 = vmul.f32 %v1732_v34, %v6973_v22  ;;  %v1742_v36 = vmul.f32 %v1731_v42, %v6974_v14  ;;  %v1816_v40 = vsel %vm1013_vm6, %v6976_v4, %v1811_v11  ;;  %v6978_v10 = vld [vmem:[#allocation39_spill] sm:$0xff] }
 0x35b   : > { %v1770_v28 = vmul.f32 %v1759_v48, %v6977_v32  ;;  %v6979_v58 = vrot.slane %v6978_v10, 6  ;;  %v1825_v34 = vmul.f32 %v1816_v40, %v6980_v25  ;;  %v6736_v10 = vmax.f32 %v5517_v15, 0.0  ;;  %v6984_v40 = vld [vmem:[#allocation67_spill] sm:$0xff]  ;;  %v7005_v15 = vld [vmem:[#allocation72_spill] sm:$0xff] }
 0x35c   : > { %v1996_v1 = vadd.f32 %v5417_v24, %v1985_v47  ;;  %v1748_v52 = vadd.f32 %v1741_v26, %v1692_v41  ;;  %v1749_v8 = vadd.f32 %v1742_v36, %v1693_v63  ;;  %v1870_v41 = vsel %vm871_vm7, %v1868_v31, %v1869_v3  ;;  %v6983_v47 = vld [vmem:[#allocation63_spill] sm:$0xff] }
 0x35d   : > { %v1899_v42 = vsel %vm1154_vm4, %v6979_v58, %v1896_v33  ;;  %v6982_v36 = vrot.slane %v5167_v30, 1  ;;  %v1881_v26 = vmul.f32 %v1871_v20, %v6983_v47 }
 0x35e   : > { %v1776_v0 = vadd.f32 %v1769_v61, %v1748_v52  ;;  %v1797_v4 = vpop.permute.xlu1 %1796  ;;  %v1777_v44 = vadd.f32 %v1770_v28, %v1749_v8  ;;  %v5549_v59 = vadd.f32 %v1996_v1, %v1385_v19  ;;  %v1909_v28 = vmul.f32 %v1899_v42, %v6984_v40  ;;  %v6987_v8 = vld [vmem:[#allocation24_spill] sm:$0xff] }
 0x35f   : > { %v1876_v48 = vsel %vm871_vm7, %v1869_v3, %v6982_v36  ;;  %v1812_v63 = vrot.slane %v1797_v4, 7  ;;  %v1953_v19 = vrot.slane %v1939_v50, 7  ;;  %v6985_v1 = vrot.slane %v5313_v35, 7  ;;  %v6986_v3 = vld [vmem:[#allocation55_spill] sm:$0xff] }
 0x360   : > { %6981 = vst [vmem:[#allocation23_spill] sm:$0xff] %v5549_v59  ;;  %v1832_v18 = vadd.f32 %v1825_v34, %v1776_v0  ;;  %v6735_v61 = vmax.f32 %v5549_v59, 0.0  ;;  %v6988_v50 = vld [vmem:[#allocation19_spill] sm:$0xff]  ;;  %v6990_v0 = vld [vmem:[#allocation62_spill] sm:$0xff]  ;;  %v6998_v59 = vld [vmem:[#allocation69_spill] sm:$0xff] }
 0x361   : > { %v1814_v31 = vsel %vm1013_vm6, %v1812_v63, %v6985_v1  ;;  %v1815_v30 = vsel %vm1013_vm6, %v1811_v11, %v1812_v63  ;;  %v6989_v34 = vrot.slane %v6988_v50, 6  ;;  %v1882_v4 = vmul.f32 %v1870_v41, %v6990_v0  ;;  %v6991_v36 = vld [vmem:[#allocation15_spill] sm:$0xff]  ;;  %v6995_v41 = vld [vmem:[#allocation68_spill] sm:$0xff]  ;;  %v6996_v50 = vld [vmem:[#allocation22_spill] sm:$0xff] }
 0x362   : > { %v1826_v52 = vmul.f32 %v1815_v30, %v6986_v3  ;;  %v1827_v58 = vmul.f32 %v1814_v31, %v6987_v8  ;;  %v5573_v20 = vpack.c.bf16 %v6735_v61, %v6736_v10  ;;  %v1888_v42 = vadd.f32 %v1881_v26, %v1832_v18  ;;  %v6997_v10 = vld [vmem:[#allocation34_spill] sm:$0xff] }
 0x363   : > { %v1898_v35 = vsel %vm1154_vm4, %v1896_v33, %v6989_v34  ;;  %v1883_v11 = vmul.f32 %v1876_v48, %v6991_v36  ;;  %v6992_v26 = vrot.slane %v5210_v57, 7  ;;  %v6993_v33 = vld [vmem:[#allocation60_spill] sm:$0xff]  ;;  %v3573_v57 = vld [vmem:[%s6587_s10 + $0x88] sm:$0xf]  ;;  %v7016_v0 = vld [vmem:[#allocation6_spill] sm:$0xff] }
 0x364   : > { %v1833_v63 = vadd.f32 %v1826_v52, %v1777_v44  ;;  %v1834_v1 = vadd.f32 %v1827_v58, %v5377_v5  ;;  %3576 = vmatmul.msk.bf16.gmra.mxu0 %vm1528_vm8, %v5573_v20  ;;  %3580 = vmatmul.msk.bf16.gmra.mxu1 %vm1528_vm8, %v5573_v20  ;;  %v1916_v31 = vadd.f32 %v1909_v28, %v1888_v42  ;;  %v6994_v44 = vld [vmem:[#allocation30_spill] sm:$0xff]  ;;  %v3750_v42 = vld [vmem:[%s6587_s10 + $0x98] sm:$0xf0] }
 0x365   : > { %v1960_v18 = vsel %vm1013_vm6, %v1953_v19, %v6992_v26  ;;  %3584 = vmatmul.msk.bf16.gmra.mxu2 %vm1528_vm8, %v5573_v20  ;;  %3588 = vmatmul.msk.bf16.gmra.mxu3 %vm1528_vm8, %v5573_v20  ;;  %v1910_v5 = vmul.f32 %v1898_v35, %v6993_v33  ;;  %v1911_v48 = vmul.f32 %v6995_v41, %v6994_v44 }
 0x366   : > { %v1889_v30 = vadd.f32 %v1882_v4, %v1833_v63  ;;  %v1890_v52 = vadd.f32 %v1883_v11, %v1834_v1  ;;  %v1937_v58 = vpop.permute.xlu1 %1936  ;;  %v1967_v34 = vmul.f32 %v1960_v18, %v6996_v50  ;;  %v3574_v35 = vor.u32 %v3750_v42, %v3573_v57  ;;  %v3553_v1 = vld [vmem:[%s6587_s10 + $0x60] sm:$0xf]  ;;  %v3745_v18 = vld [vmem:[%s6587_s10 + $0x70] sm:$0xf0]  ;;  %v3740_v42 = vld [vmem:[%s6587_s10 + $0x48] sm:$0xf0] }
 0x367   : > { %v1952_v28 = vrot.slane %v1937_v58, 7  ;;  %v1981_v41 = vmul.f32 %v6998_v59, %v6997_v10  ;;  %v6999_v11 = vrot.slane %v5412_v27, 7  ;;  %v7001_v59 = vld [vmem:[#allocation53_spill] sm:$0xff]  ;;  %v7003_v27 = vld [vmem:[#allocation71_spill] sm:$0xff]  ;;  %v3513_v50 = vld [vmem:[%s6587_s10 + $0x10] sm:$0xf] }
 0x368   : > { %v1918_v26 = vadd.f32 %v1911_v48, %v1890_v52  ;;  %v1917_v61 = vadd.f32 %v1910_v5, %v1889_v30  ;;  %v7000_v48 = vld [vmem:[#allocation64_spill] sm:$0xff]  ;;  %2274 = vmatpush.bf16.msra.mxu0 %v3574_v35  ;;  %v7002_v58 = vld [vmem:[#allocation65_spill] sm:$0xff] }
 0x369   : > { %v1954_v4 = vsel %vm1013_vm6, %v1952_v28, %v1953_v19  ;;  %v1955_v63 = vsel %vm1013_vm6, %v6999_v11, %v1952_v28  ;;  %v3554_v19 = vor.u32 %v3745_v18, %v3553_v1  ;;  %v1979_v57 = vmul.f32 %v7003_v27, %v7002_v58  ;;  %v3533_v28 = vld [vmem:[%s6587_s10 + $0x38] sm:$0xf]  ;;  %v7004_v11 = vld [vmem:[#allocation11_spill] sm:$0xff] }
 0x36a   : > { %v1974_v5 = vadd.f32 %v1967_v34, %v1918_v26  ;;  %v1965_v30 = vmul.f32 %v1955_v63, %v7000_v48  ;;  %v1966_v52 = vmul.f32 %v1954_v4, %v7001_v59  ;;  %v1980_v34 = vmul.f32 %v7005_v15, %v7004_v11  ;;  %v7006_v4 = vld [vmem:[#allocation59_spill] sm:$0xff]  ;;  %v7007_v59 = vld [vmem:[#allocation54_spill] sm:$0xff] }
 0x36b   : > { %v1393_v35 = vadd.f32 %v5400_v54, %v7006_v4  ;;  %v3534_v58 = vor.u32 %v3740_v42, %v3533_v28  ;;  %v1388_v48 = vadd.f32 %v5400_v54, %v7007_v59  ;;  %v3735_v15 = vld [vmem:[%s6587_s10 + $0x20] sm:$0xf0] }
 0x36c   : > { %v1988_v26 = vadd.f32 %v1981_v41, %v1974_v5  ;;  %v1972_v63 = vadd.f32 %v1965_v30, %v1916_v31  ;;  %v1973_v10 = vadd.f32 %v1966_v52, %v1917_v61  ;;  %2275 = vmatpush.bf16.msra.mxu0 %v3554_v19  ;;  %v7008_v61 = vld [vmem:[#allocation57_spill] sm:$0xff]  ;;  %v3514_v59 = vor.u32 %v3735_v15, %v3513_v50  ;;  %v7012_v4 = vld [vmem:[#allocation2_spill] sm:$0xff] }
 0x36d   : > { %v1390_v31 = vadd.f32 %v5400_v54, %v7008_v61 }
 0x36e   : > { %v1986_v1 = vadd.f32 %v1979_v57, %v1972_v63  ;;  %v1987_v18 = vadd.f32 %v1980_v34, %v1973_v10  ;;  %v1999_v27 = vadd.f32 %v5417_v24, %v1988_v26 }
 0x370   : > { %v1997_v10 = vadd.f32 %v5417_v24, %v1986_v1  ;;  %v1998_v41 = vadd.f32 %v5417_v24, %v1987_v18  ;;  %v2006_v5 = vadd.f32 %v1999_v27, %v1393_v35  ;;  %2276 = vmatpush.bf16.msra.mxu0 %v3534_v58 }
 0x372   : > { %v5645_v30 = vadd.f32 %v1997_v10, %v1388_v48  ;;  %v5647_v52 = vadd.f32 %v1998_v41, %v1390_v31  ;;  %v5659_v24 = vmax.f32 %v2006_v5, 0.0 }
 0x374   : > { %7009 = vst [vmem:[#allocation31_spill] sm:$0xff] %v5645_v30  ;;  %v6740_v19 = vmax.f32 %v5645_v30, 0.0  ;;  %v6739_v57 = vmax.f32 %v5647_v52, 0.0  ;;  %2277 = vmatpush.bf16.msra.mxu0 %v3514_v59  ;;  %v2017_v50 = vpack.c.bf16 %v5659_v24, %v5659_v24 }
 0x375   : > { %7010 = vst [vmem:[#allocation25_spill] sm:$0xff] %v5647_v52 }
 0x376   : > { %v2016_v54 = vpack.c.bf16 %v6739_v57, %v6740_v19  ;;  %7011 = vst [vmem:[#allocation40_spill] sm:$0xff] %v5659_v24 }
 0x378   : > { %3577 = vmatmul.msk.bf16.gmra.mxu0 %vm1528_vm8, %v2016_v54  ;;  %3581 = vmatmul.msk.bf16.gmra.mxu1 %vm1528_vm8, %v2016_v54 }
 0x379   : > { %3585 = vmatmul.msk.bf16.gmra.mxu2 %vm1528_vm8, %v2016_v54  ;;  %3589 = vmatmul.msk.bf16.gmra.mxu3 %vm1528_vm8, %v2016_v54 }
 0x388   : > { %3578 = vmatmul.msk.bf16.gmra.mxu0 %vm1528_vm8, %v2017_v50  ;;  %3582 = vmatmul.msk.bf16.gmra.mxu1 %vm1528_vm8, %v2017_v50 }
 0x389   : > { %3586 = vmatmul.msk.bf16.gmra.mxu2 %vm1528_vm8, %v2017_v50  ;;  %3590 = vmatmul.msk.bf16.gmra.mxu3 %vm1528_vm8, %v2017_v50 }
 0x398   : > { %3591 = vmatmul.msk.bf16.vlgmr.msra.gmra.mxu0 %vm1528_vm8, %v5477_v55 }
 0x3a8   : > { %3592 = vmatmul.msk.bf16.gmra.mxu0 %vm1528_vm8, %v5573_v20 }
 0x3b8   : > { %3593 = vmatmul.msk.bf16.gmra.mxu0 %vm1528_vm8, %v2016_v54 }
 0x3c8   : > { %3594 = vmatmul.msk.bf16.gmra.mxu0 %vm1528_vm8, %v2017_v50 }
 0x3cf   : > { %v2167_v48 = vpop.f32.mrf.mxu0  ;;  %v5673_v58 = vpop.f32.mrf.mxu1 }
 0x3d0   : > { %2319 = vrot.lane.b32.xlu0 %v2167_v48, %s3868_s16  ;;  %v6742_v55 = vrot.slane %v5673_v58, 2  ;;  %v2299_v35 = vmul.f32 %v2167_v48, %v7012_v4 }
 0x3d6   : > { %v5676_v28 = vpop.f32.mrf.mxu2  ;;  %v5678_v42 = vpop.f32.mrf.mxu3 }
 0x3d7   : > { %v2169_v34 = vpop.f32.mrf.mxu0  ;;  %v2197_v26 = vpop.f32.mrf.mxu1  ;;  %v6741_v27 = vrot.slane %v5678_v42, 6 }
 0x3d8   : > { %v2369_v63 = vrot.slane %v2197_v26, 2  ;;  %2321 = vrot.lane.b32.xlu1 %v2169_v34, %s3868_s16  ;;  %2403 = vrot.lane.b32.xlu0 %v5673_v58, %s3868_s16  ;;  %v2300_v54 = vmul.f32 %v2169_v34, %v6935_v2 }
 0x3da   : > { %v5688_v20 = vsel %vm928_vm5, %v6742_v55, %v2369_v63 }
 0x3de   : > { %v2225_v1 = vpop.f32.mrf.mxu2  ;;  %v2253_v18 = vpop.f32.mrf.mxu3 }
 0x3df   : > { %v5692_v15 = vadd.f32 %v2299_v35, %v2225_v1  ;;  %v2509_v61 = vrot.slane %v2253_v18, 6 }
 0x3e0   : > { %2459 = vrot.lane.b32.xlu0 %v5676_v28, %s3868_s16  ;;  %2405 = vrot.lane.b32.xlu1 %v2197_v26, %s3868_s16 }
 0x3e1   : > { %v5701_v31 = vsel %vm1154_vm4, %v6741_v27, %v2509_v61  ;;  %v5703_v10 = vpop.f32.mrf.mxu1  ;;  %v2172_v5 = vpop.f32.mrf.mxu0 }
 0x3e2   : > { %v2370_v41 = vrot.slane %v5703_v10, 2  ;;  %v2301_v55 = vmul.f32 %v2172_v5, %v4238_v53 }
 0x3e4   : > { %v5708_v59 = vsel %vm928_vm5, %v2369_v63, %v2370_v41 }
 0x3e8   : > { %v2228_v50 = vpop.f32.mrf.mxu2  ;;  %v2256_v48 = vpop.f32.mrf.mxu3  ;;  %2543 = vrot.lane.b32.xlu0 %v5678_v42, %s3868_s16  ;;  %2461 = vrot.lane.b32.xlu1 %v2225_v1, %s3868_s16 }
 0x3e9   : > { %v5714_v26 = vadd.f32 %v2300_v54, %v2228_v50  ;;  %v2510_v35 = vrot.slane %v2256_v48, 6  ;;  %2463 = vrot.lane.b32.xlu2 %v2228_v50, %s3868_s16  ;;  %v2202_v57 = vpop.f32.mrf.mxu1  ;;  %v2174_v27 = vpop.f32.mrf.mxu0 }
 0x3ea   : > { %v2371_v19 = vrot.slane %v2202_v57, 2 }
 0x3eb   : > { %v5719_v63 = vsel %vm1154_vm4, %v2509_v61, %v2510_v35 }
 0x3ec   : > { %v5723_v34 = vsel %vm928_vm5, %v2370_v41, %v2371_v19 }
 0x3f0   : > { %v2230_v24 = vpop.f32.mrf.mxu2  ;;  %v2258_v1 = vpop.f32.mrf.mxu3  ;;  %2323 = vrot.lane.b32.xlu0 %v2172_v5, %s3868_s16  ;;  %2545 = vrot.lane.b32.xlu1 %v2253_v18, %s3868_s16 }
 0x3f1   : > { %v5728_v54 = vadd.f32 %v2301_v55, %v2230_v24  ;;  %v2511_v50 = vrot.slane %v2258_v1, 6  ;;  %2547 = vrot.lane.b32.xlu2 %v2256_v48, %s3868_s16  ;;  %v2302_v55 = vmul.f32 %v2174_v27, %v6953_v51 }
 0x3f3   : > { %v5733_v61 = vsel %vm1154_vm4, %v2510_v35, %v2511_v50 }
 0x3f5   : > { %v5735_v41 = vpop.f32.mrf.mxu0  ;;  %v2205_v52 = vpop.f32.mrf.mxu1 }
 0x3f6   : > { %v2372_v30 = vrot.slane %v2205_v52, 2 }
 0x3f8   : > { %v5739_v53 = vsel %vm928_vm5, %v2371_v19, %v2372_v30  ;;  %2325 = vrot.lane.b32.xlu1 %v2174_v27, %s3868_s16  ;;  %2409 = vrot.lane.b32.xlu0 %v2202_v57, %s3868_s16  ;;  %v2303_v57 = vmul.f32 %v5735_v41, %v6959_v46  ;;  %v7018_v46 = vrot.slane %v5673_v58, 2 }
 0x3fc   : > { %v2233_v18 = vpop.f32.mrf.mxu2  ;;  %v2261_v5 = vpop.f32.mrf.mxu3 }
 0x3fd   : > { %v5744_v48 = vadd.f32 %v2302_v55, %v2233_v18  ;;  %v2512_v35 = vrot.slane %v2261_v5, 6  ;;  %v2179_v2 = vpop.f32.mrf.mxu0  ;;  %v2207_v4 = vpop.f32.mrf.mxu1 }
 0x3fe   : > { %v2373_v11 = vrot.slane %v2207_v4, 2 }
 0x3ff   : > { %7013 = vst [vmem:[#allocation18_spill] sm:$0xff] %v5744_v48  ;;  %v5748_v44 = vsel %vm1154_vm4, %v2511_v50, %v2512_v35 }
 0x400   : > { %v5752_v19 = vsel %vm928_vm5, %v2372_v30, %v2373_v11  ;;  %2465 = vrot.lane.b32.xlu1 %v2230_v24, %s3868_s16  ;;  %2549 = vrot.lane.b32.xlu0 %v2258_v1, %s3868_s16 }
 0x401   : > { %7014 = vst [vmem:[#allocation26_spill] sm:$0xff] %v5752_v19 }
 0x404   : > { %v2235_v27 = vpop.f32.mrf.mxu2  ;;  %v5758_v55 = vpop.f32.mrf.mxu3 }
 0x405   : > { %v5760_v51 = vadd.f32 %v2303_v57, %v2235_v27  ;;  %v2513_v33 = vrot.slane %v5758_v55, 6  ;;  %v2182_v50 = vpop.f32.mrf.mxu0  ;;  %v2210_v36 = vpop.f32.mrf.mxu1 }
 0x406   : > { %v2298_v40 = vmul.f32 %v2182_v50, %v7016_v0  ;;  %v2374_v30 = vrot.slane %v2210_v36, 2  ;;  %2331 = vrot.lane.b32.xlu2 %v2182_v50, %s3868_s16 }
 0x407   : > { %7015 = vst [vmem:[#allocation43_spill] sm:$0xff] %v5760_v51  ;;  %v5767_v24 = vsel %vm1154_vm4, %v2512_v35, %v2513_v33  ;;  %v2304_v35 = vmul.f32 %v2179_v2, %v4919_v9 }
 0x408   : > { %7017 = vst [vmem:[#allocation49_spill] sm:$0xff] %v5767_v24  ;;  %v5770_v1 = vadd.f32 %v2298_v40, %v5676_v28  ;;  %v5774_v57 = vsel %vm928_vm5, %v2373_v11, %v2374_v30  ;;  %v5780_v8 = vsel %vm928_vm5, %v2374_v30, %v7018_v46  ;;  %2551 = vrot.lane.b32.xlu1 %v2261_v5, %s3868_s16  ;;  %v7020_v46 = vrot.slane %v5678_v42, 6  ;;  %v3766_v42 = vld [vmem:[%s6589_s12 + $0x7c] sm:$0xf] }
 0x409   : > { %2329 = vrot.lane.b32.xlu0 %v2179_v2, %s3868_s16 }
 0x40c   : > { %v2238_v50 = vpop.f32.mrf.mxu2  ;;  %v2266_v0 = vpop.f32.mrf.mxu3 }
 0x40d   : > { %v5785_v40 = vadd.f32 %v2304_v35, %v2238_v50  ;;  %v2514_v28 = vrot.slane %v2266_v0, 6  ;;  %v2184_v24 = vpop.f32.mrf.mxu0  ;;  %v2212_v11 = vpop.f32.mrf.mxu1 }
 0x40e   : > { %2415 = vrot.lane.b32.xlu2 %v2210_v36, %s3868_s16  ;;  %v3767_v11 = vld [vmem:[%s6589_s12 + $0x84] sm:$0xf] }
 0x40f   : > { %v5790_v58 = vsel %vm1154_vm4, %v2513_v33, %v2514_v28  ;;  %v5796_v5 = vsel %vm1154_vm4, %v2514_v28, %v7020_v46  ;;  %v3657_v33 = vld [vmem:[%s6589_s12 + $0x78] sm:$0xf] }
 0x410   : > { %7019 = vst [vmem:[#allocation45_spill] sm:$0xff] %v5790_v58  ;;  %2411 = vrot.lane.b32.xlu1 %v2205_v52, %s3868_s16  ;;  %v3768_v52 = vld [vmem:[%s6589_s12 + $0x88] sm:$0xf0]  ;;  %v3667_v46 = vld [vmem:[%s6589_s12 + $0x94] sm:$0xf0] }
 0x411   : > { %7021 = vst [vmem:[#allocation29_spill] sm:$0xff] %v5796_v5  ;;  %2469 = vrot.lane.b32.xlu0 %v2235_v27, %s3868_s16  ;;  %v3769_v27 = vld [vmem:[%s6589_s12 + $0x90] sm:$0xf0]  ;;  %v7025_v5 = vld [vmem:[#allocation17_spill] sm:$0xff] }
 0x414   : > { %v2240_v2 = vpop.f32.mrf.mxu2  ;;  %v2268_v30 = vpop.f32.mrf.mxu3 }
 0x415   : > { %v5800_v24 = vpop.f32.mrf.mxu0  ;;  %v3670_v2 = vor.u32 %v3767_v11, %v3667_v46  ;;  %v3647_v11 = vld [vmem:[%s6589_s12 + $0x6c] sm:$0xf0] }
 0x416   : > { %7022 = vst [vmem:[#allocation50_spill] sm:$0xff] %v5800_v24  ;;  %2407 = vrot.lane.b32.xlu2 %v5703_v10, %s3868_s16  ;;  %v3658_v10 = vor.u32 %v3768_v52, %v3657_v33  ;;  %v3637_v33 = vld [vmem:[%s6589_s12 + $0x50] sm:$0xf]  ;;  %v3761_v52 = vld [vmem:[%s6589_s12 + $0x54] sm:$0xf] }
 0x417   : > { %2856 = vmatpush.bf16.msrb.mxu0 %v3670_v2 }
 0x418   : > { %2471 = vrot.lane.b32.xlu1 %v2238_v50, %s3868_s16  ;;  %2772 = vmatpush.bf16.msra.mxu1 %v3658_v10  ;;  %v3639_v10 = vld [vmem:[%s6589_s12 + $0x64] sm:$0xf0] }
 0x419   : > { %2555 = vrot.lane.b32.xlu0 %v2266_v0, %s3868_s16  ;;  %v3659_v0 = vld [vmem:[%s6589_s12 + $0x8c] sm:$0xf0] }
 0x41a   : > { %v3662_v35 = vor.u32 %v3766_v42, %v3659_v0  ;;  %v3764_v0 = vld [vmem:[%s6589_s12 + $0x68] sm:$0xf0] }
 0x41c   : > { %2800 = vmatpush.bf16.msrb.mxu2 %v3662_v35 }
 0x41d   : > { %v5806_v36 = vpop.f32.mrf.mxu0 }
 0x41e   : > { %2467 = vrot.lane.b32.xlu2 %v2233_v18, %s3868_s16  ;;  %v3665_v18 = vld [vmem:[%s6589_s12 + $0x80] sm:$0xf] }
 0x41f   : > { %v3666_v50 = vor.u32 %v3769_v27, %v3665_v18  ;;  %v3642_v18 = vor.u32 %v3761_v52, %v3639_v10  ;;  %v3625_v10 = vld [vmem:[%s6589_s12 + $0x30] sm:$0xf] }
 0x421   : > { %2828 = vmatpush.bf16.msrb.mxu3 %v3666_v50  ;;  %2801 = vmatpush.bf16.msrb.mxu2 %v3642_v18  ;;  %v3762_v50 = vld [vmem:[%s6589_s12 + $0x5c] sm:$0xf] }
 0x422   : > { %v3650_v46 = vor.u32 %v3762_v50, %v3647_v11 }
 0x424   : > { %2857 = vmatpush.bf16.msrb.mxu0 %v3650_v46 }
 0x425   : > { %v5827_v28 = vpop.f32.mrf.mxu0 }
 0x426   : > { %2327 = vrot.lane.b32.xlu2 %v5735_v41, %s3868_s16  ;;  %v3763_v41 = vld [vmem:[%s6589_s12 + $0x60] sm:$0xf0] }
 0x427   : > { %v3638_v42 = vor.u32 %v3763_v41, %v3637_v33  ;;  %v3617_v33 = vld [vmem:[%s6589_s12 + $0x28] sm:$0xf]  ;;  %v3756_v41 = vld [vmem:[%s6589_s12 + $0x2c] sm:$0xf] }
 0x429   : > { %2773 = vmatpush.bf16.msra.mxu1 %v3638_v42  ;;  %v3619_v42 = vld [vmem:[%s6589_s12 + $0x3c] sm:$0xf0] }
 0x42a   : > { %v3622_v18 = vor.u32 %v3756_v41, %v3619_v42  ;;  %v3757_v41 = vld [vmem:[%s6589_s12 + $0x34] sm:$0xf] }
 0x42c   : > { %2802 = vmatpush.bf16.msrb.mxu2 %v3622_v18 }
 0x42d   : > { %v5837_v30 = vpop.f32.mrf.mxu0 }
 0x42e   : > { %2413 = vrot.lane.b32.xlu2 %v2207_v4, %s3868_s16  ;;  %v3645_v4 = vld [vmem:[%s6589_s12 + $0x58] sm:$0xf] }
 0x42f   : > { %v3646_v27 = vor.u32 %v3764_v0, %v3645_v4  ;;  %v3759_v4 = vld [vmem:[%s6589_s12 + $0x40] sm:$0xf0] }
 0x431   : > { %2829 = vmatpush.bf16.msrb.mxu3 %v3646_v27  ;;  %v3626_v27 = vor.u32 %v3759_v4, %v3625_v10  ;;  %v7026_v10 = vld [vmem:[#allocation36_spill] sm:$0xff] }
 0x432   : > { %v2383_v4 = vmul.f32 %v5688_v20, %v7026_v10  ;;  %v3597_v20 = vld [vmem:[%s6589_s12] sm:$0xf]  ;;  %v3605_v10 = vld [vmem:[%s6589_s12 + $0x8] sm:$0xf] }
 0x435   : > { %v5858_v35 = vpop.f32.mrf.mxu0  ;;  %2830 = vmatpush.bf16.msrb.mxu3 %v3626_v27 }
 0x436   : > { %2553 = vrot.lane.b32.xlu2 %v5758_v55, %s3868_s16  ;;  %v3758_v55 = vld [vmem:[%s6589_s12 + $0x38] sm:$0xf0] }
 0x437   : > { %v3618_v52 = vor.u32 %v3758_v55, %v3617_v33 }
 0x439   : > { %2774 = vmatpush.bf16.msra.mxu1 %v3618_v52  ;;  %v3627_v52 = vld [vmem:[%s6589_s12 + $0x44] sm:$0xf0] }
 0x43a   : > { %v3630_v42 = vor.u32 %v3757_v41, %v3627_v52 }
 0x43c   : > { %2858 = vmatpush.bf16.msrb.mxu0 %v3630_v42 }
 0x43d   : > { %v5868_v2 = vpop.f32.mrf.mxu0 }
 0x43e   : > { %7023 = vst [vmem:[#allocation13_spill] sm:$0xff] %v5868_v2 }
 0x442   : > { %v2320_v0 = vpop.permute.xlu0 %2319 }
 0x443   : > { %v2340_v33 = vrot.slane %v2320_v0, 1  ;;  %v5894_v24 = vpop.permute.xlu2 %2463 }
 0x445   : > { %v5888_v50 = vpop.f32.mrf.mxu0 }
 0x446   : > { %7024 = vst [vmem:[#allocation70_spill] sm:$0xff] %v5888_v50  ;;  %v2482_v50 = vrot.slane %v5894_v24, 1 }
 0x44a   : > { %v2322_v11 = vpop.permute.xlu1 %2321  ;;  %v5890_v46 = vpop.permute.xlu0 %2403 }
 0x44b   : > { %v2341_v55 = vrot.slane %v2322_v11, 1  ;;  %v2424_v11 = vrot.slane %v5890_v46, 7  ;;  %v5916_v52 = vpop.permute.xlu2 %2547 }
 0x44c   : > { %v2566_v32 = vrot.slane %v5916_v52, 7 }
 0x44d   : > { %v2352_v9 = vsel %vm871_vm7, %v2340_v33, %v2341_v55  ;;  %v2296_v2 = vpop.f32.mrf.mxu0 }
 0x44e   : > { %v2355_v58 = vmul.f32 %v2352_v9, %v7025_v5  ;;  %v3754_v5 = vld [vmem:[%s6589_s12 + $0x18] sm:$0xf0] }
 0x450   : > { %v2362_v0 = vadd.f32 %v2355_v58, %v5692_v15  ;;  %v3753_v15 = vld [vmem:[%s6589_s12 + $0x10] sm:$0xf0]  ;;  %v3751_v58 = vld [vmem:[%s6589_s12 + $0x4] sm:$0xf] }
 0x452   : > { %v5906_v2 = vpop.permute.xlu0 %2459  ;;  %v5908_v18 = vpop.permute.xlu1 %2405  ;;  %v2390_v9 = vadd.f32 %v2383_v4, %v2362_v0  ;;  %v3598_v0 = vor.u32 %v3753_v15, %v3597_v20  ;;  %v3752_v20 = vld [vmem:[%s6589_s12 + $0xc] sm:$0xf]  ;;  %v3607_v15 = vld [vmem:[%s6589_s12 + $0x1c] sm:$0xf0] }
 0x453   : > { %v6751_v27 = vrot.slane %v5908_v18, 7  ;;  %v3610_v47 = vor.u32 %v3752_v20, %v3607_v15 }
 0x454   : > { %2775 = vmatpush.bf16.msra.mxu1 %v3598_v0 }
 0x455   : > { %v2436_v41 = vsel %vm1013_vm6, %v2424_v11, %v6751_v27  ;;  %v3599_v27 = vld [vmem:[%s6589_s12 + $0x14] sm:$0xf0]  ;;  %2859 = vmatpush.bf16.msrb.mxu0 %v3610_v47 }
 0x456   : > { %v2439_v46 = vmul.f32 %v2436_v41, %v4435_v17  ;;  %v3602_v41 = vor.u32 %v3751_v58, %v3599_v27  ;;  %v3606_v17 = vor.u32 %v3754_v5, %v3605_v10  ;;  %v7027_v27 = vld [vmem:[#allocation5_spill] sm:$0xff]  ;;  %v7028_v10 = vld [vmem:[#allocation7_spill] sm:$0xff] }
 0x457   : > { %v2523_v58 = vmul.f32 %v5719_v63, %v7028_v10 }
 0x458   : > { %2803 = vmatpush.bf16.msrb.mxu2 %v3602_v41  ;;  %2831 = vmatpush.bf16.msrb.mxu3 %v3606_v17 }
 0x45a   : > { %v5928_v42 = vpop.permute.xlu0 %2543  ;;  %v2462_v4 = vpop.permute.xlu1 %2461 }
 0x45b   : > { %v2481_v3 = vrot.slane %v2462_v4, 1  ;;  %v2446_v4 = vadd.f32 %v2439_v46, %v2390_v9 }
 0x45d   : > { %v2491_v25 = vsel %vm871_vm7, %v2481_v3, %v2482_v50 }
 0x45e   : > { %v2495_v5 = vmul.f32 %v2491_v25, %v7027_v27 }
 0x460   : > { %v2502_v51 = vadd.f32 %v2495_v5, %v2446_v4  ;;  %v5953_v48 = vpop.permute.xlu2 %2331  ;;  %v2593_v5 = vmul.f32 %v5827_v28, %v6863_v29 }
 0x461   : > { %v2346_v0 = vrot.slane %v5953_v48, 1 }
 0x462   : > { %v2324_v20 = vpop.permute.xlu0 %2323  ;;  %v2546_v15 = vpop.permute.xlu1 %2545  ;;  %v2530_v19 = vadd.f32 %v2523_v58, %v2502_v51  ;;  %v2382_v51 = vmul.f32 %v5780_v8, %v4199_v38  ;;  %v6754_v8 = vrot.slane %v5906_v2, 1 }
 0x463   : > { %v2353_v17 = vsel %vm871_vm7, %v2346_v0, %v2340_v33  ;;  %v2342_v25 = vrot.slane %v2324_v20, 1  ;;  %v2565_v47 = vrot.slane %v2546_v15, 7  ;;  %v2384_v33 = vmul.f32 %v5708_v59, %v6941_v62 }
 0x464   : > { %v2354_v9 = vmul.f32 %v2353_v17, %v4194_v37  ;;  %v2492_v59 = vsel %vm871_vm7, %v6754_v8, %v2481_v3 }
 0x465   : > { %v2351_v63 = vsel %vm871_vm7, %v2341_v55, %v2342_v25  ;;  %v2575_v46 = vsel %vm1013_vm6, %v2565_v47, %v2566_v32 }
 0x466   : > { %v2361_v52 = vadd.f32 %v2354_v9, %v5770_v1  ;;  %v2356_v41 = vmul.f32 %v2351_v63, %v4295_v13  ;;  %v2579_v4 = vmul.f32 %v2575_v46, %v6859_v16 }
 0x468   : > { %v2363_v55 = vadd.f32 %v2356_v41, %v5714_v26  ;;  %v2586_v58 = vadd.f32 %v2579_v4, %v2530_v19  ;;  %v5976_v20 = vpop.permute.xlu2 %2415  ;;  %v2389_v15 = vadd.f32 %v2382_v51, %v2361_v52  ;;  %v6753_v51 = vrot.slane %v5928_v42, 7 }
 0x469   : > { %v6756_v1 = vrot.slane %v5976_v20, 7  ;;  %v2494_v41 = vmul.f32 %v2492_v59, %v4212_v43  ;;  %v7029_v59 = vld [vmem:[#allocation12_spill] sm:$0xff] }
 0x46a   : > { %v2600_v17 = vadd.f32 %v2593_v5, %v2586_v58  ;;  %v5980_v9 = vpop.permute.xlu1 %2325  ;;  %v5982_v63 = vpop.permute.xlu0 %2409  ;;  %v2391_v46 = vadd.f32 %v2384_v33, %v2363_v55  ;;  %v2522_v33 = vmul.f32 %v5701_v31, %v4226_v49  ;;  %v2385_v5 = vmul.f32 %v5723_v34, %v6950_v45 }
 0x46b   : > { %v2437_v26 = vsel %vm1013_vm6, %v6756_v1, %v2424_v11  ;;  %v2343_v19 = vrot.slane %v5980_v9, 1  ;;  %v2576_v11 = vsel %vm1013_vm6, %v6753_v51, %v2565_v47  ;;  %v2427_v47 = vrot.slane %v5982_v63, 7 }
 0x46c   : > { %v2438_v28 = vmul.f32 %v2437_v26, %v4203_v39  ;;  %v7030_v34 = vrot.slane %v5908_v18, 7  ;;  %v7079_v39 = vld [vmem:[#allocation61_spill] sm:$0xff] }
 0x46d   : > { %v2350_v52 = vsel %vm871_vm7, %v2342_v25, %v2343_v19 }
 0x46e   : > { %v2445_v4 = vadd.f32 %v2438_v28, %v2389_v15  ;;  %v2357_v3 = vmul.f32 %v2350_v52, %v6942_v21  ;;  %v6013_v15 = vld [vmem:[%s6588_s11] ss:$0 sm:$0xff]  ;;  %v2578_v28 = vmul.f32 %v2576_v11, %v7029_v59 }
 0x470   : > { %v2501_v55 = vadd.f32 %v2494_v41, %v2445_v4  ;;  %v2364_v58 = vadd.f32 %v2357_v3, %v5728_v54  ;;  %v2408_v25 = vpop.permute.xlu2 %2407  ;;  %v2592_v3 = vmul.f32 %v5806_v36, %v6938_v7  ;;  %v7045_v7 = vld [vmem:[#allocation63_spill] sm:$0xff] }
 0x471   : > { %v2426_v26 = vrot.slane %v2408_v25, 7 }
 0x472   : > { %v2529_v52 = vadd.f32 %v2522_v33, %v2501_v55  ;;  %v2392_v51 = vadd.f32 %v2385_v5, %v2364_v58  ;;  %v2466_v31 = vpop.permute.xlu1 %2465  ;;  %v2550_v8 = vpop.permute.xlu0 %2549  ;;  %v2611_v5 = vadd.f32 %v6013_v15, %v2600_v17 }
 0x473   : > { %v2435_v54 = vsel %vm1013_vm6, %v7030_v34, %v2426_v26  ;;  %v2483_v41 = vrot.slane %v2466_v31, 1  ;;  %v2567_v4 = vrot.slane %v2550_v8, 7  ;;  %v2434_v11 = vsel %vm1013_vm6, %v2426_v26, %v2427_v47 }
 0x474   : > { %v2585_v25 = vadd.f32 %v2578_v28, %v2529_v52  ;;  %v2440_v33 = vmul.f32 %v2435_v54, %v6947_v6  ;;  %v2441_v36 = vmul.f32 %v2434_v11, %v6951_v56  ;;  %v2524_v26 = vmul.f32 %v5733_v61, %v6873_v60 }
 0x475   : > { %v2490_v18 = vsel %vm871_vm7, %v2482_v50, %v2483_v41  ;;  %v2574_v28 = vsel %vm1013_vm6, %v2566_v32, %v2567_v4  ;;  %v2618_v50 = vmax.f32 %v2611_v5, 0.0 }
 0x476   : > { %v2599_v55 = vadd.f32 %v2592_v3, %v2585_v25  ;;  %v2447_v8 = vadd.f32 %v2440_v33, %v2391_v46  ;;  %v2496_v58 = vmul.f32 %v2490_v18, %v6948_v12  ;;  %v7031_v3 = vld [vmem:[#allocation41_spill] sm:$0xff]  ;;  %v7032_v33 = vld [vmem:[#allocation47_spill] sm:$0xff]  ;;  %v2448_v18 = vadd.f32 %v2441_v36, %v2392_v51 }
 0x477   : > { %v2580_v46 = vmul.f32 %v2574_v28, %v7031_v3  ;;  %v2594_v11 = vmul.f32 %v5837_v30, %v7032_v33  ;;  %v3613_v3 = vld [vmem:[%s6589_s12 + $0x10] sm:$0xf] }
 0x478   : > { %v2610_v52 = vadd.f32 %v6013_v15, %v2599_v55  ;;  %v2503_v24 = vadd.f32 %v2496_v58, %v2447_v8  ;;  %v2468_v31 = vpop.permute.xlu2 %2467  ;;  %v7033_v58 = vld [vmem:[#allocation35_spill] sm:$0xff] }
 0x479   : > { %v2484_v34 = vrot.slane %v2468_v31, 1 }
 0x47a   : > { %v2617_v54 = vmax.f32 %v2610_v52, 0.0  ;;  %v2531_v17 = vadd.f32 %v2524_v26, %v2503_v24  ;;  %v6041_v25 = vpop.permute.xlu1 %2551  ;;  %v7034_v26 = vld [vmem:[#allocation66_spill] sm:$0xff]  ;;  %v7035_v24 = vld [vmem:[#allocation21_spill] sm:$0xff] }
 0x47b   : > { %v2489_v32 = vsel %vm871_vm7, %v2483_v41, %v2484_v34  ;;  %v6755_v61 = vrot.slane %v6041_v25, 7  ;;  %v2330_v55 = vpop.permute.xlu0 %2329  ;;  %v2525_v30 = vmul.f32 %v5748_v44, %v7034_v26  ;;  %v7036_v44 = vld [vmem:[#allocation27_spill] sm:$0xff] }
 0x47c   : > { %v2587_v8 = vadd.f32 %v2580_v46, %v2531_v17  ;;  %v2497_v31 = vmul.f32 %v2489_v32, %v7033_v58  ;;  %v2345_v5 = vrot.slane %v2330_v55, 1  ;;  %v6049_v52 = vpack.c.bf16 %v2618_v50, %v2617_v54  ;;  %v7037_v17 = vld [vmem:[#allocation16_spill] sm:$0xff] }
 0x47d   : > { %v2573_v28 = vsel %vm1013_vm6, %v2567_v4, %v6755_v61 }
 0x47e   : > { %v2601_v51 = vadd.f32 %v2594_v11, %v2587_v8  ;;  %v2504_v36 = vadd.f32 %v2497_v31, %v2448_v18  ;;  %v2347_v41 = vsel %vm871_vm7, %v2345_v5, %v2346_v0  ;;  %3675 = vmatmul.msk.bf16.vlgmr.msra.gmra.mxu1 %vm1528_vm8, %v6049_v52  ;;  %3679 = vmatmul.msk.bf16.vlgmr.msrb.gmra.mxu2 %vm1528_vm8, %v6049_v52  ;;  %v7038_v18 = vld [vmem:[#allocation33_spill] sm:$0xff] }
 0x47f   : > { %v2360_v50 = vmul.f32 %v2347_v41, %v7035_v24  ;;  %3683 = vmatmul.msk.bf16.vlgmr.msrb.gmra.mxu3 %vm1528_vm8, %v6049_v52  ;;  %v2581_v54 = vmul.f32 %v2573_v28, %v7036_v44  ;;  %3687 = vmatmul.msk.bf16.vlgmr.msrb.gmra.mxu0 %vm1528_vm8, %v6049_v52  ;;  %v2388_v0 = vmul.f32 %v5774_v57, %v7037_v17 }
 0x480   : > { %v2532_v4 = vadd.f32 %v2525_v30, %v2504_v36  ;;  %v2328_v48 = vpop.permute.xlu2 %2327  ;;  %v2595_v32 = vmul.f32 %v5858_v35, %v7038_v18  ;;  %v2612_v55 = vadd.f32 %v6013_v15, %v2601_v51  ;;  %v7039_v51 = vld [vmem:[#allocation46_spill] sm:$0xff] }
 0x481   : > { %v2367_v46 = vadd.f32 %v2360_v50, %v5785_v40  ;;  %v2344_v11 = vrot.slane %v2328_v48, 1 }
 0x482   : > { %v2588_v8 = vadd.f32 %v2581_v54, %v2532_v4  ;;  %v2412_v31 = vpop.permute.xlu1 %2411  ;;  %v2386_v4 = vmul.f32 %v5739_v53, %v7039_v51  ;;  %v7041_v54 = vld [vmem:[#allocation26_spill] sm:$0xff] }
 0x483   : > { %v2348_v28 = vsel %vm871_vm7, %v2344_v11, %v2345_v5  ;;  %v2349_v30 = vsel %vm871_vm7, %v2343_v19, %v2344_v11  ;;  %v2470_v36 = vpop.permute.xlu0 %2469  ;;  %v2428_v57 = vrot.slane %v2412_v31, 7  ;;  %v2395_v41 = vadd.f32 %v2388_v0, %v2367_v46  ;;  %v7040_v5 = vld [vmem:[#allocation56_spill] sm:$0xff]  ;;  %v7042_v0 = vld [vmem:[#allocation18_spill] sm:$0xff] }
 0x484   : > { %v2602_v40 = vadd.f32 %v2595_v32, %v2588_v8  ;;  %v2358_v50 = vmul.f32 %v2349_v30, %v6973_v22  ;;  %v2359_v35 = vmul.f32 %v2348_v28, %v6974_v14  ;;  %v2485_v48 = vrot.slane %v2470_v36, 1  ;;  %v7043_v32 = vld [vmem:[#allocation43_spill] sm:$0xff]  ;;  %v7044_v36 = vld [vmem:[#allocation48_spill] sm:$0xff] }
 0x485   : > { %v2433_v9 = vsel %vm1013_vm6, %v2427_v47, %v2428_v57  ;;  %v2387_v19 = vmul.f32 %v7041_v54, %v7040_v5  ;;  %v2619_v31 = vmax.f32 %v2612_v55, 0.0 }
 0x486   : > { %v2613_v11 = vadd.f32 %v6013_v15, %v2602_v40  ;;  %v2365_v46 = vadd.f32 %v2358_v50, %v7042_v0  ;;  %v2366_v8 = vadd.f32 %v2359_v35, %v7043_v32  ;;  %v2488_v28 = vsel %vm871_vm7, %v2484_v34, %v2485_v48  ;;  %v7049_v32 = vld [vmem:[#allocation67_spill] sm:$0xff] }
 0x487   : > { %v2442_v63 = vmul.f32 %v2433_v9, %v7044_v36  ;;  %v2498_v18 = vmul.f32 %v2488_v28, %v7045_v7  ;;  %v7046_v50 = vrot.slane %v5976_v20, 7  ;;  %v7051_v28 = vrot.slane %v5906_v2, 1 }
 0x488   : > { %v2620_v30 = vmax.f32 %v2613_v11, 0.0  ;;  %v2393_v53 = vadd.f32 %v2386_v4, %v2365_v46  ;;  %v2394_v61 = vadd.f32 %v2387_v19, %v2366_v8  ;;  %v2414_v1 = vpop.permute.xlu2 %2413  ;;  %v7047_v19 = vld [vmem:[#allocation55_spill] sm:$0xff]  ;;  %v7050_v8 = vld [vmem:[#allocation49_spill] sm:$0xff] }
 0x489   : > { %v2429_v47 = vrot.slane %v2414_v1, 7  ;;  %v7048_v1 = vld [vmem:[#allocation24_spill] sm:$0xff] }
 0x48a   : > { %v2449_v54 = vadd.f32 %v2442_v63, %v2393_v53  ;;  %v2472_v44 = vpop.permute.xlu1 %2471  ;;  %v6100_v40 = vpack.c.bf16 %v2620_v30, %v2619_v31  ;;  %v2526_v31 = vmul.f32 %v7050_v8, %v7049_v32  ;;  %v7053_v63 = vrot.slane %v5928_v42, 7 }
 0x48b   : > { %v2431_v55 = vsel %vm1013_vm6, %v2429_v47, %v7046_v50  ;;  %v2432_v34 = vsel %vm1013_vm6, %v2428_v57, %v2429_v47  ;;  %v2556_v35 = vpop.permute.xlu0 %2555  ;;  %v2486_v4 = vrot.slane %v2472_v44, 1  ;;  %v7052_v44 = vld [vmem:[#allocation62_spill] sm:$0xff] }
 0x48c   : > { %v2505_v9 = vadd.f32 %v2498_v18, %v2449_v54  ;;  %v2443_v11 = vmul.f32 %v2432_v34, %v7047_v19  ;;  %v2444_v0 = vmul.f32 %v2431_v55, %v7048_v1  ;;  %v2570_v46 = vrot.slane %v2556_v35, 7  ;;  %v7054_v54 = vld [vmem:[#allocation15_spill] sm:$0xff]  ;;  %v3770_v35 = vld [vmem:[%s6589_s12 + $0x98] sm:$0xf0] }
 0x48d   : > { %v2487_v20 = vsel %vm871_vm7, %v2485_v48, %v2486_v4  ;;  %v2493_v30 = vsel %vm871_vm7, %v2486_v4, %v7051_v28  ;;  %v3673_v34 = vld [vmem:[%s6589_s12 + $0x88] sm:$0xf]  ;;  %v7057_v4 = vld [vmem:[#allocation30_spill] sm:$0xff]  ;;  %v3765_v28 = vld [vmem:[%s6589_s12 + $0x70] sm:$0xf0] }
 0x48e   : > { %v2450_v57 = vadd.f32 %v2443_v11, %v2394_v61  ;;  %v2451_v53 = vadd.f32 %v2444_v0, %v2395_v41  ;;  %v2499_v18 = vmul.f32 %v2487_v20, %v7052_v44  ;;  %3676 = vmatmul.msk.bf16.gmra.mxu1 %vm1528_vm8, %v6100_v40  ;;  %v2577_v47 = vsel %vm1013_vm6, %v2570_v46, %v7053_v63  ;;  %v7055_v61 = vld [vmem:[#allocation60_spill] sm:$0xff]  ;;  %v7056_v41 = vld [vmem:[#allocation45_spill] sm:$0xff]  ;;  %v3653_v20 = vld [vmem:[%s6589_s12 + $0x60] sm:$0xf] }
 0x48f   : > { %v2500_v50 = vmul.f32 %v2493_v30, %v7054_v54  ;;  %3680 = vmatmul.msk.bf16.gmra.mxu2 %vm1528_vm8, %v6100_v40  ;;  %3684 = vmatmul.msk.bf16.gmra.mxu3 %vm1528_vm8, %v6100_v40  ;;  %v2533_v2 = vadd.f32 %v2526_v31, %v2505_v9  ;;  %v2527_v48 = vmul.f32 %v7056_v41, %v7055_v61  ;;  %v7058_v11 = vld [vmem:[#allocation29_spill] sm:$0xff]  ;;  %v7059_v30 = vld [vmem:[#allocation22_spill] sm:$0xff] }
 0x490   : > { %v2506_v55 = vadd.f32 %v2499_v18, %v2450_v57  ;;  %3688 = vmatmul.msk.bf16.gmra.mxu0 %vm1528_vm8, %v6100_v40  ;;  %v2554_v42 = vpop.permute.xlu2 %2553  ;;  %v2528_v0 = vmul.f32 %v7058_v11, %v7057_v4  ;;  %v3674_v31 = vor.u32 %v3770_v35, %v3673_v34  ;;  %v2584_v57 = vmul.f32 %v2577_v47, %v7059_v30  ;;  %v7062_v35 = vld [vmem:[#allocation53_spill] sm:$0xff] }
 0x491   : > { %v2507_v9 = vadd.f32 %v2500_v50, %v2451_v53  ;;  %v2569_v8 = vrot.slane %v2554_v42, 7  ;;  %v7060_v11 = vrot.slane %v6041_v25, 7  ;;  %v3654_v50 = vor.u32 %v3765_v28, %v3653_v20  ;;  %v7061_v42 = vld [vmem:[#allocation64_spill] sm:$0xff]  ;;  %v3633_v47 = vld [vmem:[%s6589_s12 + $0x38] sm:$0xf]  ;;  %v7067_v20 = vld [vmem:[#allocation11_spill] sm:$0xff] }
 0x492   : > { %v2534_v18 = vadd.f32 %v2527_v48, %v2506_v55  ;;  %2884 = vmatpush.bf16.msrb.mxu1 %v3674_v31  ;;  %v3760_v48 = vld [vmem:[%s6589_s12 + $0x48] sm:$0xf0]  ;;  %v7064_v55 = vld [vmem:[#allocation50_spill] sm:$0xff] }
 0x493   : > { %v2535_v63 = vadd.f32 %v2528_v0, %v2507_v9  ;;  %v2571_v41 = vsel %vm1013_vm6, %v2569_v8, %v2570_v46  ;;  %v2572_v53 = vsel %vm1013_vm6, %v7060_v11, %v2569_v8  ;;  %v7063_v46 = vld [vmem:[#allocation34_spill] sm:$0xff]  ;;  %v7065_v9 = vld [vmem:[#allocation65_spill] sm:$0xff] }
 0x494   : > { %v2582_v34 = vmul.f32 %v2572_v53, %v7061_v42  ;;  %v2583_v59 = vmul.f32 %v2571_v41, %v7062_v35  ;;  %v2598_v25 = vmul.f32 %v7064_v55, %v7063_v46  ;;  %v7066_v8 = vld [vmem:[#allocation13_spill] sm:$0xff]  ;;  %v7068_v28 = vld [vmem:[#allocation70_spill] sm:$0xff]  ;;  %v3634_v35 = vor.u32 %v3760_v48, %v3633_v47 }
 0x495   : > { %v2591_v0 = vadd.f32 %v2584_v57, %v2535_v63  ;;  %v2596_v31 = vmul.f32 %v7066_v8, %v7065_v9  ;;  %v2597_v11 = vmul.f32 %v7068_v28, %v7067_v20  ;;  %v3755_v57 = vld [vmem:[%s6589_s12 + $0x20] sm:$0xf0] }
 0x496   : > { %v2589_v53 = vadd.f32 %v2582_v34, %v2533_v2  ;;  %v2590_v41 = vadd.f32 %v2583_v59, %v2534_v18  ;;  %2885 = vmatpush.bf16.msrb.mxu1 %v3654_v50  ;;  %v3614_v2 = vor.u32 %v3755_v57, %v3613_v3 }
 0x497   : > { %v2605_v30 = vadd.f32 %v2598_v25, %v2591_v0  ;;  %v7069_v0 = vld [vmem:[#allocation2_spill] sm:$0xff] }
 0x498   : > { %v2603_v42 = vadd.f32 %v2596_v31, %v2589_v53  ;;  %v2604_v33 = vadd.f32 %v2597_v11, %v2590_v41 }
 0x499   : > { %v2616_v34 = vadd.f32 %v6013_v15, %v2605_v30 }
 0x49a   : > { %v2614_v63 = vadd.f32 %v6013_v15, %v2603_v42  ;;  %v2615_v55 = vadd.f32 %v6013_v15, %v2604_v33  ;;  %2886 = vmatpush.bf16.msrb.mxu1 %v3634_v35 }
 0x49b   : > { %v2623_v47 = vmax.f32 %v2616_v34, 0.0 }
 0x49c   : > { %v2621_v59 = vmax.f32 %v2614_v63, 0.0  ;;  %v2622_v18 = vmax.f32 %v2615_v55, 0.0 }
 0x49d   : > { %v2627_v42 = vpack.c.bf16 %v2623_v47, %v2623_v47 }
 0x49e   : > { %v2626_v50 = vpack.c.bf16 %v2622_v18, %v2621_v59  ;;  %2887 = vmatpush.bf16.msrb.mxu1 %v3614_v2  ;;  %v7070_v18 = vld [vmem:[#allocation20_spill] sm:$0xff] }
 0x4a0   : > { %3677 = vmatmul.msk.bf16.gmra.mxu1 %vm1528_vm8, %v2626_v50  ;;  %3681 = vmatmul.msk.bf16.gmra.mxu2 %vm1528_vm8, %v2626_v50 }
 0x4a1   : > { %3685 = vmatmul.msk.bf16.gmra.mxu3 %vm1528_vm8, %v2626_v50  ;;  %3689 = vmatmul.msk.bf16.gmra.mxu0 %vm1528_vm8, %v2626_v50 }
 0x4b0   : > { %3678 = vmatmul.msk.bf16.gmra.mxu1 %vm1528_vm8, %v2627_v42  ;;  %3682 = vmatmul.msk.bf16.gmra.mxu2 %vm1528_vm8, %v2627_v42 }
 0x4b1   : > { %3686 = vmatmul.msk.bf16.gmra.mxu3 %vm1528_vm8, %v2627_v42  ;;  %3690 = vmatmul.msk.bf16.gmra.mxu0 %vm1528_vm8, %v2627_v42 }
 0x4c0   : > { %3691 = vmatmul.msk.bf16.vlgmr.msrb.gmra.mxu1 %vm1528_vm8, %v6049_v52 }
 0x4d0   : > { %3692 = vmatmul.msk.bf16.gmra.mxu1 %vm1528_vm8, %v6100_v40 }
 0x4e0   : > { %3693 = vmatmul.msk.bf16.gmra.mxu1 %vm1528_vm8, %v2626_v50 }
 0x4f0   : > { %3694 = vmatmul.msk.bf16.gmra.mxu1 %vm1528_vm8, %v2627_v42 }
 0x4fb   : > { %v2777_v15 = vpop.f32.mrf.mxu1 }
 0x4fc   : > { %2929 = vrot.lane.b32.xlu1 %v2777_v15, %s3868_s16  ;;  %v6193_v3 = vpop.f32.mrf.mxu0  ;;  %v2909_v8 = vmul.f32 %v2777_v15, %v7069_v0 }
 0x4fd   : > { %v6759_v35 = vrot.slane %v6193_v3, 6 }
 0x501   : > { %v6195_v33 = vpop.f32.mrf.mxu2 }
 0x502   : > { %v6197_v30 = vpop.f32.mrf.mxu3  ;;  %3013 = vrot.lane.b32.xlu2 %v6195_v33, %s3868_s16  ;;  %v6758_v11 = vrot.slane %v6195_v33, 2 }
 0x503   : > { %3069 = vrot.lane.b32.xlu0 %v6197_v30, %s3868_s16  ;;  %v2779_v52 = vpop.f32.mrf.mxu1 }
 0x504   : > { %3153 = vrot.lane.b32.xlu1 %v6193_v3, %s3868_s16  ;;  %v2863_v40 = vpop.f32.mrf.mxu0  ;;  %v2910_v50 = vmul.f32 %v2779_v52, %v7070_v18 }
 0x505   : > { %v3119_v48 = vrot.slane %v2863_v40, 6 }
 0x507   : > { %v6210_v25 = vsel %vm1154_vm4, %v6759_v35, %v3119_v48 }
 0x509   : > { %v2807_v31 = vpop.f32.mrf.mxu2 }
 0x50a   : > { %v2835_v28 = vpop.f32.mrf.mxu3  ;;  %v2979_v53 = vrot.slane %v2807_v31, 2  ;;  %2931 = vrot.lane.b32.xlu2 %v2779_v52, %s3868_s16 }
 0x50b   : > { %v6214_v41 = vadd.f32 %v2909_v8, %v2835_v28  ;;  %3015 = vrot.lane.b32.xlu0 %v2807_v31, %s3868_s16  ;;  %v2782_v57 = vpop.f32.mrf.mxu1 }
 0x50c   : > { %3071 = vrot.lane.b32.xlu1 %v2835_v28, %s3868_s16  ;;  %v6223_v63 = vsel %vm928_vm5, %v6758_v11, %v2979_v53  ;;  %v7071_v28 = vld [vmem:[#allocation10_spill] sm:$0xff] }
 0x50d   : > { %v2866_v55 = vpop.f32.mrf.mxu0  ;;  %v2911_v18 = vmul.f32 %v2782_v57, %v7071_v28  ;;  %v7072_v28 = vld [vmem:[#allocation38_spill] sm:$0xff] }
 0x50e   : > { %v3120_v2 = vrot.slane %v2866_v55, 6 }
 0x510   : > { %v6227_v59 = vsel %vm1154_vm4, %v3119_v48, %v3120_v2 }
 0x512   : > { %v2810_v34 = vpop.f32.mrf.mxu2  ;;  %v2838_v47 = vpop.f32.mrf.mxu3  ;;  %3155 = vrot.lane.b32.xlu2 %v2863_v40, %s3868_s16 }
 0x513   : > { %v2980_v42 = vrot.slane %v2810_v34, 2  ;;  %v6230_v15 = vadd.f32 %v2910_v50, %v2838_v47  ;;  %2933 = vrot.lane.b32.xlu0 %v2782_v57, %s3868_s16  ;;  %v2784_v8 = vpop.f32.mrf.mxu1 }
 0x514   : > { %3017 = vrot.lane.b32.xlu1 %v2810_v34, %s3868_s16 }
 0x515   : > { %v6237_v0 = vsel %vm928_vm5, %v2979_v53, %v2980_v42  ;;  %v2868_v48 = vpop.f32.mrf.mxu0 }
 0x516   : > { %v3121_v31 = vrot.slane %v2868_v48, 6 }
 0x518   : > { %v6241_v52 = vsel %vm1154_vm4, %v3120_v2, %v3121_v31 }
 0x51a   : > { %v2812_v50 = vpop.f32.mrf.mxu2  ;;  %v2840_v11 = vpop.f32.mrf.mxu3  ;;  %3073 = vrot.lane.b32.xlu2 %v2838_v47, %s3868_s16 }
 0x51b   : > { %v2981_v40 = vrot.slane %v2812_v50, 2  ;;  %v6244_v35 = vadd.f32 %v2911_v18, %v2840_v11  ;;  %3157 = vrot.lane.b32.xlu0 %v2866_v55, %s3868_s16  ;;  %v2912_v18 = vmul.f32 %v2784_v8, %v7072_v28 }
 0x51c   : > { %2935 = vrot.lane.b32.xlu1 %v2784_v8, %s3868_s16 }
 0x51d   : > { %v6251_v53 = vsel %vm928_vm5, %v2980_v42, %v2981_v40  ;;  %v2787_v34 = vpop.f32.mrf.mxu1 }
 0x51e   : > { %v2871_v2 = vpop.f32.mrf.mxu0 }
 0x51f   : > { %v3122_v46 = vrot.slane %v2871_v2, 6 }
 0x521   : > { %v6255_v57 = vsel %vm1154_vm4, %v3121_v31, %v3122_v46 }
 0x522   : > { %3019 = vrot.lane.b32.xlu2 %v2812_v50, %s3868_s16  ;;  %v7073_v50 = vld [vmem:[#allocation32_spill] sm:$0xff] }
 0x523   : > { %3075 = vrot.lane.b32.xlu0 %v2840_v11, %s3868_s16  ;;  %v2815_v55 = vpop.f32.mrf.mxu2  ;;  %v2913_v11 = vmul.f32 %v2787_v34, %v7073_v50 }
 0x524   : > { %v2982_v47 = vrot.slane %v2815_v55, 2  ;;  %v2843_v20 = vpop.f32.mrf.mxu3 }
 0x525   : > { %v6260_v9 = vadd.f32 %v2912_v18, %v2843_v20  ;;  %3077 = vrot.lane.b32.xlu1 %v2843_v20, %s3868_s16  ;;  %v2789_v42 = vpop.f32.mrf.mxu1 }
 0x526   : > { %v6265_v4 = vsel %vm928_vm5, %v2981_v40, %v2982_v47  ;;  %v2873_v31 = vpop.f32.mrf.mxu0 }
 0x527   : > { %v3123_v61 = vrot.slane %v2873_v31, 6 }
 0x529   : > { %v6269_v8 = vsel %vm1154_vm4, %v3122_v46, %v3123_v61  ;;  %v7074_v46 = vld [vmem:[#allocation6_spill] sm:$0xff] }
 0x52a   : > { %2937 = vrot.lane.b32.xlu2 %v2787_v34, %s3868_s16 }
 0x52b   : > { %3021 = vrot.lane.b32.xlu0 %v2815_v55, %s3868_s16  ;;  %v2817_v28 = vpop.f32.mrf.mxu2 }
 0x52c   : > { %v2983_v18 = vrot.slane %v2817_v28, 2  ;;  %v2845_v20 = vpop.f32.mrf.mxu3 }
 0x52d   : > { %v6274_v54 = vadd.f32 %v2913_v11, %v2845_v20  ;;  %3023 = vrot.lane.b32.xlu1 %v2817_v28, %s3868_s16  ;;  %v2792_v40 = vpop.f32.mrf.mxu1  ;;  %v7077_v11 = vrot.slane %v6193_v3, 6 }
 0x52e   : > { %v6279_v44 = vsel %vm928_vm5, %v2982_v47, %v2983_v18  ;;  %v2908_v1 = vmul.f32 %v2792_v40, %v7074_v46  ;;  %v2876_v19 = vpop.f32.mrf.mxu0  ;;  %v2914_v47 = vmul.f32 %v2789_v42, %v7079_v39 }
 0x52f   : > { %v3124_v50 = vrot.slane %v2876_v19, 6 }
 0x530   : > { %v6283_v55 = vadd.f32 %v2908_v1, %v6197_v30 }
 0x531   : > { %v6287_v34 = vsel %vm1154_vm4, %v3123_v61, %v3124_v50  ;;  %v6293_v28 = vsel %vm1154_vm4, %v3124_v50, %v7077_v11  ;;  %v7082_v50 = vrot.slane %v6195_v33, 2 }
 0x532   : > { %7075 = vst [vmem:[#allocation58_spill] sm:$0xff] %v6283_v55  ;;  %3079 = vrot.lane.b32.xlu2 %v2845_v20, %s3868_s16 }
 0x533   : > { %7076 = vst [vmem:[#allocation28_spill] sm:$0xff] %v6287_v34  ;;  %2939 = vrot.lane.b32.xlu0 %v2789_v42, %s3868_s16  ;;  %v2820_v46 = vpop.f32.mrf.mxu2 }
 0x534   : > { %7078 = vst [vmem:[#allocation52_spill] sm:$0xff] %v6293_v28  ;;  %v2984_v43 = vrot.slane %v2820_v46, 2  ;;  %v2848_v1 = vpop.f32.mrf.mxu3 }
 0x535   : > { %v6298_v30 = vadd.f32 %v2914_v47, %v2848_v1  ;;  %2941 = vrot.lane.b32.xlu1 %v2792_v40, %s3868_s16  ;;  %v2794_v61 = vpop.f32.mrf.mxu1 }
 0x536   : > { %v6303_v3 = vsel %vm928_vm5, %v2983_v18, %v2984_v43  ;;  %v6309_v39 = vsel %vm928_vm5, %v2984_v43, %v7082_v50  ;;  %v2878_v20 = vpop.f32.mrf.mxu0 }
 0x537   : > { %7080 = vst [vmem:[#allocation44_spill] sm:$0xff] %v6298_v30 }
 0x538   : > { %7081 = vst [vmem:[#allocation39_spill] sm:$0xff] %v6303_v3 }
 0x539   : > { %7083 = vst [vmem:[#allocation19_spill] sm:$0xff] %v6309_v39 }
 0x53a   : > { %3025 = vrot.lane.b32.xlu2 %v2820_v46, %s3868_s16 }
 0x53b   : > { %3081 = vrot.lane.b32.xlu0 %v2848_v1, %s3868_s16  ;;  %v2822_v42 = vpop.f32.mrf.mxu2 }
 0x53c   : > { %v2850_v11 = vpop.f32.mrf.mxu3  ;;  %v7090_v42 = vld [vmem:[#allocation17_spill] sm:$0xff] }
 0x53d   : > { %3159 = vrot.lane.b32.xlu1 %v2868_v48, %s3868_s16  ;;  %v6314_v40 = vpop.f32.mrf.mxu1 }
 0x53e   : > { %7084 = vst [vmem:[#allocation68_spill] sm:$0xff] %v6314_v40  ;;  %v7091_v40 = vld [vmem:[#allocation36_spill] sm:$0xff] }
 0x542   : > { %3161 = vrot.lane.b32.xlu2 %v2871_v2, %s3868_s16 }
 0x543   : > { %3163 = vrot.lane.b32.xlu0 %v2873_v31, %s3868_s16 }
 0x545   : > { %3165 = vrot.lane.b32.xlu1 %v2876_v19, %s3868_s16  ;;  %v6319_v33 = vpop.f32.mrf.mxu1 }
 0x546   : > { %7085 = vst [vmem:[#allocation69_spill] sm:$0xff] %v6319_v33  ;;  %v2993_v33 = vmul.f32 %v6223_v63, %v7091_v40  ;;  %v7092_v63 = vld [vmem:[#allocation51_spill] sm:$0xff] }
 0x54d   : > { %v2894_v43 = vpop.f32.mrf.mxu1 }
 0x555   : > { %v6321_v18 = vpop.f32.mrf.mxu1 }
 0x556   : > { %7086 = vst [vmem:[#allocation71_spill] sm:$0xff] %v6321_v18 }
 0x55c   : > { %v6323_v47 = vpop.permute.xlu2 %3013 }
 0x55d   : > { %v6325_v46 = vpop.f32.mrf.mxu1  ;;  %v6763_v30 = vrot.slane %v6323_v47, 7 }
 0x55e   : > { %7087 = vst [vmem:[#allocation72_spill] sm:$0xff] %v6325_v46 }
 0x564   : > { %v2932_v1 = vpop.permute.xlu2 %2931 }
 0x565   : > { %v6327_v61 = vpop.f32.mrf.mxu1  ;;  %v2951_v31 = vrot.slane %v2932_v1, 1 }
 0x566   : > { %7088 = vst [vmem:[#allocation59_spill] sm:$0xff] %v6327_v61 }
 0x56c   : > { %v6331_v50 = vpop.permute.xlu2 %3155 }
 0x56d   : > { %v6329_v48 = vpop.f32.mrf.mxu1 }
 0x56e   : > { %7089 = vst [vmem:[#allocation54_spill] sm:$0xff] %v6329_v48  ;;  %v6333_v2 = vpop.permute.xlu1 %2929 }
 0x56f   : > { %v6762_v19 = vrot.slane %v6333_v2, 1 }
 0x571   : > { %v2962_v20 = vsel %vm871_vm7, %v6762_v19, %v2951_v31 }
 0x572   : > { %v2965_v11 = vmul.f32 %v2962_v20, %v7090_v42 }
 0x574   : > { %v2972_v61 = vadd.f32 %v2965_v11, %v6214_v41  ;;  %v3074_v28 = vpop.permute.xlu2 %3073 }
 0x575   : > { %v6344_v48 = vpop.permute.xlu0 %3069  ;;  %v2906_v46 = vpop.f32.mrf.mxu1  ;;  %v3092_v19 = vrot.slane %v3074_v28, 1  ;;  %v3133_v28 = vmul.f32 %v6227_v59, %v7028_v10  ;;  %v3175_v10 = vrot.slane %v6331_v50, 7  ;;  %v7107_v50 = vld [vmem:[#allocation24_spill] sm:$0xff] }
 0x576   : > { %v6346_v18 = vpop.permute.xlu1 %3153  ;;  %v3000_v1 = vadd.f32 %v2993_v33, %v2972_v61 }
 0x57c   : > { %v6361_v46 = vpop.permute.xlu2 %3019 }
 0x57d   : > { %v3016_v34 = vpop.permute.xlu0 %3015 }
 0x57e   : > { %v3035_v55 = vrot.slane %v3016_v34, 7  ;;  %v6349_v3 = vpop.permute.xlu1 %3071 }
 0x57f   : > { %v6764_v20 = vrot.slane %v6349_v3, 1 }
 0x580   : > { %v3046_v41 = vsel %vm1013_vm6, %v6763_v30, %v3035_v55 }
 0x581   : > { %v3049_v40 = vmul.f32 %v3046_v41, %v7092_v63  ;;  %v3101_v33 = vsel %vm871_vm7, %v6764_v20, %v3092_v19  ;;  %v2994_v20 = vmul.f32 %v6237_v0, %v6941_v62 }
 0x582   : > { %v3105_v34 = vmul.f32 %v3101_v33, %v7027_v27 }
 0x583   : > { %v3056_v61 = vadd.f32 %v3049_v40, %v3000_v1 }
 0x584   : > { %v6372_v27 = vpop.permute.xlu2 %2937 }
 0x585   : > { %v3112_v42 = vadd.f32 %v3105_v34, %v3056_v61  ;;  %v2934_v11 = vpop.permute.xlu0 %2933  ;;  %v2954_v34 = vrot.slane %v6372_v27, 1 }
 0x586   : > { %v2952_v17 = vrot.slane %v2934_v11, 1  ;;  %v3018_v39 = vpop.permute.xlu1 %3017 }
 0x587   : > { %v3140_v30 = vadd.f32 %v3133_v28, %v3112_v42  ;;  %v3036_v61 = vrot.slane %v3018_v39, 7  ;;  %v2996_v28 = vmul.f32 %v6265_v4, %v7039_v51  ;;  %v6402_v42 = vld [vmem:[%s6590_s13] ss:$0 sm:$0xff] }
 0x588   : > { %v2961_v41 = vsel %vm871_vm7, %v2951_v31, %v2952_v17 }
 0x589   : > { %v2966_v63 = vmul.f32 %v2961_v41, %v4295_v13 }
 0x58b   : > { %v2973_v38 = vadd.f32 %v2966_v63, %v6230_v15 }
 0x58d   : > { %v3001_v1 = vadd.f32 %v2994_v20, %v2973_v38  ;;  %v6374_v40 = vpop.permute.xlu0 %3157  ;;  %v2995_v20 = vmul.f32 %v6251_v53, %v6950_v45 }
 0x58e   : > { %v3176_v59 = vrot.slane %v6374_v40, 7  ;;  %v2936_v33 = vpop.permute.xlu1 %2935 }
 0x58f   : > { %v2953_v31 = vrot.slane %v2936_v33, 1  ;;  %v6413_v33 = vpop.permute.xlu2 %3079 }
 0x590   : > { %v3185_v13 = vsel %vm1013_vm6, %v3175_v10, %v3176_v59 }
 0x591   : > { %v3189_v38 = vmul.f32 %v3185_v13, %v6859_v16  ;;  %v2959_v62 = vsel %vm871_vm7, %v2953_v31, %v2954_v34  ;;  %v2960_v15 = vsel %vm871_vm7, %v2952_v17, %v2953_v31  ;;  %v3203_v16 = vmul.f32 %v2894_v43, %v6863_v29  ;;  %v7093_v13 = vld [vmem:[#allocation37_spill] sm:$0xff] }
 0x592   : > { %v2967_v0 = vmul.f32 %v2960_v15, %v6942_v21  ;;  %v2968_v39 = vmul.f32 %v2959_v62, %v6973_v22  ;;  %v3037_v17 = vrot.slane %v6361_v46, 7  ;;  %v3045_v21 = vsel %vm1013_vm6, %v3035_v55, %v3036_v61 }
 0x593   : > { %v3196_v11 = vadd.f32 %v3189_v38, %v3140_v30  ;;  %v3050_v30 = vmul.f32 %v3045_v21, %v6947_v6  ;;  %v7094_v38 = vmax.f32 %v7093_v13, 0.0  ;;  %v3134_v6 = vmul.f32 %v6241_v52, %v6873_v60  ;;  %v7099_v13 = vld [vmem:[#allocation19_spill] sm:$0xff] }
 0x594   : > { %v2974_v22 = vadd.f32 %v2967_v0, %v6244_v35  ;;  %v2975_v45 = vadd.f32 %v2968_v39, %v6260_v9  ;;  %v3044_v29 = vsel %vm1013_vm6, %v3036_v61, %v3037_v17 }
 0x595   : > { %v3210_v53 = vadd.f32 %v3203_v16, %v3196_v11  ;;  %v3076_v51 = vpop.permute.xlu0 %3075  ;;  %v3051_v55 = vmul.f32 %v3044_v29, %v6951_v56  ;;  %v3057_v31 = vadd.f32 %v3050_v30, %v3001_v1  ;;  %v3095_v16 = vrot.slane %v6413_v33, 1 }
 0x596   : > { %v3002_v4 = vadd.f32 %v2995_v20, %v2974_v22  ;;  %v3093_v43 = vrot.slane %v3076_v51, 1  ;;  %v3003_v41 = vadd.f32 %v2996_v28, %v2975_v45  ;;  %v3090_v33 = vrot.slane %v6344_v48, 1 }
 0x597   : > { %v3221_v46 = vadd.f32 %v6402_v42, %v3210_v53  ;;  %v3078_v63 = vpop.permute.xlu1 %3077  ;;  %v3136_v53 = vmul.f32 %v6269_v8, %v7049_v32  ;;  %v3174_v32 = vrot.slane %v6346_v18, 7  ;;  %v7096_v48 = vrot.slane %v6323_v47, 7 }
 0x598   : > { %v3100_v35 = vsel %vm871_vm7, %v3092_v19, %v3093_v43  ;;  %v3094_v9 = vrot.slane %v3078_v63, 1  ;;  %v3058_v15 = vadd.f32 %v3051_v55, %v3002_v4  ;;  %v3132_v55 = vmul.f32 %v6210_v25, %v4226_v49  ;;  %v7103_v25 = vld [vmem:[#allocation44_spill] sm:$0xff] }
 0x599   : > { %v3228_v61 = vadd.f32 %v3221_v46, %v7094_v38  ;;  %v3106_v62 = vmul.f32 %v3100_v35, %v6948_v12  ;;  %v3135_v12 = vmul.f32 %v6255_v57, %v7034_v26  ;;  %v3026_v57 = vpop.permute.xlu2 %3025 }
 0x59a   : > { %v3099_v19 = vsel %vm871_vm7, %v3093_v43, %v3094_v9  ;;  %v3098_v21 = vsel %vm871_vm7, %v3094_v9, %v3095_v16  ;;  %v3040_v4 = vrot.slane %v3026_v57, 7  ;;  %v7097_v9 = vrot.slane %v6333_v2, 1  ;;  %v7101_v2 = vld [vmem:[#allocation39_spill] sm:$0xff] }
 0x59b   : > { %v3235_v56 = vmax.f32 %v3228_v61, 0.0  ;;  %v3113_v1 = vadd.f32 %v3106_v62, %v3057_v31  ;;  %v3107_v0 = vmul.f32 %v3099_v19, %v7033_v58  ;;  %v3108_v22 = vmul.f32 %v3098_v21, %v7045_v7  ;;  %v7098_v31 = vld [vmem:[#allocation3_spill] sm:$0xff]  ;;  %v7100_v61 = vld [vmem:[#allocation16_spill] sm:$0xff] }
 0x59c   : > { %v3047_v27 = vsel %vm1013_vm6, %v3040_v4, %v7096_v48  ;;  %v2992_v38 = vmul.f32 %v7099_v13, %v7098_v31  ;;  %v2998_v62 = vmul.f32 %v7101_v2, %v7100_v61  ;;  %v7117_v31 = vld [vmem:[#allocation12_spill] sm:$0xff] }
 0x59d   : > { %3242 = vst.msk [vmem:[%s6426_s20 + $0x8] sm:$0xff] %vm1528_vm8, %v3235_v56  ;;  %v3114_v39 = vadd.f32 %v3107_v0, %v3058_v15  ;;  %v3022_v20 = vpop.permute.xlu0 %3021  ;;  %v6437_v28 = vadd.f32 %v3134_v6, %v3113_v1  ;;  %v7104_v15 = vld [vmem:[#allocation8_spill] sm:$0xff] }
 0x59e   : > { %v3038_v60 = vrot.slane %v3022_v20, 7  ;;  %v7106_v20 = vld [vmem:[#allocation55_spill] sm:$0xff] }
 0x59f   : > { %v3024_v52 = vpop.permute.xlu1 %3023  ;;  %v6440_v11 = vadd.f32 %v3135_v12, %v3114_v39  ;;  %v7105_v12 = vld [vmem:[#allocation4_spill] sm:$0xff] }
 0x5a0   : > { %v3043_v58 = vsel %vm1013_vm6, %v3037_v17, %v3038_v60  ;;  %v3039_v30 = vrot.slane %v3024_v52, 7  ;;  %v2997_v17 = vmul.f32 %v6279_v44, %v7040_v5  ;;  %v3048_v39 = vmul.f32 %v3047_v27, %v7105_v12 }
 0x5a1   : > { %v3052_v26 = vmul.f32 %v3043_v58, %v7044_v36  ;;  %v3162_v6 = vpop.permute.xlu2 %3161 }
 0x5a2   : > { %v3041_v19 = vsel %vm1013_vm6, %v3039_v30, %v3040_v4  ;;  %v3178_v21 = vrot.slane %v3162_v6, 7 }
 0x5a3   : > { %v3059_v45 = vadd.f32 %v3052_v26, %v3003_v41  ;;  %v7095_v41 = vrot.slane %v6349_v3, 1  ;;  %v3054_v58 = vmul.f32 %v3041_v19, %v7107_v50 }
 0x5a5   : > { %v3115_v51 = vadd.f32 %v3108_v22, %v3059_v45  ;;  %v2940_v29 = vpop.permute.xlu0 %2939  ;;  %v3102_v35 = vsel %vm871_vm7, %v3090_v33, %v7095_v41  ;;  %v7112_v41 = vld [vmem:[#allocation30_spill] sm:$0xff] }
 0x5a6   : > { %v2955_v43 = vrot.slane %v2940_v29, 1  ;;  %v3104_v0 = vmul.f32 %v3102_v35, %v7104_v15  ;;  %v7113_v35 = vld [vmem:[#allocation52_spill] sm:$0xff] }
 0x5a7   : > { %v2942_v46 = vpop.permute.xlu1 %2941  ;;  %v6450_v63 = vadd.f32 %v3136_v53, %v3115_v51  ;;  %v3138_v48 = vmul.f32 %v7113_v35, %v7112_v41 }
 0x5a8   : > { %v2958_v36 = vsel %vm871_vm7, %v2954_v34, %v2955_v43  ;;  %v2956_v7 = vrot.slane %v2942_v46, 1  ;;  %v7109_v46 = vld [vmem:[#allocation15_spill] sm:$0xff] }
 0x5a9   : > { %v2969_v8 = vmul.f32 %v2958_v36, %v6974_v14  ;;  %v3042_v14 = vsel %vm1013_vm6, %v3038_v60, %v3039_v30 }
 0x5aa   : > { %v2957_v34 = vsel %vm871_vm7, %v2955_v43, %v2956_v7  ;;  %v2963_v5 = vsel %vm871_vm7, %v2956_v7, %v7097_v9  ;;  %v3053_v60 = vmul.f32 %v3042_v14, %v7106_v20  ;;  %v7108_v43 = vld [vmem:[#allocation62_spill] sm:$0xff]  ;;  %v7110_v7 = vld [vmem:[#allocation60_spill] sm:$0xff] }
 0x5ab   : > { %v2976_v44 = vadd.f32 %v2969_v8, %v6274_v54  ;;  %v2964_v3 = vmul.f32 %v2963_v5, %v4194_v37  ;;  %v2970_v47 = vmul.f32 %v2957_v34, %v7035_v24  ;;  %v3186_v37 = vsel %vm1013_vm6, %v3174_v32, %v3175_v10  ;;  %v7102_v54 = vld [vmem:[#allocation58_spill] sm:$0xff]  ;;  %v7114_v5 = vld [vmem:[#allocation41_spill] sm:$0xff] }
 0x5ac   : > { %v3188_v13 = vmul.f32 %v3186_v37, %v7117_v31  ;;  %v7138_v31 = vld [vmem:[#allocation31_spill] sm:$0xff] }
 0x5ad   : > { %v3004_v24 = vadd.f32 %v2997_v17, %v2976_v44  ;;  %v2971_v49 = vadd.f32 %v2964_v3, %v7102_v54  ;;  %v2977_v56 = vadd.f32 %v2970_v47, %v7103_v25  ;;  %v3082_v1 = vpop.permute.xlu0 %3081  ;;  %v7111_v17 = vld [vmem:[#allocation28_spill] sm:$0xff]  ;;  %v7115_v44 = vld [vmem:[#allocation47_spill] sm:$0xff] }
 0x5ae   : > { %v3096_v52 = vrot.slane %v3082_v1, 1  ;;  %v3137_v8 = vmul.f32 %v7111_v17, %v7110_v7  ;;  %v7116_v3 = vld [vmem:[#allocation71_spill] sm:$0xff]  ;;  %v7122_v1 = vld [vmem:[#allocation69_spill] sm:$0xff] }
 0x5af   : > { %v2999_v26 = vadd.f32 %v2992_v38, %v2971_v49  ;;  %v3005_v57 = vadd.f32 %v2998_v62, %v2977_v56  ;;  %v3160_v22 = vpop.permute.xlu1 %3159  ;;  %v3060_v10 = vadd.f32 %v3053_v60, %v3004_v24  ;;  %v3204_v47 = vmul.f32 %v7116_v3, %v7115_v44  ;;  %v7118_v38 = vld [vmem:[#allocation27_spill] sm:$0xff]  ;;  %v7119_v24 = vld [vmem:[#allocation33_spill] sm:$0xff] }
 0x5b0   : > { %v3097_v45 = vsel %vm871_vm7, %v3095_v16, %v3096_v52  ;;  %v3103_v53 = vsel %vm871_vm7, %v3096_v52, %v3090_v33  ;;  %v3177_v51 = vrot.slane %v3160_v22, 7  ;;  %v7121_v56 = vld [vmem:[#allocation9_spill] sm:$0xff]  ;;  %v7123_v52 = vld [vmem:[#allocation64_spill] sm:$0xff]  ;;  %v7131_v7 = vld [vmem:[#allocation23_spill] sm:$0xff] }
 0x5b1   : > { %v3055_v29 = vadd.f32 %v3048_v39, %v2999_v26  ;;  %v3061_v4 = vadd.f32 %v3054_v58, %v3005_v57  ;;  %v3109_v30 = vmul.f32 %v3097_v45, %v7108_v43  ;;  %v3110_v36 = vmul.f32 %v3103_v53, %v7109_v46  ;;  %v7124_v58 = vld [vmem:[#allocation65_spill] sm:$0xff]  ;;  %v7125_v26 = vld [vmem:[#allocation59_spill] sm:$0xff]  ;;  %v7126_v45 = vld [vmem:[#allocation14_spill] sm:$0xff] }
 0x5b2   : > { %v3183_v27 = vsel %vm1013_vm6, %v3177_v51, %v3178_v21  ;;  %v3184_v16 = vsel %vm1013_vm6, %v3176_v59, %v3177_v51  ;;  %v7120_v59 = vld [vmem:[#allocation72_spill] sm:$0xff]  ;;  %v3202_v15 = vmul.f32 %v7122_v1, %v7121_v56  ;;  %v7127_v53 = vmax.f32 %v7126_v45, 0.0  ;;  %v7130_v46 = vld [vmem:[#allocation54_spill] sm:$0xff] }
 0x5b3   : > { %v3111_v33 = vadd.f32 %v3104_v0, %v3055_v29  ;;  %v3116_v34 = vadd.f32 %v3109_v30, %v3060_v10  ;;  %v3117_v9 = vadd.f32 %v3110_v36, %v3061_v4  ;;  %v3190_v14 = vmul.f32 %v3184_v16, %v7114_v5  ;;  %v7128_v4 = vld [vmem:[#allocation53_spill] sm:$0xff]  ;;  %v7129_v30 = vld [vmem:[#allocation11_spill] sm:$0xff] }
 0x5b4   : > { %v3191_v61 = vmul.f32 %v3183_v27, %v7118_v38  ;;  %v3205_v54 = vmul.f32 %v7120_v59, %v7119_v24  ;;  %v3207_v36 = vmul.f32 %v7130_v46, %v7129_v30  ;;  %v7132_v17 = vmax.f32 %v7131_v7, 0.0  ;;  %v7142_v24 = vld [vmem:[#allocation40_spill] sm:$0xff] }
 0x5b5   : > { %v3139_v2 = vadd.f32 %v3132_v55, %v3111_v33  ;;  %v3197_v62 = vadd.f32 %v3190_v14, %v6437_v28  ;;  %v3164_v6 = vpop.permute.xlu0 %3163  ;;  %v3144_v40 = vadd.f32 %v3137_v8, %v3116_v34  ;;  %v3145_v19 = vadd.f32 %v3138_v48, %v3117_v9  ;;  %v7134_v8 = vld [vmem:[#allocation42_spill] sm:$0xff] }
 0x5b6   : > { %v3198_v49 = vadd.f32 %v3191_v61, %v6440_v11  ;;  %v3179_v25 = vrot.slane %v3164_v6, 7  ;;  %v3206_v11 = vmul.f32 %v7125_v26, %v7124_v58  ;;  %v7135_v41 = vmax.f32 %v7134_v8, 0.0  ;;  %v7136_v33 = vld [vmem:[#allocation34_spill] sm:$0xff]  ;;  %v7140_v6 = vld [vmem:[#allocation25_spill] sm:$0xff] }
 0x5b7   : > { %v3195_v0 = vadd.f32 %v3188_v13, %v3139_v2  ;;  %v3211_v12 = vadd.f32 %v3204_v47, %v3197_v62  ;;  %v3166_v37 = vpop.permute.xlu1 %3165  ;;  %v7139_v13 = vmax.f32 %v7138_v31, 0.0 }
 0x5b8   : > { %v3212_v39 = vadd.f32 %v3205_v54, %v3198_v49  ;;  %v3182_v55 = vsel %vm1013_vm6, %v3178_v21, %v3179_v25  ;;  %v3180_v28 = vrot.slane %v3166_v37, 7 }
 0x5b9   : > { %v3209_v20 = vadd.f32 %v3202_v15, %v3195_v0  ;;  %v3222_v60 = vadd.f32 %v6402_v42, %v3211_v12  ;;  %v3192_v50 = vmul.f32 %v3182_v55, %v7123_v52 }
 0x5ba   : > { %v3223_v57 = vadd.f32 %v6402_v42, %v3212_v39  ;;  %v3181_v22 = vsel %vm1013_vm6, %v3179_v25, %v3180_v28  ;;  %v3187_v10 = vsel %vm1013_vm6, %v3180_v28, %v3174_v32 }
 0x5bb   : > { %v3220_v21 = vadd.f32 %v6402_v42, %v3209_v20  ;;  %v3229_v51 = vadd.f32 %v3222_v60, %v7127_v53  ;;  %v3199_v29 = vadd.f32 %v3192_v50, %v6450_v63  ;;  %v3193_v43 = vmul.f32 %v3181_v22, %v7128_v4  ;;  %v7137_v63 = vld [vmem:[#allocation68_spill] sm:$0xff] }
 0x5bc   : > { %v3230_v18 = vadd.f32 %v3223_v57, %v7132_v17  ;;  %v3194_v32 = vmul.f32 %v3187_v10, %v7133_v23  ;;  %v3208_v34 = vmul.f32 %v7137_v63, %v7136_v33 }
 0x5bd   : > { %v3227_v35 = vadd.f32 %v3220_v21, %v7135_v41  ;;  %v3236_v48 = vmax.f32 %v3229_v51, 0.0  ;;  %v3213_v27 = vadd.f32 %v3206_v11, %v3199_v29  ;;  %v3200_v16 = vadd.f32 %v3193_v43, %v3144_v40 }
 0x5be   : > { %v3237_v9 = vmax.f32 %v3230_v18, 0.0  ;;  %v3201_v5 = vadd.f32 %v3194_v32, %v3145_v19  ;;  %v7141_v40 = vmax.f32 %v7140_v6, 0.0 }
 0x5bf   : > { %v3234_v14 = vmax.f32 %v3227_v35, 0.0  ;;  %3243 = vst.msk [vmem:[%s6426_s20 + $0x10] sm:$0xff] %vm1528_vm8, %v3236_v48  ;;  %v3224_v44 = vadd.f32 %v6402_v42, %v3213_v27  ;;  %v3214_v3 = vadd.f32 %v3207_v36, %v3200_v16 }
 0x5c0   : > { %3244 = vst.msk [vmem:[%s6426_s20 + $0x18] sm:$0xff] %vm1528_vm8, %v3237_v9  ;;  %v3215_v47 = vadd.f32 %v3208_v34, %v3201_v5 }
 0x5c1   : > { %3241 = vst.msk [vmem:[%s6426_s20] sm:$0xff] %vm1528_vm8, %v3234_v14  ;;  %v3231_v38 = vadd.f32 %v3224_v44, %v7139_v13  ;;  %v3225_v61 = vadd.f32 %v6402_v42, %v3214_v3 }
 0x5c2   : > { %v3226_v2 = vadd.f32 %v6402_v42, %v3215_v47 }
 0x5c3   : > { %v3238_v62 = vmax.f32 %v3231_v38, 0.0  ;;  %v3232_v19 = vadd.f32 %v3225_v61, %v7141_v40 }
 0x5c4   : > { %v3233_v59 = vadd.f32 %v3226_v2, %v7142_v24 }
 0x5c5   : > { %3245 = vst.msk [vmem:[%s6426_s20 + $0x20] sm:$0xff] %vm1528_vm8, %v3238_v62  ;;  %v3239_v54 = vmax.f32 %v3232_v19, 0.0 }
 0x5c6   : > { %v3240_v49 = vmax.f32 %v3233_v59, 0.0 }
 0x5c7   : > { %3246 = vst.msk [vmem:[%s6426_s20 + $0x28] sm:$0xff] %vm1528_vm8, %v3239_v54 }
 0x5c8   : > { %3247 = vst.msk [vmem:[%s6426_s20 + $0x30] sm:$0xff] %vm1528_vm8, %v3240_v49 }
 0x5c9 PF: > { %s24_s29 = sadd.s32 1, %s3857_s29  }
 0x5ca   : > { %p21_p4 = scmp.ge.s32.totalorder %s24_s29, 4  }
 0x5cc   :  { %23 = sbr.rel (!%p21_p4) target bundleno = 1 (0x1), region = 106 }

// kernel: forward.3
= control target key start
LH: loop header
LB: loop body
LE: loop exit
PB: predicated region body
PF: predicated region fallthrough
CT: control target
= control target key end

     0   :  { %s4407_s0 = inlined_call_operand.vmem [shape: f32[2,3584], index: 0, kind: input, shape index: {}]   ;;  %s4408_s1 = inlined_call_operand.vmem [shape: bf16[3584,128], index: 1, kind: input, shape index: {}]   ;;  %s4409_s2 = inlined_call_operand.vmem [shape: f32[1,128], index: 2, kind: input, shape index: {}]   ;;  %s4410_s3 = inlined_call_operand.vmem [shape: bf16[128,3], index: 3, kind: input, shape index: {}]   ;;  %s4411_s4 = inlined_call_operand.vmem [shape: f32[1,3], index: 4, kind: input, shape index: {}]   ;;  %s4412_s5 = inlined_call_operand.hbm [shape: f32[2,2], index: 5, kind: output, shape index: {0}]   ;;  %s4413_s6 = inlined_call_operand.vmem [shape: f32[2,1], index: 6, kind: output, shape index: {1}]  }
   0x1   :  { %v3335_v0 = vld [vmem:[%s4408_s1 + $0x38] sm:$0xff]  ;;  %v3334_v4 = vld [vmem:[%s4408_s1 + $0x30] sm:$0xff]  ;;  %v3333_v8 = vld [vmem:[%s4408_s1 + $0x28] sm:$0xff] }
   0x2   :  { %v3343_v1 = vld [vmem:[%s4408_s1 + $0x78] sm:$0xff]  ;;  %1925 = vmatpush.bf16.msra.mxu0 %v3335_v0  ;;  %v3342_v5 = vld [vmem:[%s4408_s1 + $0x70] sm:$0xff]  ;;  %v3341_v9 = vld [vmem:[%s4408_s1 + $0x68] sm:$0xff] }
   0x3   :  { %v3351_v2 = vld [vmem:[%s4408_s1 + $0xb8] sm:$0xff]  ;;  %1938 = vmatpush.bf16.msra.mxu1 %v3343_v1  ;;  %v3350_v6 = vld [vmem:[%s4408_s1 + $0xb0] sm:$0xff]  ;;  %v3349_v10 = vld [vmem:[%s4408_s1 + $0xa8] sm:$0xff] }
   0x4   :  { %v3359_v3 = vld [vmem:[%s4408_s1 + $0xf8] sm:$0xff]  ;;  %1951 = vmatpush.bf16.msra.mxu2 %v3351_v2  ;;  %v3358_v7 = vld [vmem:[%s4408_s1 + $0xf0] sm:$0xff]  ;;  %v3357_v11 = vld [vmem:[%s4408_s1 + $0xe8] sm:$0xff] }
   0x5   :  { %1964 = vmatpush.bf16.msra.mxu3 %v3359_v3  ;;  %v3332_v12 = vld [vmem:[%s4408_s1 + $0x20] sm:$0xff]  ;;  %v3331_v16 = vld [vmem:[%s4408_s1 + $0x18] sm:$0xff]  ;;  %v3330_v20 = vld [vmem:[%s4408_s1 + $0x10] sm:$0xff] }
   0x6   :  { %1926 = vmatpush.bf16.msra.mxu0 %v3334_v4  ;;  %v3340_v13 = vld [vmem:[%s4408_s1 + $0x60] sm:$0xff]  ;;  %v3339_v17 = vld [vmem:[%s4408_s1 + $0x58] sm:$0xff]  ;;  %v3338_v21 = vld [vmem:[%s4408_s1 + $0x50] sm:$0xff] }
   0x7   :  { %1939 = vmatpush.bf16.msra.mxu1 %v3342_v5  ;;  %v3348_v14 = vld [vmem:[%s4408_s1 + $0xa0] sm:$0xff]  ;;  %v3347_v18 = vld [vmem:[%s4408_s1 + $0x98] sm:$0xff]  ;;  %v3346_v23 = vld [vmem:[%s4408_s1 + $0x90] sm:$0xff] }
   0x8   :  { %1952 = vmatpush.bf16.msra.mxu2 %v3350_v6  ;;  %v3356_v15 = vld [vmem:[%s4408_s1 + $0xe0] sm:$0xff]  ;;  %v3355_v19 = vld [vmem:[%s4408_s1 + $0xd8] sm:$0xff]  ;;  %v3354_v24 = vld [vmem:[%s4408_s1 + $0xd0] sm:$0xff] }
   0x9   :  { %1965 = vmatpush.bf16.msra.mxu3 %v3358_v7  ;;  %v23_v22 = vld [vmem:[%s4407_s0] sm:$0xff] }
   0xa   :  { %1927 = vmatpush.bf16.msra.mxu0 %v3333_v8  ;;  %37 = vst [vmem:[#allocation1] ss:$4 sm:$0xff] %v23_v22 }
   0xb   :  { %1940 = vmatpush.bf16.msra.mxu1 %v3341_v9 }
   0xc   :  { %1953 = vmatpush.bf16.msra.mxu2 %v3349_v10 }
   0xd   :  { %1966 = vmatpush.bf16.msra.mxu3 %v3357_v11 }
   0xe   :  { %1928 = vmatpush.bf16.msra.mxu0 %v3332_v12 }
   0xf   :  { %1941 = vmatpush.bf16.msra.mxu1 %v3340_v13 }
  0x10   :  { %1954 = vmatpush.bf16.msra.mxu2 %v3348_v14 }
  0x11   :  { %1967 = vmatpush.bf16.msra.mxu3 %v3356_v15 }
  0x12   :  { %1929 = vmatpush.bf16.msra.mxu0 %v3331_v16 }
  0x13   :  { %1942 = vmatpush.bf16.msra.mxu1 %v3339_v17 }
  0x14   :  { %1955 = vmatpush.bf16.msra.mxu2 %v3347_v18 }
  0x15   :  { %1968 = vmatpush.bf16.msra.mxu3 %v3355_v19 }
  0x16   :  { %12 = vsyncpa [#allocation3], 0  ;;  %1930 = vmatpush.bf16.msra.mxu0 %v3330_v20  ;;  %v3329_v25 = vld [vmem:[%s4408_s1 + $0x8] sm:$0xff]  ;;  %v3328_v29 = vld [vmem:[%s4408_s1] sm:$0xff]  ;;  %s3590_s12 = smov [#allocation2]   ;;  %s2387_s16 = sshll.u32 %s4412_s5, 4  ;;  %s2388_s16 = int_to_ptr.hbm [resolvable:$true] %s2387_s16 }
  0x17   :  { %1943 = vmatpush.bf16.msra.mxu1 %v3338_v21  ;;  %v3337_v26 = vld [vmem:[%s4408_s1 + $0x48] sm:$0xff]  ;;  %v3336_v30 = vld [vmem:[%s4408_s1 + $0x40] sm:$0xff]  ;;  %v42_v32 = vld.sshfl [vmem:[#allocation1 + $0x10] sm:$0xff pattern:$0x73625140]  ;;  %s2385_s13 = sshll.u32 %s3590_s12, 4  ;;  %s2386_s13 = int_to_ptr.vmem [resolvable:$true] %s2385_s13 }
  0x18   :  { %1956 = vmatpush.bf16.msra.mxu2 %v3346_v23  ;;  %v3345_v27 = vld [vmem:[%s4408_s1 + $0x88] sm:$0xff]  ;;  %v3344_v31 = vld [vmem:[%s4408_s1 + $0x80] sm:$0xff]  ;;  %v25_v35 = vld [vmem:[%s4407_s0 + $0x10] sm:$0xff]  ;;  %v103_v43 = vpack.c.bf16 %v42_v32, %v42_v32  ;;  %vm2372_vm0 = vcmask 9216   ;;  %s3591_s17 = smov 126   ;;  %vm2378_vm1 = vcmask 1024  }
  0x19   :  { %1969 = vmatpush.bf16.msra.mxu3 %v3354_v24  ;;  %v3353_v28 = vld [vmem:[%s4408_s1 + $0xc8] sm:$0xff]  ;;  %v3352_v33 = vld [vmem:[%s4408_s1 + $0xc0] sm:$0xff]  ;;  %v43_v36 = vld.sshfl [vmem:[#allocation1 + $0x18] sm:$0xff pattern:$0x73625140] }
  0x1a   :  { %1931 = vmatpush.bf16.msra.mxu0 %v3329_v25  ;;  %v40_v34 = vld.sshfl [vmem:[#allocation1] sm:$0xff pattern:$0x73625140]  ;;  %v41_v37 = vld.sshfl [vmem:[#allocation1 + $0x8] sm:$0xff pattern:$0x73625140]  ;;  %v104_v45 = vpack.c.bf16 %v43_v36, %v43_v36 }
  0x1b   :  { %1944 = vmatpush.bf16.msra.mxu1 %v3337_v26  ;;  %v3367_v38 = vld [vmem:[%s4408_s1 + $0x138] sm:$0xff]  ;;  %48 = vst [vmem:[#allocation1] ss:$4 sm:$0xff] %v25_v35  ;;  %v24_v42 = vld [vmem:[%s4407_s0 + $0x8] sm:$0xff]  ;;  %v101_v44 = vpack.c.bf16 %v40_v34, %v40_v34  ;;  %v102_v46 = vpack.c.bf16 %v41_v37, %v41_v37  ;;  %v3366_v47 = vld [vmem:[%s4408_s1 + $0x130] sm:$0xff] }
  0x1c   :  { %1957 = vmatpush.bf16.msra.mxu2 %v3345_v27  ;;  %v3375_v39 = vld [vmem:[%s4408_s1 + $0x178] sm:$0xff]  ;;  %39 = vst [vmem:[#allocation1 + $0x20] ss:$4 sm:$0xff] %v24_v42  ;;  %v3374_v48 = vld [vmem:[%s4408_s1 + $0x170] sm:$0xff]  ;;  %v3365_v51 = vld [vmem:[%s4408_s1 + $0x128] sm:$0xff] }
  0x1d   :  { %1970 = vmatpush.bf16.msra.mxu3 %v3353_v28  ;;  %v3383_v40 = vld [vmem:[%s4408_s1 + $0x1b8] sm:$0xff]  ;;  %v3382_v49 = vld [vmem:[%s4408_s1 + $0x1b0] sm:$0xff]  ;;  %v3373_v52 = vld [vmem:[%s4408_s1 + $0x168] sm:$0xff] }
  0x1e   :  { %v3391_v41 = vld [vmem:[%s4408_s1 + $0x1f8] sm:$0xff]  ;;  %1932 = vmatpush.bf16.msra.mxu0 %v3328_v29  ;;  %v3390_v50 = vld [vmem:[%s4408_s1 + $0x1f0] sm:$0xff]  ;;  %v3381_v53 = vld [vmem:[%s4408_s1 + $0x1a8] sm:$0xff] }
  0x1f   :  { %1945 = vmatpush.bf16.msra.mxu1 %v3336_v30  ;;  %v3389_v54 = vld [vmem:[%s4408_s1 + $0x1e8] sm:$0xff]  ;;  %v3364_v55 = vld [vmem:[%s4408_s1 + $0x120] sm:$0xff]  ;;  %v26_v59 = vld [vmem:[%s4407_s0 + $0x18] sm:$0xff] }
  0x20   :  { %1958 = vmatpush.bf16.msra.mxu2 %v3344_v31  ;;  %v3372_v57 = vld [vmem:[%s4408_s1 + $0x160] sm:$0xff]  ;;  %v3363_v0 = vld [vmem:[%s4408_s1 + $0x118] sm:$0xff]  ;;  %v3362_v4 = vld [vmem:[%s4408_s1 + $0x110] sm:$0xff] }
  0x21   :  { %1971 = vmatpush.bf16.msra.mxu3 %v3352_v33  ;;  %1933 = vmatmul.bf16.vlgmr.msra.gmra.mxu0 %v101_v44  ;;  %v3380_v62 = vld [vmem:[%s4408_s1 + $0x1a0] sm:$0xff]  ;;  %v3371_v1 = vld [vmem:[%s4408_s1 + $0x158] sm:$0xff]  ;;  %v3370_v5 = vld [vmem:[%s4408_s1 + $0x150] sm:$0xff] }
  0x22   :  { %1977 = vmatpush.bf16.msrb.mxu0 %v3367_v38  ;;  %1946 = vmatmul.bf16.vlgmr.msra.gmra.mxu1 %v102_v46  ;;  %v3388_v63 = vld [vmem:[%s4408_s1 + $0x1e0] sm:$0xff]  ;;  %v3379_v2 = vld [vmem:[%s4408_s1 + $0x198] sm:$0xff]  ;;  %v3378_v6 = vld [vmem:[%s4408_s1 + $0x190] sm:$0xff] }
  0x23   :  { %1990 = vmatpush.bf16.msrb.mxu1 %v3375_v39  ;;  %1959 = vmatmul.bf16.vlgmr.msra.gmra.mxu2 %v103_v43  ;;  %v3771_v56 = vld.sshfl [vmem:[#allocation1 + $0x30] sm:$0xff pattern:$0x73625140]  ;;  %v3776_v58 = vld.sshfl [vmem:[#allocation1 + $0x20] sm:$0xff pattern:$0x73625140] }
  0x24   :  { %2003 = vmatpush.bf16.msrb.mxu2 %v3383_v40  ;;  %1972 = vmatmul.bf16.vlgmr.msra.gmra.mxu3 %v104_v45  ;;  %v3781_v60 = vld.sshfl [vmem:[#allocation1 + $0x38] sm:$0xff pattern:$0x73625140]  ;;  %v3783_v61 = vld.sshfl [vmem:[#allocation1 + $0x28] sm:$0xff pattern:$0x73625140]  ;;  %v107_v21 = vpack.c.bf16 %v3771_v56, %v3771_v56  ;;  %v105_v22 = vpack.c.bf16 %v3776_v58, %v3776_v58 }
  0x25   :  { %2016 = vmatpush.bf16.msrb.mxu3 %v3391_v41  ;;  %49 = vst [vmem:[#allocation1 + $0x20] ss:$4 sm:$0xff] %v26_v59  ;;  %v3387_v3 = vld [vmem:[%s4408_s1 + $0x1d8] sm:$0xff]  ;;  %v3386_v7 = vld [vmem:[%s4408_s1 + $0x1d0] sm:$0xff]  ;;  %v3361_v8 = vld [vmem:[%s4408_s1 + $0x108] sm:$0xff]  ;;  %v108_v25 = vpack.c.bf16 %v3781_v60, %v3781_v60  ;;  %v106_v26 = vpack.c.bf16 %v3783_v61, %v3783_v61 }
  0x26   :  { %1978 = vmatpush.bf16.msrb.mxu0 %v3366_v47  ;;  %v3369_v9 = vld [vmem:[%s4408_s1 + $0x148] sm:$0xff]  ;;  %v3360_v12 = vld [vmem:[%s4408_s1 + $0x100] sm:$0xff]  ;;  %v3399_v16 = vld [vmem:[%s4408_s1 + $0x238] sm:$0xff] }
  0x27   :  { %1991 = vmatpush.bf16.msrb.mxu1 %v3374_v48  ;;  %v3377_v10 = vld [vmem:[%s4408_s1 + $0x188] sm:$0xff]  ;;  %v3368_v13 = vld [vmem:[%s4408_s1 + $0x140] sm:$0xff]  ;;  %v3407_v17 = vld [vmem:[%s4408_s1 + $0x278] sm:$0xff] }
  0x28   :  { %2004 = vmatpush.bf16.msrb.mxu2 %v3382_v49  ;;  %v3385_v11 = vld [vmem:[%s4408_s1 + $0x1c8] sm:$0xff]  ;;  %v3376_v14 = vld [vmem:[%s4408_s1 + $0x180] sm:$0xff]  ;;  %v3415_v18 = vld [vmem:[%s4408_s1 + $0x2b8] sm:$0xff] }
  0x29   :  { %2017 = vmatpush.bf16.msrb.mxu3 %v3390_v50  ;;  %v3384_v15 = vld [vmem:[%s4408_s1 + $0x1c0] sm:$0xff]  ;;  %v3423_v19 = vld [vmem:[%s4408_s1 + $0x2f8] sm:$0xff]  ;;  %v3398_v20 = vld [vmem:[%s4408_s1 + $0x230] sm:$0xff] }
  0x2a   :  { %1979 = vmatpush.bf16.msrb.mxu0 %v3365_v51  ;;  %v3406_v23 = vld [vmem:[%s4408_s1 + $0x270] sm:$0xff]  ;;  %v3868_v27 = vld.sshfl [vmem:[#allocation1] sm:$0xff pattern:$0x73625140]  ;;  %v3397_v33 = vld [vmem:[%s4408_s1 + $0x228] sm:$0xff] }
  0x2b   :  { %1992 = vmatpush.bf16.msrb.mxu1 %v3373_v52  ;;  %v3414_v24 = vld [vmem:[%s4408_s1 + $0x2b0] sm:$0xff]  ;;  %v3872_v29 = vld.sshfl [vmem:[#allocation1 + $0x8] sm:$0xff pattern:$0x73625140]  ;;  %v27_v31 = vld [vmem:[%s4407_s0 + $0x20] sm:$0xff]  ;;  %v109_v61 = vpack.c.bf16 %v3868_v27, %v3868_v27 }
  0x2c   :  { %2005 = vmatpush.bf16.msrb.mxu2 %v3381_v53  ;;  %v3870_v28 = vld.sshfl [vmem:[#allocation1 + $0x10] sm:$0xff pattern:$0x73625140]  ;;  %v3880_v32 = vld.sshfl [vmem:[#allocation1 + $0x18] sm:$0xff pattern:$0x73625140] }
  0x2d   :  { %2018 = vmatpush.bf16.msrb.mxu3 %v3389_v54  ;;  %v3422_v30 = vld [vmem:[%s4408_s1 + $0x2f0] sm:$0xff]  ;;  %58 = vst [vmem:[#allocation1] ss:$4 sm:$0xff] %v27_v31  ;;  %v3405_v34 = vld [vmem:[%s4408_s1 + $0x268] sm:$0xff]  ;;  %v3396_v37 = vld [vmem:[%s4408_s1 + $0x220] sm:$0xff] }
  0x2e   :  { %1980 = vmatpush.bf16.msrb.mxu0 %v3364_v55  ;;  %v3413_v35 = vld [vmem:[%s4408_s1 + $0x2a8] sm:$0xff]  ;;  %v3404_v38 = vld [vmem:[%s4408_s1 + $0x260] sm:$0xff]  ;;  %v3395_v41 = vld [vmem:[%s4408_s1 + $0x218] sm:$0xff] }
  0x2f   :  { %1993 = vmatpush.bf16.msrb.mxu1 %v3372_v57  ;;  %v3421_v36 = vld [vmem:[%s4408_s1 + $0x2e8] sm:$0xff]  ;;  %v3412_v39 = vld [vmem:[%s4408_s1 + $0x2a0] sm:$0xff]  ;;  %v3403_v42 = vld [vmem:[%s4408_s1 + $0x258] sm:$0xff] }
  0x30   :  { %2006 = vmatpush.bf16.msrb.mxu2 %v3380_v62  ;;  %v3420_v40 = vld [vmem:[%s4408_s1 + $0x2e0] sm:$0xff]  ;;  %v3411_v43 = vld [vmem:[%s4408_s1 + $0x298] sm:$0xff]  ;;  %v3394_v45 = vld [vmem:[%s4408_s1 + $0x210] sm:$0xff]  ;;  %v111_v62 = vpack.c.bf16 %v3870_v28, %v3870_v28 }
  0x31   :  { %2019 = vmatpush.bf16.msrb.mxu3 %v3388_v63  ;;  %v3419_v44 = vld [vmem:[%s4408_s1 + $0x2d8] sm:$0xff]  ;;  %v3402_v46 = vld [vmem:[%s4408_s1 + $0x250] sm:$0xff]  ;;  %v3393_v49 = vld [vmem:[%s4408_s1 + $0x208] sm:$0xff] }
  0x32   :  { %1981 = vmatpush.bf16.msrb.mxu0 %v3363_v0  ;;  %v3410_v47 = vld [vmem:[%s4408_s1 + $0x290] sm:$0xff]  ;;  %v3401_v50 = vld [vmem:[%s4408_s1 + $0x248] sm:$0xff]  ;;  %v3392_v53 = vld [vmem:[%s4408_s1 + $0x200] sm:$0xff]  ;;  %v110_v0 = vpack.c.bf16 %v3872_v29, %v3872_v29 }
  0x33   :  { %1994 = vmatpush.bf16.msrb.mxu1 %v3371_v1  ;;  %v3418_v48 = vld [vmem:[%s4408_s1 + $0x2d0] sm:$0xff]  ;;  %v3409_v51 = vld [vmem:[%s4408_s1 + $0x288] sm:$0xff]  ;;  %v3400_v54 = vld [vmem:[%s4408_s1 + $0x240] sm:$0xff]  ;;  %v112_v1 = vpack.c.bf16 %v3880_v32, %v3880_v32 }
  0x34   :  { %2007 = vmatpush.bf16.msrb.mxu2 %v3379_v2  ;;  %v3417_v52 = vld [vmem:[%s4408_s1 + $0x2c8] sm:$0xff]  ;;  %v3408_v55 = vld [vmem:[%s4408_s1 + $0x280] sm:$0xff]  ;;  %v3431_v57 = vld [vmem:[%s4408_s1 + $0x338] sm:$0xff] }
  0x35   :  { %2020 = vmatpush.bf16.msrb.mxu3 %v3387_v3  ;;  %v3416_v56 = vld [vmem:[%s4408_s1 + $0x2c0] sm:$0xff]  ;;  %v3439_v58 = vld [vmem:[%s4408_s1 + $0x378] sm:$0xff]  ;;  %v3430_v63 = vld [vmem:[%s4408_s1 + $0x330] sm:$0xff] }
  0x36   :  { %1982 = vmatpush.bf16.msrb.mxu0 %v3362_v4  ;;  %v3447_v59 = vld [vmem:[%s4408_s1 + $0x3b8] sm:$0xff]  ;;  %v3438_v2 = vld [vmem:[%s4408_s1 + $0x370] sm:$0xff]  ;;  %v3983_v4 = vld.sshfl [vmem:[#allocation1 + $0x20] sm:$0xff pattern:$0x73625140] }
  0x37   :  { %1995 = vmatpush.bf16.msrb.mxu1 %v3370_v5  ;;  %v3455_v60 = vld [vmem:[%s4408_s1 + $0x3f8] sm:$0xff]  ;;  %v3446_v3 = vld [vmem:[%s4408_s1 + $0x3b0] sm:$0xff]  ;;  %v3433_v27 = vld [vmem:[%s4408_s1 + $0x348] sm:$0xff] }
  0x38   :  { %2008 = vmatpush.bf16.msrb.mxu2 %v3378_v6  ;;  %v3985_v5 = vld.sshfl [vmem:[#allocation1 + $0x30] sm:$0xff pattern:$0x73625140]  ;;  %v3987_v6 = vld.sshfl [vmem:[#allocation1 + $0x28] sm:$0xff pattern:$0x73625140] }
  0x39   :  { %2021 = vmatpush.bf16.msrb.mxu3 %v3386_v7  ;;  %v3454_v7 = vld [vmem:[%s4408_s1 + $0x3f0] sm:$0xff]  ;;  %v3441_v28 = vld [vmem:[%s4408_s1 + $0x388] sm:$0xff]  ;;  %v3432_v31 = vld [vmem:[%s4408_s1 + $0x340] sm:$0xff] }
  0x3a   :  { %1983 = vmatpush.bf16.msrb.mxu0 %v3361_v8  ;;  %v28_v8 = vld [vmem:[%s4407_s0 + $0x28] sm:$0xff]  ;;  %v3440_v32 = vld [vmem:[%s4408_s1 + $0x380] sm:$0xff] }
  0x3b   :  { %1996 = vmatpush.bf16.msrb.mxu1 %v3369_v9  ;;  %v3995_v9 = vld.sshfl [vmem:[#allocation1 + $0x38] sm:$0xff pattern:$0x73625140]  ;;  %v3449_v29 = vld [vmem:[%s4408_s1 + $0x3c8] sm:$0xff] }
  0x3c   :  { %2009 = vmatpush.bf16.msrb.mxu2 %v3377_v10  ;;  %59 = vst [vmem:[#allocation1 + $0x20] ss:$4 sm:$0xff] %v28_v8  ;;  %v3429_v10 = vld [vmem:[%s4408_s1 + $0x328] sm:$0xff]  ;;  %v60_v8 = vld.sshfl [vmem:[#allocation1] sm:$0xff pattern:$0x73625140] }
  0x3d   :  { %2022 = vmatpush.bf16.msrb.mxu3 %v3385_v11  ;;  %v3437_v11 = vld [vmem:[%s4408_s1 + $0x368] sm:$0xff] }
  0x3e   :  { %1984 = vmatpush.bf16.msrb.mxu0 %v3360_v12  ;;  %v3445_v12 = vld [vmem:[%s4408_s1 + $0x3a8] sm:$0xff] }
  0x3f   :  { %1997 = vmatpush.bf16.msrb.mxu1 %v3368_v13  ;;  %v3453_v13 = vld [vmem:[%s4408_s1 + $0x3e8] sm:$0xff] }
  0x40   :  { %2010 = vmatpush.bf16.msrb.mxu2 %v3376_v14  ;;  %v3428_v14 = vld [vmem:[%s4408_s1 + $0x320] sm:$0xff] }
  0x41   :  { %2023 = vmatpush.bf16.msrb.mxu3 %v3384_v15  ;;  %1985 = vmatmul.bf16.vlgmr.msrb.gmra.mxu0 %v105_v22  ;;  %v3436_v15 = vld [vmem:[%s4408_s1 + $0x360] sm:$0xff]  ;;  %v3426_v22 = vld [vmem:[%s4408_s1 + $0x310] sm:$0xff] }
  0x42   :  { %2029 = vmatpush.bf16.msra.mxu0 %v3399_v16  ;;  %1998 = vmatmul.bf16.vlgmr.msrb.gmra.mxu1 %v106_v26  ;;  %v3444_v16 = vld [vmem:[%s4408_s1 + $0x3a0] sm:$0xff]  ;;  %v3425_v26 = vld [vmem:[%s4408_s1 + $0x308] sm:$0xff] }
  0x43   :  { %2042 = vmatpush.bf16.msra.mxu1 %v3407_v17  ;;  %2011 = vmatmul.bf16.vlgmr.msrb.gmra.mxu2 %v107_v21  ;;  %v3452_v17 = vld [vmem:[%s4408_s1 + $0x3e0] sm:$0xff]  ;;  %v3451_v21 = vld [vmem:[%s4408_s1 + $0x3d8] sm:$0xff] }
  0x44   :  { %2055 = vmatpush.bf16.msra.mxu2 %v3415_v18  ;;  %2024 = vmatmul.bf16.vlgmr.msrb.gmra.mxu3 %v108_v25  ;;  %v3427_v18 = vld [vmem:[%s4408_s1 + $0x318] sm:$0xff]  ;;  %v3450_v25 = vld [vmem:[%s4408_s1 + $0x3d0] sm:$0xff] }
  0x45   :  { %2068 = vmatpush.bf16.msra.mxu3 %v3423_v19  ;;  %v3435_v19 = vld [vmem:[%s4408_s1 + $0x358] sm:$0xff] }
  0x46   :  { %2030 = vmatpush.bf16.msra.mxu0 %v3398_v20  ;;  %v3443_v20 = vld [vmem:[%s4408_s1 + $0x398] sm:$0xff] }
  0x47   :  { %2043 = vmatpush.bf16.msra.mxu1 %v3406_v23  ;;  %v3434_v23 = vld [vmem:[%s4408_s1 + $0x350] sm:$0xff] }
  0x48   :  { %2056 = vmatpush.bf16.msra.mxu2 %v3414_v24  ;;  %v3442_v24 = vld [vmem:[%s4408_s1 + $0x390] sm:$0xff] }
  0x49   :  { %2069 = vmatpush.bf16.msra.mxu3 %v3422_v30  ;;  %v3424_v30 = vld [vmem:[%s4408_s1 + $0x300] sm:$0xff] }
  0x4a   :  { %2031 = vmatpush.bf16.msra.mxu0 %v3397_v33  ;;  %v3448_v33 = vld [vmem:[%s4408_s1 + $0x3c0] sm:$0xff] }
  0x4b   :  { %2044 = vmatpush.bf16.msra.mxu1 %v3405_v34  ;;  %v3463_v34 = vld [vmem:[%s4408_s1 + $0x438] sm:$0xff] }
  0x4c   :  { %2057 = vmatpush.bf16.msra.mxu2 %v3413_v35  ;;  %v3471_v35 = vld [vmem:[%s4408_s1 + $0x478] sm:$0xff] }
  0x4d   :  { %2070 = vmatpush.bf16.msra.mxu3 %v3421_v36  ;;  %v3479_v36 = vld [vmem:[%s4408_s1 + $0x4b8] sm:$0xff] }
  0x4e   :  { %2032 = vmatpush.bf16.msra.mxu0 %v3396_v37  ;;  %v3487_v37 = vld [vmem:[%s4408_s1 + $0x4f8] sm:$0xff] }
  0x4f   :  { %2045 = vmatpush.bf16.msra.mxu1 %v3404_v38  ;;  %v113_v38 = vpack.c.bf16 %v3983_v4, %v3983_v4  ;;  %v3472_v4 = vld [vmem:[%s4408_s1 + $0x480] sm:$0xff] }
  0x50   :  { %2058 = vmatpush.bf16.msra.mxu2 %v3412_v39  ;;  %v115_v39 = vpack.c.bf16 %v3985_v5, %v3985_v5  ;;  %v3480_v5 = vld [vmem:[%s4408_s1 + $0x4c0] sm:$0xff] }
  0x51   :  { %2071 = vmatpush.bf16.msra.mxu3 %v3420_v40  ;;  %v114_v40 = vpack.c.bf16 %v3987_v6, %v3987_v6  ;;  %v3495_v6 = vld [vmem:[%s4408_s1 + $0x538] sm:$0xff] }
  0x52   :  { %2033 = vmatpush.bf16.msra.mxu0 %v3395_v41  ;;  %v116_v41 = vpack.c.bf16 %v3995_v9, %v3995_v9  ;;  %v62_v9 = vld.sshfl [vmem:[#allocation1 + $0x10] sm:$0xff pattern:$0x73625140] }
  0x53   :  { %2046 = vmatpush.bf16.msra.mxu1 %v3403_v42  ;;  %v3462_v42 = vld [vmem:[%s4408_s1 + $0x430] sm:$0xff] }
  0x54   :  { %2059 = vmatpush.bf16.msra.mxu2 %v3411_v43  ;;  %v3470_v43 = vld [vmem:[%s4408_s1 + $0x470] sm:$0xff] }
  0x55   :  { %2072 = vmatpush.bf16.msra.mxu3 %v3419_v44  ;;  %v3478_v44 = vld [vmem:[%s4408_s1 + $0x4b0] sm:$0xff] }
  0x56   :  { %2034 = vmatpush.bf16.msra.mxu0 %v3394_v45  ;;  %v3486_v45 = vld [vmem:[%s4408_s1 + $0x4f0] sm:$0xff] }
  0x57   :  { %2047 = vmatpush.bf16.msra.mxu1 %v3402_v46  ;;  %v3461_v46 = vld [vmem:[%s4408_s1 + $0x428] sm:$0xff] }
  0x58   :  { %2060 = vmatpush.bf16.msra.mxu2 %v3410_v47  ;;  %v3469_v47 = vld [vmem:[%s4408_s1 + $0x468] sm:$0xff] }
  0x59   :  { %2073 = vmatpush.bf16.msra.mxu3 %v3418_v48  ;;  %v3477_v48 = vld [vmem:[%s4408_s1 + $0x4a8] sm:$0xff] }
  0x5a   :  { %2035 = vmatpush.bf16.msra.mxu0 %v3393_v49  ;;  %v3485_v49 = vld [vmem:[%s4408_s1 + $0x4e8] sm:$0xff] }
  0x5b   :  { %2048 = vmatpush.bf16.msra.mxu1 %v3401_v50  ;;  %v3460_v50 = vld [vmem:[%s4408_s1 + $0x420] sm:$0xff] }
  0x5c   :  { %2061 = vmatpush.bf16.msra.mxu2 %v3409_v51  ;;  %v3468_v51 = vld [vmem:[%s4408_s1 + $0x460] sm:$0xff] }
  0x5d   :  { %2074 = vmatpush.bf16.msra.mxu3 %v3417_v52  ;;  %v3476_v52 = vld [vmem:[%s4408_s1 + $0x4a0] sm:$0xff] }
  0x5e   :  { %2036 = vmatpush.bf16.msra.mxu0 %v3392_v53  ;;  %v3484_v53 = vld [vmem:[%s4408_s1 + $0x4e0] sm:$0xff] }
  0x5f   :  { %2049 = vmatpush.bf16.msra.mxu1 %v3400_v54  ;;  %v3459_v54 = vld [vmem:[%s4408_s1 + $0x418] sm:$0xff] }
  0x60   :  { %2062 = vmatpush.bf16.msra.mxu2 %v3408_v55  ;;  %v3467_v55 = vld [vmem:[%s4408_s1 + $0x458] sm:$0xff] }
  0x61   :  { %2075 = vmatpush.bf16.msra.mxu3 %v3416_v56  ;;  %2037 = vmatmul.bf16.vlgmr.msra.gmra.mxu0 %v109_v61  ;;  %v3475_v56 = vld [vmem:[%s4408_s1 + $0x498] sm:$0xff]  ;;  %v3482_v61 = vld [vmem:[%s4408_s1 + $0x4d0] sm:$0xff] }
  0x62   :  { %2081 = vmatpush.bf16.msrb.mxu0 %v3431_v57  ;;  %2050 = vmatmul.bf16.vlgmr.msra.gmra.mxu1 %v110_v0  ;;  %v3483_v57 = vld [vmem:[%s4408_s1 + $0x4d8] sm:$0xff]  ;;  %v3473_v0 = vld [vmem:[%s4408_s1 + $0x488] sm:$0xff] }
  0x63   :  { %2094 = vmatpush.bf16.msrb.mxu1 %v3439_v58  ;;  %2063 = vmatmul.bf16.vlgmr.msra.gmra.mxu2 %v111_v62  ;;  %v3458_v58 = vld [vmem:[%s4408_s1 + $0x410] sm:$0xff]  ;;  %v3457_v62 = vld [vmem:[%s4408_s1 + $0x408] sm:$0xff] }
  0x64   :  { %2107 = vmatpush.bf16.msrb.mxu2 %v3447_v59  ;;  %2076 = vmatmul.bf16.vlgmr.msra.gmra.mxu3 %v112_v1  ;;  %v3466_v59 = vld [vmem:[%s4408_s1 + $0x450] sm:$0xff]  ;;  %v3481_v1 = vld [vmem:[%s4408_s1 + $0x4c8] sm:$0xff] }
  0x65   :  { %2120 = vmatpush.bf16.msrb.mxu3 %v3455_v60  ;;  %v3474_v60 = vld [vmem:[%s4408_s1 + $0x490] sm:$0xff] }
  0x66   :  { %2082 = vmatpush.bf16.msrb.mxu0 %v3430_v63  ;;  %v3465_v63 = vld [vmem:[%s4408_s1 + $0x448] sm:$0xff] }
  0x67   :  { %2095 = vmatpush.bf16.msrb.mxu1 %v3438_v2  ;;  %v3456_v2 = vld [vmem:[%s4408_s1 + $0x400] sm:$0xff] }
  0x68   :  { %2108 = vmatpush.bf16.msrb.mxu2 %v3446_v3  ;;  %v3464_v3 = vld [vmem:[%s4408_s1 + $0x440] sm:$0xff] }
  0x69   :  { %2121 = vmatpush.bf16.msrb.mxu3 %v3454_v7  ;;  %v3503_v7 = vld [vmem:[%s4408_s1 + $0x578] sm:$0xff] }
  0x6a   :  { %2083 = vmatpush.bf16.msrb.mxu0 %v3429_v10  ;;  %v61_v10 = vld.sshfl [vmem:[#allocation1 + $0x8] sm:$0xff pattern:$0x73625140] }
  0x6b   :  { %2096 = vmatpush.bf16.msrb.mxu1 %v3437_v11  ;;  %v63_v11 = vld.sshfl [vmem:[#allocation1 + $0x18] sm:$0xff pattern:$0x73625140] }
  0x6c   :  { %2109 = vmatpush.bf16.msrb.mxu2 %v3445_v12  ;;  %v3511_v12 = vld [vmem:[%s4408_s1 + $0x5b8] sm:$0xff] }
  0x6d   :  { %2122 = vmatpush.bf16.msrb.mxu3 %v3453_v13  ;;  %v3519_v13 = vld [vmem:[%s4408_s1 + $0x5f8] sm:$0xff] }
  0x6e   :  { %2084 = vmatpush.bf16.msrb.mxu0 %v3428_v14  ;;  %v117_v14 = vpack.c.bf16 %v60_v8, %v60_v8  ;;  %v3526_v8 = vld [vmem:[%s4408_s1 + $0x630] sm:$0xff] }
  0x6f   :  { %2097 = vmatpush.bf16.msrb.mxu1 %v3436_v15  ;;  %v119_v15 = vpack.c.bf16 %v62_v9, %v62_v9  ;;  %v3534_v9 = vld [vmem:[%s4408_s1 + $0x670] sm:$0xff] }
  0x70   :  { %2110 = vmatpush.bf16.msrb.mxu2 %v3444_v16  ;;  %v118_v16 = vpack.c.bf16 %v61_v10, %v61_v10  ;;  %v3542_v10 = vld [vmem:[%s4408_s1 + $0x6b0] sm:$0xff] }
  0x71   :  { %2123 = vmatpush.bf16.msrb.mxu3 %v3452_v17  ;;  %v120_v17 = vpack.c.bf16 %v63_v11, %v63_v11  ;;  %v3550_v11 = vld [vmem:[%s4408_s1 + $0x6f0] sm:$0xff] }
  0x72   :  { %2085 = vmatpush.bf16.msrb.mxu0 %v3427_v18  ;;  %v3494_v18 = vld [vmem:[%s4408_s1 + $0x530] sm:$0xff] }
  0x73   :  { %2098 = vmatpush.bf16.msrb.mxu1 %v3435_v19  ;;  %v3502_v19 = vld [vmem:[%s4408_s1 + $0x570] sm:$0xff] }
  0x74   :  { %2111 = vmatpush.bf16.msrb.mxu2 %v3443_v20  ;;  %v3510_v20 = vld [vmem:[%s4408_s1 + $0x5b0] sm:$0xff] }
  0x75   :  { %2124 = vmatpush.bf16.msrb.mxu3 %v3451_v21  ;;  %v3518_v21 = vld [vmem:[%s4408_s1 + $0x5f0] sm:$0xff] }
  0x76   :  { %2086 = vmatpush.bf16.msrb.mxu0 %v3426_v22  ;;  %v3493_v22 = vld [vmem:[%s4408_s1 + $0x528] sm:$0xff] }
  0x77   :  { %2099 = vmatpush.bf16.msrb.mxu1 %v3434_v23  ;;  %v3501_v23 = vld [vmem:[%s4408_s1 + $0x568] sm:$0xff] }
  0x78   :  { %2112 = vmatpush.bf16.msrb.mxu2 %v3442_v24  ;;  %v3562_v24 = vld [vmem:[%s4409_s2] ss:$0 sm:$0xff] }
  0x79   :  { %2125 = vmatpush.bf16.msrb.mxu3 %v3450_v25  ;;  %v3509_v25 = vld [vmem:[%s4408_s1 + $0x5a8] sm:$0xff] }
  0x7a   :  { %2087 = vmatpush.bf16.msrb.mxu0 %v3425_v26  ;;  %v3517_v26 = vld [vmem:[%s4408_s1 + $0x5e8] sm:$0xff] }
  0x7b   :  { %2100 = vmatpush.bf16.msrb.mxu1 %v3433_v27 }
  0x7c   :  { %2113 = vmatpush.bf16.msrb.mxu2 %v3441_v28  ;;  %v3492_v28 = vld [vmem:[%s4408_s1 + $0x520] sm:$0xff] }
  0x7d   :  { %2126 = vmatpush.bf16.msrb.mxu3 %v3449_v29  ;;  %v3500_v29 = vld [vmem:[%s4408_s1 + $0x560] sm:$0xff] }
  0x7e   :  { %2088 = vmatpush.bf16.msrb.mxu0 %v3424_v30 }
  0x7f   :  { %2101 = vmatpush.bf16.msrb.mxu1 %v3432_v31 }
  0x80   :  { %2114 = vmatpush.bf16.msrb.mxu2 %v3440_v32  ;;  %v3508_v32 = vld [vmem:[%s4408_s1 + $0x5a0] sm:$0xff] }
  0x81   :  { %2127 = vmatpush.bf16.msrb.mxu3 %v3448_v33  ;;  %2089 = vmatmul.bf16.vlgmr.msrb.gmra.mxu0 %v113_v38  ;;  %v3516_v33 = vld [vmem:[%s4408_s1 + $0x5e0] sm:$0xff]  ;;  %v3515_v38 = vld [vmem:[%s4408_s1 + $0x5d8] sm:$0xff] }
  0x82   :  { %2133 = vmatpush.bf16.msra.mxu0 %v3463_v34  ;;  %2102 = vmatmul.bf16.vlgmr.msrb.gmra.mxu1 %v114_v40 }
  0x83   :  { %2146 = vmatpush.bf16.msra.mxu1 %v3471_v35  ;;  %2115 = vmatmul.bf16.vlgmr.msrb.gmra.mxu2 %v115_v39  ;;  %v3491_v35 = vld [vmem:[%s4408_s1 + $0x518] sm:$0xff] }
  0x84   :  { %2159 = vmatpush.bf16.msra.mxu2 %v3479_v36  ;;  %2128 = vmatmul.bf16.vlgmr.msrb.gmra.mxu3 %v116_v41  ;;  %v3499_v36 = vld [vmem:[%s4408_s1 + $0x558] sm:$0xff] }
  0x85   :  { %2172 = vmatpush.bf16.msra.mxu3 %v3487_v37  ;;  %v3507_v37 = vld [vmem:[%s4408_s1 + $0x598] sm:$0xff] }
  0x86   :  { %2134 = vmatpush.bf16.msra.mxu0 %v3462_v42 }
  0x87   :  { %2147 = vmatpush.bf16.msra.mxu1 %v3470_v43  ;;  %v3490_v43 = vld [vmem:[%s4408_s1 + $0x510] sm:$0xff] }
  0x88   :  { %2160 = vmatpush.bf16.msra.mxu2 %v3478_v44  ;;  %v3498_v44 = vld [vmem:[%s4408_s1 + $0x550] sm:$0xff] }
  0x89   :  { %2173 = vmatpush.bf16.msra.mxu3 %v3486_v45 }
  0x8a   :  { %2135 = vmatpush.bf16.msra.mxu0 %v3461_v46 }
  0x8b   :  { %2148 = vmatpush.bf16.msra.mxu1 %v3469_v47  ;;  %v3506_v47 = vld [vmem:[%s4408_s1 + $0x590] sm:$0xff] }
  0x8c   :  { %2161 = vmatpush.bf16.msra.mxu2 %v3477_v48  ;;  %v3514_v48 = vld [vmem:[%s4408_s1 + $0x5d0] sm:$0xff] }
  0x8d   :  { %2174 = vmatpush.bf16.msra.mxu3 %v3485_v49  ;;  %v29_v49 = vld [vmem:[%s4407_s0 + $0x30] sm:$0xff] }
  0x8e   :  { %2136 = vmatpush.bf16.msra.mxu0 %v3460_v50  ;;  %v3489_v50 = vld [vmem:[%s4408_s1 + $0x508] sm:$0xff]  ;;  %68 = vst [vmem:[#allocation1] ss:$4 sm:$0xff] %v29_v49 }
  0x8f   :  { %2149 = vmatpush.bf16.msra.mxu1 %v3468_v51  ;;  %v3497_v51 = vld [vmem:[%s4408_s1 + $0x548] sm:$0xff] }
  0x90   :  { %2162 = vmatpush.bf16.msra.mxu2 %v3476_v52  ;;  %v3505_v52 = vld [vmem:[%s4408_s1 + $0x588] sm:$0xff] }
  0x91   :  { %2175 = vmatpush.bf16.msra.mxu3 %v3484_v53  ;;  %v3513_v53 = vld [vmem:[%s4408_s1 + $0x5c8] sm:$0xff] }
  0x92   :  { %2137 = vmatpush.bf16.msra.mxu0 %v3459_v54 }
  0x93   :  { %2150 = vmatpush.bf16.msra.mxu1 %v3467_v55 }
  0x94   :  { %2163 = vmatpush.bf16.msra.mxu2 %v3475_v56  ;;  %v3488_v56 = vld [vmem:[%s4408_s1 + $0x500] sm:$0xff] }
  0x95   :  { %2176 = vmatpush.bf16.msra.mxu3 %v3483_v57  ;;  %v3496_v57 = vld [vmem:[%s4408_s1 + $0x540] sm:$0xff]  ;;  %v70_v49 = vld.sshfl [vmem:[#allocation1 + $0x8] sm:$0xff pattern:$0x73625140] }
  0x96   :  { %2138 = vmatpush.bf16.msra.mxu0 %v3458_v58  ;;  %v3504_v58 = vld [vmem:[%s4408_s1 + $0x580] sm:$0xff] }
  0x97   :  { %2151 = vmatpush.bf16.msra.mxu1 %v3466_v59  ;;  %v3512_v59 = vld [vmem:[%s4408_s1 + $0x5c0] sm:$0xff] }
  0x98   :  { %2164 = vmatpush.bf16.msra.mxu2 %v3474_v60  ;;  %v3527_v60 = vld [vmem:[%s4408_s1 + $0x638] sm:$0xff] }
  0x99   :  { %2177 = vmatpush.bf16.msra.mxu3 %v3482_v61  ;;  %v3535_v61 = vld [vmem:[%s4408_s1 + $0x678] sm:$0xff] }
  0x9a   :  { %2139 = vmatpush.bf16.msra.mxu0 %v3457_v62  ;;  %v64_v62 = vld.sshfl [vmem:[#allocation1 + $0x20] sm:$0xff pattern:$0x73625140] }
  0x9b   :  { %2152 = vmatpush.bf16.msra.mxu1 %v3465_v63  ;;  %v66_v63 = vld.sshfl [vmem:[#allocation1 + $0x30] sm:$0xff pattern:$0x73625140] }
  0x9c   :  { %2165 = vmatpush.bf16.msra.mxu2 %v3473_v0  ;;  %v65_v0 = vld.sshfl [vmem:[#allocation1 + $0x28] sm:$0xff pattern:$0x73625140] }
  0x9d   :  { %2178 = vmatpush.bf16.msra.mxu3 %v3481_v1  ;;  %v67_v1 = vld.sshfl [vmem:[#allocation1 + $0x38] sm:$0xff pattern:$0x73625140] }
  0x9e   :  { %2140 = vmatpush.bf16.msra.mxu0 %v3456_v2  ;;  %v1934_v27 = vpop.f32.mrf.mxu0  ;;  %v3543_v2 = vld [vmem:[%s4408_s1 + $0x6b8] sm:$0xff] }
  0x9f   :  { %2153 = vmatpush.bf16.msra.mxu1 %v3464_v3  ;;  %v1935_v30 = vadd.f32 %v3562_v24, %v1934_v27  ;;  %v1947_v31 = vpop.f32.mrf.mxu1  ;;  %v3551_v3 = vld [vmem:[%s4408_s1 + $0x6f8] sm:$0xff] }
  0xa0   :  { %2166 = vmatpush.bf16.msra.mxu2 %v3472_v4  ;;  %v121_v4 = vpack.c.bf16 %v64_v62, %v64_v62  ;;  %v3523_v24 = vld [vmem:[%s4408_s1 + $0x618] sm:$0xff] }
  0xa1   :  { %2179 = vmatpush.bf16.msra.mxu3 %v3480_v5  ;;  %2141 = vmatmul.bf16.vlgmr.msra.gmra.mxu0 %v117_v14  ;;  %v1948_v34 = vadd.f32 %v1947_v31, %v1935_v30  ;;  %v123_v5 = vpack.c.bf16 %v66_v63, %v66_v63  ;;  %v3541_v14 = vld [vmem:[%s4408_s1 + $0x6a8] sm:$0xff]  ;;  %v3547_v27 = vld [vmem:[%s4408_s1 + $0x6d8] sm:$0xff] }
  0xa2   :  { %2185 = vmatpush.bf16.msrb.mxu0 %v3495_v6  ;;  %2154 = vmatmul.bf16.vlgmr.msra.gmra.mxu1 %v118_v16  ;;  %v122_v6 = vpack.c.bf16 %v65_v0, %v65_v0 }
  0xa3   :  { %2198 = vmatpush.bf16.msrb.mxu1 %v3503_v7  ;;  %2167 = vmatmul.bf16.vlgmr.msra.gmra.mxu2 %v119_v15  ;;  %v124_v7 = vpack.c.bf16 %v67_v1, %v67_v1  ;;  %v3549_v15 = vld [vmem:[%s4408_s1 + $0x6e8] sm:$0xff] }
  0xa4   :  { %2211 = vmatpush.bf16.msrb.mxu2 %v3511_v12  ;;  %2180 = vmatmul.bf16.vlgmr.msra.gmra.mxu3 %v120_v17  ;;  %v3525_v12 = vld [vmem:[%s4408_s1 + $0x628] sm:$0xff]  ;;  %v3524_v17 = vld [vmem:[%s4408_s1 + $0x620] sm:$0xff] }
  0xa5   :  { %2224 = vmatpush.bf16.msrb.mxu3 %v3519_v13  ;;  %v3533_v13 = vld [vmem:[%s4408_s1 + $0x668] sm:$0xff] }
  0xa6   :  { %2186 = vmatpush.bf16.msrb.mxu0 %v3494_v18  ;;  %v1960_v39 = vpop.f32.mrf.mxu2  ;;  %v1936_v42 = vpop.f32.mrf.mxu0  ;;  %v3532_v18 = vld [vmem:[%s4408_s1 + $0x660] sm:$0xff] }
  0xa7   :  { %2199 = vmatpush.bf16.msrb.mxu1 %v3502_v19  ;;  %v1961_v40 = vadd.f32 %v1960_v39, %v1948_v34  ;;  %v1973_v41 = vpop.f32.mrf.mxu3  ;;  %v1949_v46 = vpop.f32.mrf.mxu1  ;;  %v3529_v39 = vld [vmem:[%s4408_s1 + $0x648] sm:$0xff] }
  0xa8   :  { %2212 = vmatpush.bf16.msrb.mxu2 %v3510_v20  ;;  %v3536_v46 = vld [vmem:[%s4408_s1 + $0x680] sm:$0xff] }
  0xa9   :  { %2225 = vmatpush.bf16.msrb.mxu3 %v3518_v21  ;;  %v4242_v45 = vadd.f32 %v1973_v41, %v1961_v40  ;;  %v3540_v21 = vld [vmem:[%s4408_s1 + $0x6a0] sm:$0xff]  ;;  %v3537_v40 = vld [vmem:[%s4408_s1 + $0x688] sm:$0xff] }
  0xaa   :  { %2187 = vmatpush.bf16.msrb.mxu0 %v3493_v22  ;;  %v3548_v22 = vld [vmem:[%s4408_s1 + $0x6e0] sm:$0xff]  ;;  %v3545_v41 = vld [vmem:[%s4408_s1 + $0x6c8] sm:$0xff] }
  0xab   :  { %2200 = vmatpush.bf16.msrb.mxu1 %v3501_v23 }
  0xac   :  { %2213 = vmatpush.bf16.msrb.mxu2 %v3509_v25  ;;  %v3531_v25 = vld [vmem:[%s4408_s1 + $0x658] sm:$0xff] }
  0xad   :  { %2226 = vmatpush.bf16.msrb.mxu3 %v3517_v26  ;;  %v3539_v26 = vld [vmem:[%s4408_s1 + $0x698] sm:$0xff] }
  0xae   :  { %2188 = vmatpush.bf16.msrb.mxu0 %v3492_v28  ;;  %v1962_v54 = vpop.f32.mrf.mxu2 }
  0xaf   :  { %2201 = vmatpush.bf16.msrb.mxu1 %v3500_v29  ;;  %v1975_v55 = vpop.f32.mrf.mxu3 }
  0xb0   :  { %2214 = vmatpush.bf16.msrb.mxu2 %v3508_v32  ;;  %v3522_v32 = vld [vmem:[%s4408_s1 + $0x610] sm:$0xff] }
  0xb1   :  { %2227 = vmatpush.bf16.msrb.mxu3 %v3516_v33  ;;  %v3530_v33 = vld [vmem:[%s4408_s1 + $0x650] sm:$0xff] }
  0xb2   :  { %2189 = vmatpush.bf16.msrb.mxu0 %v3491_v35 }
  0xb3   :  { %2202 = vmatpush.bf16.msrb.mxu1 %v3499_v36  ;;  %v3538_v36 = vld [vmem:[%s4408_s1 + $0x690] sm:$0xff] }
  0xb4   :  { %2215 = vmatpush.bf16.msrb.mxu2 %v3507_v37  ;;  %v3546_v37 = vld [vmem:[%s4408_s1 + $0x6d0] sm:$0xff] }
  0xb5   :  { %2228 = vmatpush.bf16.msrb.mxu3 %v3515_v38  ;;  %v3521_v38 = vld [vmem:[%s4408_s1 + $0x608] sm:$0xff] }
  0xb6   :  { %2190 = vmatpush.bf16.msrb.mxu0 %v3490_v43  ;;  %v3520_v43 = vld [vmem:[%s4408_s1 + $0x600] sm:$0xff] }
  0xb7   :  { %2203 = vmatpush.bf16.msrb.mxu1 %v3498_v44 }
  0xb8   :  { %2216 = vmatpush.bf16.msrb.mxu2 %v3506_v47  ;;  %v3544_v47 = vld [vmem:[%s4408_s1 + $0x6c0] sm:$0xff] }
  0xb9   :  { %2229 = vmatpush.bf16.msrb.mxu3 %v3514_v48  ;;  %v69_v48 = vld.sshfl [vmem:[#allocation1] sm:$0xff pattern:$0x73625140] }
  0xba   :  { %2191 = vmatpush.bf16.msrb.mxu0 %v3489_v50  ;;  %v71_v50 = vld.sshfl [vmem:[#allocation1 + $0x10] sm:$0xff pattern:$0x73625140] }
  0xbb   :  { %2204 = vmatpush.bf16.msrb.mxu1 %v3497_v51  ;;  %v72_v51 = vld.sshfl [vmem:[#allocation1 + $0x18] sm:$0xff pattern:$0x73625140]  ;;  %v127_v54 = vpack.c.bf16 %v71_v50, %v71_v50 }
  0xbc   :  { %2217 = vmatpush.bf16.msrb.mxu2 %v3505_v52  ;;  %v125_v52 = vpack.c.bf16 %v69_v48, %v69_v48  ;;  %v128_v55 = vpack.c.bf16 %v72_v51, %v72_v51 }
  0xbd   :  { %2230 = vmatpush.bf16.msrb.mxu3 %v3513_v53  ;;  %v126_v53 = vpack.c.bf16 %v70_v49, %v70_v49 }
  0xbe   :  { %2192 = vmatpush.bf16.msrb.mxu0 %v3488_v56  ;;  %v1986_v16 = vpop.f32.mrf.mxu0 }
  0xbf   :  { %2205 = vmatpush.bf16.msrb.mxu1 %v3496_v57  ;;  %v1987_v19 = vadd.f32 %v1986_v16, %v4242_v45  ;;  %v1999_v20 = vpop.f32.mrf.mxu1  ;;  %v3528_v45 = vld [vmem:[%s4408_s1 + $0x640] sm:$0xff] }
  0xc0   :  { %2218 = vmatpush.bf16.msrb.mxu2 %v3504_v58 }
  0xc1   :  { %2231 = vmatpush.bf16.msrb.mxu3 %v3512_v59  ;;  %2193 = vmatmul.bf16.vlgmr.msrb.gmra.mxu0 %v121_v4  ;;  %v2000_v23 = vadd.f32 %v1999_v20, %v1987_v19  ;;  %v3559_v20 = vld [vmem:[%s4410_s3 + $0x38] sm:$0xff] }
  0xc2   :  { %2237 = vmatpush.bf16.msra.mxu0 %v3527_v60  ;;  %2206 = vmatmul.bf16.vlgmr.msrb.gmra.mxu1 %v122_v6 }
  0xc3   :  { %2250 = vmatpush.bf16.msra.mxu1 %v3535_v61  ;;  %2219 = vmatmul.bf16.vlgmr.msrb.gmra.mxu2 %v123_v5 }
  0xc4   :  { %2263 = vmatpush.bf16.msra.mxu2 %v3543_v2  ;;  %2232 = vmatmul.bf16.vlgmr.msrb.gmra.mxu3 %v124_v7 }
  0xc5   :  { %2276 = vmatpush.bf16.msra.mxu3 %v3551_v3 }
  0xc6   :  { %2238 = vmatpush.bf16.msra.mxu0 %v3526_v8  ;;  %v2012_v28 = vpop.f32.mrf.mxu2  ;;  %v1988_v31 = vpop.f32.mrf.mxu0 }
  0xc7   :  { %2251 = vmatpush.bf16.msra.mxu1 %v3534_v9  ;;  %v2013_v29 = vadd.f32 %v2012_v28, %v2000_v23  ;;  %v2025_v30 = vpop.f32.mrf.mxu3  ;;  %v2001_v35 = vpop.f32.mrf.mxu1  ;;  %v3558_v23 = vld [vmem:[%s4410_s3 + $0x30] sm:$0xff]  ;;  %v3555_v28 = vld [vmem:[%s4410_s3 + $0x18] sm:$0xff] }
  0xc8   :  { %2264 = vmatpush.bf16.msra.mxu2 %v3542_v10 }
  0xc9   :  { %2277 = vmatpush.bf16.msra.mxu3 %v3550_v11  ;;  %v2026_v34 = vadd.f32 %v2025_v30, %v2013_v29  ;;  %v3554_v30 = vld [vmem:[%s4410_s3 + $0x10] sm:$0xff] }
  0xca   :  { %2239 = vmatpush.bf16.msra.mxu0 %v3525_v12 }
  0xcb   :  { %2252 = vmatpush.bf16.msra.mxu1 %v3533_v13 }
  0xcc   :  { %2265 = vmatpush.bf16.msra.mxu2 %v3541_v14 }
  0xcd   :  { %2278 = vmatpush.bf16.msra.mxu3 %v3549_v15 }
  0xce   :  { %2240 = vmatpush.bf16.msra.mxu0 %v3524_v17  ;;  %v2014_v42 = vpop.f32.mrf.mxu2 }
  0xcf   :  { %2253 = vmatpush.bf16.msra.mxu1 %v3532_v18  ;;  %v2027_v44 = vpop.f32.mrf.mxu3 }
  0xd0   :  { %2266 = vmatpush.bf16.msra.mxu2 %v3540_v21 }
  0xd1   :  { %2279 = vmatpush.bf16.msra.mxu3 %v3548_v22 }
  0xd2   :  { %2241 = vmatpush.bf16.msra.mxu0 %v3523_v24  ;;  %v3557_v24 = vld [vmem:[%s4410_s3 + $0x28] sm:$0xff] }
  0xd3   :  { %2254 = vmatpush.bf16.msra.mxu1 %v3531_v25 }
  0xd4   :  { %2267 = vmatpush.bf16.msra.mxu2 %v3539_v26 }
  0xd5   :  { %2280 = vmatpush.bf16.msra.mxu3 %v3547_v27  ;;  %v3556_v27 = vld [vmem:[%s4410_s3 + $0x20] sm:$0xff] }
  0xd6   :  { %2242 = vmatpush.bf16.msra.mxu0 %v3522_v32  ;;  %v3553_v32 = vld [vmem:[%s4410_s3 + $0x8] sm:$0xff] }
  0xd7   :  { %2255 = vmatpush.bf16.msra.mxu1 %v3530_v33 }
  0xd8   :  { %2268 = vmatpush.bf16.msra.mxu2 %v3538_v36 }
  0xd9   :  { %2281 = vmatpush.bf16.msra.mxu3 %v3546_v37  ;;  %v3552_v37 = vld [vmem:[%s4410_s3] sm:$0xff] }
  0xda   :  { %2243 = vmatpush.bf16.msra.mxu0 %v3521_v38 }
  0xdb   :  { %2256 = vmatpush.bf16.msra.mxu1 %v3529_v39 }
  0xdc   :  { %2269 = vmatpush.bf16.msra.mxu2 %v3537_v40 }
  0xdd   :  { %2282 = vmatpush.bf16.msra.mxu3 %v3545_v41 }
  0xde   :  { %2244 = vmatpush.bf16.msra.mxu0 %v3520_v43  ;;  %v2038_v56 = vpop.f32.mrf.mxu0 }
  0xdf   :  { %2257 = vmatpush.bf16.msra.mxu1 %v3528_v45  ;;  %v2039_v57 = vadd.f32 %v2038_v56, %v2026_v34  ;;  %v2051_v58 = vpop.f32.mrf.mxu1 }
  0xe0   :  { %2270 = vmatpush.bf16.msra.mxu2 %v3536_v46 }
  0xe1   :  { %2283 = vmatpush.bf16.msra.mxu3 %v3544_v47  ;;  %2245 = vmatmul.bf16.vlgmr.msra.gmra.mxu0 %v125_v52  ;;  %v2052_v59 = vadd.f32 %v2051_v58, %v2039_v57 }
  0xe2   :  { %2258 = vmatmul.bf16.vlgmr.msra.gmra.mxu1 %v126_v53  ;;  %2359 = vmatpush.bf16.msrb.mxu0 %v3559_v20 }
  0xe3   :  { %2271 = vmatmul.bf16.vlgmr.msra.gmra.mxu2 %v127_v54 }
  0xe4   :  { %2284 = vmatmul.bf16.vlgmr.msra.gmra.mxu3 %v128_v55 }
  0xe6   :  { %v2064_v60 = vpop.f32.mrf.mxu2  ;;  %v2040_v63 = vpop.f32.mrf.mxu0  ;;  %2360 = vmatpush.bf16.msrb.mxu0 %v3558_v23 }
  0xe7   :  { %v2065_v61 = vadd.f32 %v2064_v60, %v2052_v59  ;;  %v2077_v62 = vpop.f32.mrf.mxu3  ;;  %v2053_v1 = vpop.f32.mrf.mxu1 }
  0xe9   :  { %v2078_v0 = vadd.f32 %v2077_v62, %v2065_v61  ;;  %v3563_v62 = vld [vmem:[%s4411_s4] ss:$0 sm:$0xff] }
  0xea   :  { %2361 = vmatpush.bf16.msrb.mxu0 %v3557_v24 }
  0xee   :  { %v2066_v2 = vpop.f32.mrf.mxu2  ;;  %2362 = vmatpush.bf16.msrb.mxu0 %v3556_v27 }
  0xef   :  { %v2079_v3 = vpop.f32.mrf.mxu3 }
  0xf2   :  { %2363 = vmatpush.bf16.msrb.mxu0 %v3555_v28 }
  0xf6   :  { %2364 = vmatpush.bf16.msrb.mxu0 %v3554_v30 }
  0xfa   :  { %2365 = vmatpush.bf16.msrb.mxu0 %v3553_v32 }
  0xfe   :  { %v2090_v4 = vpop.f32.mrf.mxu0  ;;  %2366 = vmatpush.bf16.msrb.mxu0 %v3552_v37 }
  0xff   :  { %v2091_v5 = vadd.f32 %v2090_v4, %v2078_v0  ;;  %v2103_v6 = vpop.f32.mrf.mxu1 }
 0x101   :  { %v2104_v7 = vadd.f32 %v2103_v6, %v2091_v5 }
 0x106   :  { %v2116_v8 = vpop.f32.mrf.mxu2  ;;  %v2092_v11 = vpop.f32.mrf.mxu0 }
 0x107   :  { %v2117_v9 = vadd.f32 %v2116_v8, %v2104_v7  ;;  %v2129_v10 = vpop.f32.mrf.mxu3  ;;  %v2105_v13 = vpop.f32.mrf.mxu1 }
 0x109   :  { %v2130_v12 = vadd.f32 %v2129_v10, %v2117_v9 }
 0x10e   :  { %v2118_v14 = vpop.f32.mrf.mxu2 }
 0x10f   :  { %v2131_v15 = vpop.f32.mrf.mxu3 }
 0x11e   :  { %v2142_v16 = vpop.f32.mrf.mxu0 }
 0x11f   :  { %v2155_v17 = vpop.f32.mrf.mxu1  ;;  %v2143_v34 = vadd.f32 %v2142_v16, %v2130_v12 }
 0x121   :  { %v2156_v39 = vadd.f32 %v2155_v17, %v2143_v34 }
 0x126   :  { %v2168_v18 = vpop.f32.mrf.mxu2  ;;  %v2144_v21 = vpop.f32.mrf.mxu0 }
 0x127   :  { %v2181_v19 = vpop.f32.mrf.mxu3  ;;  %v2157_v22 = vpop.f32.mrf.mxu1  ;;  %v2169_v40 = vadd.f32 %v2168_v18, %v2156_v39 }
 0x129   :  { %v2182_v43 = vadd.f32 %v2181_v19, %v2169_v40 }
 0x12e   :  { %v2170_v25 = vpop.f32.mrf.mxu2 }
 0x12f   :  { %v2183_v26 = vpop.f32.mrf.mxu3 }
 0x13e   :  { %v2194_v29 = vpop.f32.mrf.mxu0 }
 0x13f   :  { %v2207_v31 = vpop.f32.mrf.mxu1  ;;  %v2195_v44 = vadd.f32 %v2194_v29, %v2182_v43 }
 0x141   :  { %v2208_v45 = vadd.f32 %v2207_v31, %v2195_v44 }
 0x146   :  { %v2220_v33 = vpop.f32.mrf.mxu2  ;;  %v2196_v36 = vpop.f32.mrf.mxu0 }
 0x147   :  { %v2233_v35 = vpop.f32.mrf.mxu3  ;;  %v2209_v38 = vpop.f32.mrf.mxu1  ;;  %v2221_v46 = vadd.f32 %v2220_v33, %v2208_v45 }
 0x149   :  { %v2234_v47 = vadd.f32 %v2233_v35, %v2221_v46 }
 0x14e   :  { %v2222_v41 = vpop.f32.mrf.mxu2 }
 0x14f   :  { %v2235_v42 = vpop.f32.mrf.mxu3 }
 0x15e   :  { %v2246_v48 = vpop.f32.mrf.mxu0 }
 0x15f   :  { %v2259_v49 = vpop.f32.mrf.mxu1  ;;  %v2247_v50 = vadd.f32 %v2246_v48, %v2234_v47 }
 0x161   :  { %v2260_v51 = vadd.f32 %v2259_v49, %v2247_v50 }
 0x166   :  { %v2272_v52 = vpop.f32.mrf.mxu2  ;;  %v2248_v55 = vpop.f32.mrf.mxu0 }
 0x167   :  { %v2285_v53 = vpop.f32.mrf.mxu3  ;;  %v2273_v54 = vadd.f32 %v2272_v52, %v2260_v51  ;;  %v2261_v56 = vpop.f32.mrf.mxu1 }
 0x169   :  { %v2286_v57 = vadd.f32 %v2285_v53, %v2273_v54 }
 0x16b   :  { %v2289_v58 = vmax.f32 %v2286_v57, 0.0 }
 0x16d   :  { %v2290_v59 = vpack.c.bf16 %v2289_v58, %v2289_v58 }
 0x16e   :  { %v2274_v60 = vpop.f32.mrf.mxu2 }
 0x16f   :  { %v2287_v61 = vpop.f32.mrf.mxu3  ;;  %2367 = vmatmul.bf16.vlgmr.msrb.gmra.mxu0 %v2290_v59 }
 0x1ec   :  { %v2368_v63 = vpop.f32.mrf.mxu0 }
 0x1ed   :  { %v2369_v0 = vadd.f32 %v3563_v62, %v2368_v63 }
 0x1ef   :  { %2373 = vst.msk [vmem:[#allocation2] sm:$0x3] %vm2372_vm0, %v2369_v0  ;;  %2375 = vrot.lane.b32.xlu0 %v2369_v0, %s3591_s17 }
 0x1f0   :  { %2390 = dma.vmem_to_hbm [thread:$0]  %s2386_s13, 32, %s2388_s16, [#allocation3]  }
 0x1f4   :  { %v2370_v1 = vpop.f32.mrf.mxu0 }
 0x261   :  { %v2376_v2 = vpop.permute.xlu0 %2375 }
 0x262   :  { %2379 = vst.msk [vmem:[%s4413_s6] sm:$0x3] %vm2378_vm1, %v2376_v2 }
 0x263   :  { %3588 = dma.done.wait [#allocation3], 32  }
 0x264   :  { %3589 = vsyncadd [#allocation3], 4294967264 }
 0x265   :  { %2399 = vsyncpa [#allocation3], 1 }

</bundles_post_ra>
